<compile_context>
chip_gen: v7x
topology: tpu7x:2x2x1
jax: 0.10.0
libtpu: 0.0.40
codegen_flags: <defaults>
</compile_context>

<pallas_src>
import math

import numpy as np
import jax
import jax.numpy as jnp
from jax.experimental import pallas as pl
from jax.experimental.pallas import tpu as pltpu

# ---- module-consistent toy shapes -------------------------------------------------------
B = 2             # batch
N_CTX = 8         # query sequence length
N_DATA = 16       # key/value ("data") sequence length
WIDTH = 32        # model width
DATA_WIDTH = 32   # data_width defaults to width in the module
HEADS = 4
HEAD_DIM = WIDTH // HEADS
LN_EPS = 1e-5     # nn.LayerNorm default
INIT_SCALE = 0.25

NT = B * N_CTX    # flattened query rows    (16)
NS = B * N_DATA   # flattened kv rows       (32)

VEC_ROWS = 32     # rows of the packed LN/bias/mask slab (multiple of 8)
MASK_ROW = 16     # additive block-diagonal mask lives in rows [16, 16+NT)
_NEG_BIG = -1e30  # additive-mask value for cross-batch attention entries

_HIGH = jax.lax.Precision.HIGHEST  # exact-f32 matmuls (matches the PyTorch f32 forward)


# ---- numerics helpers (used in the kernel and in the jnp reference) ---------------------
def _erf(z):
    # Abramowitz & Stegun 7.1.26 polynomial erf (|err| < 1.5e-7): exact-GELU semantics
    # without relying on an erf lowering in Mosaic.
    p = 0.3275911
    a1, a2, a3, a4, a5 = (0.254829592, -0.284496736, 1.421413741,
                          -1.453152027, 1.061405429)
    az = jnp.abs(z)
    t = 1.0 / (1.0 + p * az)
    poly = ((((a5 * t + a4) * t + a3) * t + a2) * t + a1) * t
    y = 1.0 - poly * jnp.exp(-az * az)
    return jnp.where(z >= 0.0, y, -y)


def _gelu_exact(v):
    # nn.GELU() default (erf form)
    return 0.5 * v * (1.0 + _erf(v * 0.7071067811865476))


def _layernorm(v, g, b, eps=LN_EPS):
    mu = jnp.mean(v, axis=-1, keepdims=True)
    c = v - mu
    var = jnp.mean(c * c, axis=-1, keepdims=True)
    return c * jax.lax.rsqrt(var + eps) * g + b


# ---- the fused Pallas kernel -------------------------------------------------------------
def residual_cross_attn_kernel(x_ref, data_ref, wa_ref, wp2_ref, vec_ref, out_ref):
    x2 = x_ref[...]            # (NT, WIDTH)      flattened queries
    d2 = data_ref[...]         # (NS, DATA_WIDTH) flattened kv rows

    # Weight slab (packed once at init): [wq | wkv | wo | wfc], contraction dim on rows.
    wa = wa_ref[...]                               # (32, 256)
    wq = wa[:, :WIDTH]                             # (32, 32)
    wkv = wa[:, WIDTH:3 * WIDTH]                   # (32, 64)
    wo = wa[:, 3 * WIDTH:4 * WIDTH]                # (32, 32)
    wfc = wa[:, 4 * WIDTH:]                        # (32, 128)
    wp2 = wp2_ref[...]                             # (128, 32)

    # LN params / biases / precomputed block-diagonal mask slab.
    vecs = vec_ref[...]                            # (32, 128)
    ln1_w, ln1_b = vecs[0:1, :WIDTH], vecs[1:2, :WIDTH]
    ln2_w, ln2_b = vecs[2:3, :DATA_WIDTH], vecs[3:4, :DATA_WIDTH]
    ln3_w, ln3_b = vecs[4:5, :WIDTH], vecs[5:6, :WIDTH]
    bq = vecs[6:7, :WIDTH]
    bkv = vecs[7:8, :2 * WIDTH]
    bo = vecs[8:9, :WIDTH]
    bfc = vecs[9:10, :]
    bp2 = vecs[10:11, :WIDTH]
    mask_add = vecs[MASK_ROW:MASK_ROW + NT, :NS]   # (NT, NS) additive, 0 / -1e30

    # ---- x = x + attn(ln_1(x), ln_2(data)) ----
    hx = _layernorm(x2, ln1_w, ln1_b)              # (16, 32)
    hd = _layernorm(d2, ln2_w, ln2_b)              # (32, 32)

    scale = 1.0 / math.sqrt(math.sqrt(HEAD_DIM))

    # Full-width projections: 2 MXU ops total (vs 12 tiny head-batched einsums in v2).
    q = (jnp.dot(hx, wq, precision=_HIGH,
                 preferred_element_type=jnp.float32) + bq) * scale      # (16, 32)
    kv = jnp.dot(hd, wkv, precision=_HIGH,
                 preferred_element_type=jnp.float32) + bkv              # (32, 64)

    # Per-head attention on 8-lane slices of the full-width projections.  The kv column
    # layout is the module's native interleaving: head h -> [k: h*16..h*16+8, v: +8..+16].
    head_outs = []
    for h in range(HEADS):                                   # static 4-iter unroll
        qh = q[:, h * HEAD_DIM:(h + 1) * HEAD_DIM]           # (16, 8), already *scale
        kh = kv[:, h * 2 * HEAD_DIM:h * 2 * HEAD_DIM + HEAD_DIM] * scale      # (32, 8)
        vh = kv[:, h * 2 * HEAD_DIM + HEAD_DIM:(h + 1) * 2 * HEAD_DIM]        # (32, 8)

        s = jax.lax.dot_general(qh, kh, (((1,), (1,)), ((), ())),
                                precision=_HIGH,
                                preferred_element_type=jnp.float32)     # (16, 32)
        s = s + mask_add                                     # block-diagonal batch mask
        s = s - jnp.max(s, axis=-1, keepdims=True)
        p = jnp.exp(s)                                       # masked entries -> 0.0
        p = p / jnp.sum(p, axis=-1, keepdims=True)           # exact softmax denom
        head_outs.append(jnp.dot(p, vh, precision=_HIGH,
                                 preferred_element_type=jnp.float32))   # (16, 8)

    # Intra-vreg lane concat of the 4 head outputs, then ONE c_proj matmul.
    o = jnp.concatenate(head_outs, axis=-1)                              # (16, 32)
    proj = jnp.dot(o, wo, precision=_HIGH,
                   preferred_element_type=jnp.float32) + bo
    x1 = x2 + proj                                                       # (16, 32)

    # ---- x = x + mlp(ln_3(x)) ----
    h3 = _layernorm(x1, ln3_w, ln3_b)
    hfc = _gelu_exact(jnp.dot(h3, wfc, precision=_HIGH,
                              preferred_element_type=jnp.float32) + bfc)  # (16, 128)
    mlp = jnp.dot(hfc, wp2, precision=_HIGH,
                  preferred_element_type=jnp.float32) + bp2               # (16, 32)

    out_ref[...] = (x1 + mlp).astype(out_ref.dtype)


# ---- one-time (init-time) parameter packing — NOT in the per-call path --------------------
def pack_params(p):
    # Weight slab: [wq | wkv | wo | wfc] along lanes, contraction dim (width=32) on rows.
    w_a = jnp.concatenate(
        [p["wq"], p["wkv"], p["wo"], p["wfc"]], axis=1).astype(jnp.float32)   # (32, 256)
    w_p2 = p["wp2"].astype(jnp.float32)                                        # (128, 32)

    # LN params + biases + precomputed block-diagonal additive mask in one (32,128) slab.
    vecs = np.zeros((VEC_ROWS, 4 * WIDTH), np.float32)
    rows = [p["ln1_w"], p["ln1_b"], p["ln2_w"], p["ln2_b"],
            p["ln3_w"], p["ln3_b"], p["bq"], p["bkv"], p["bo"], p["bfc"], p["bp2"]]
    for i, r in enumerate(rows):
        r = np.asarray(r, np.float32)
        vecs[i, :r.shape[0]] = r
    row_b = np.arange(NT)[:, None] // N_CTX
    col_b = np.arange(NS)[None, :] // N_DATA
    vecs[MASK_ROW:MASK_ROW + NT, :NS] = np.where(row_b == col_b, 0.0, _NEG_BIG)
    return w_a, w_p2, jnp.asarray(vecs)


# ---- wrapper ------------------------------------------------------------------------------
_VMEM = pl.BlockSpec(memory_space=pltpu.MemorySpace.VMEM)   # whole array resident in VMEM


@jax.jit
def residual_cross_attention_block(x, data, w_a, w_p2, vecs):
    # Row-flatten batch (metadata-only reshapes); kernel works on lane-dense 2-D tiles.
    x2 = x.reshape(NT, WIDTH)
    d2 = data.reshape(NS, DATA_WIDTH)
    out2 = pl.pallas_call(
        residual_cross_attn_kernel,
        out_shape=jax.ShapeDtypeStruct((NT, WIDTH), jnp.float32),
        in_specs=[_VMEM] * 5,
        out_specs=_VMEM,
    )(x2, d2, w_a, w_p2, vecs)
    return out2.reshape(B, N_CTX, WIDTH)


# ---- deterministic parameter init ----------------------------------------------------------
def init_params(key):
    ks = jax.random.split(key, 10)

    def lin(kw, kb, din, dout, std=INIT_SCALE):
        w = jax.random.normal(kw, (din, dout), jnp.float32) * std
        # NOTE: the module's init_linear zero-inits biases; randomize slightly here to
        # exercise the kernel's bias plumbing. Forward semantics are identical.
        b = jax.random.normal(kb, (dout,), jnp.float32) * 0.1
        return w, b

    wq, bq = lin(ks[0], ks[1], WIDTH, WIDTH)               # c_q
    wkv, bkv = lin(ks[2], ks[3], DATA_WIDTH, 2 * WIDTH)    # c_kv
    wo, bo = lin(ks[4], ks[5], WIDTH, WIDTH)               # c_proj (attn)
    wfc, bfc = lin(ks[6], ks[7], WIDTH, 4 * WIDTH)         # mlp.c_fc
    wp2, bp2 = lin(ks[8], ks[9], 4 * WIDTH, WIDTH)         # mlp.c_proj

    ones = lambda n: jnp.ones((n,), jnp.float32)
    zeros = lambda n: jnp.zeros((n,), jnp.float32)
    return dict(
        ln1_w=ones(WIDTH), ln1_b=zeros(WIDTH),
        ln2_w=ones(DATA_WIDTH), ln2_b=zeros(DATA_WIDTH),
        ln3_w=ones(WIDTH), ln3_b=zeros(WIDTH),
        wq=wq, bq=bq, wkv=wkv, bkv=bkv, wo=wo, bo=bo,
        wfc=wfc, bfc=bfc, wp2=wp2, bp2=bp2,
    )


# ---- plain-JAX reference of the PyTorch forward --------------------------------------------
def reference(x, data, p):
    hx = _layernorm(x, p["ln1_w"], p["ln1_b"])
    hd = _layernorm(data, p["ln2_w"], p["ln2_b"])
    q = hx @ p["wq"] + p["bq"]
    kv = hd @ p["wkv"] + p["bkv"]
    qh = q.reshape(B, N_CTX, HEADS, HEAD_DIM)
    kvh = kv.reshape(B, N_DATA, HEADS, 2 * HEAD_DIM)
    kh, vh = kvh[..., :HEAD_DIM], kvh[..., HEAD_DIM:]
    scale = 1.0 / math.sqrt(math.sqrt(HEAD_DIM))
    w = jnp.einsum("bthc,bshc->bhts", qh * scale, kh * scale)
    w = jax.nn.softmax(w, axis=-1)
    o = jnp.einsum("bhts,bshc->bthc", w, vh).reshape(B, N_CTX, WIDTH)
    o = o @ p["wo"] + p["bo"]
    x1 = x + o
    h3 = _layernorm(x1, p["ln3_w"], p["ln3_b"])
    h = jax.nn.gelu(h3 @ p["wfc"] + p["bfc"], approximate=False)
    m = h @ p["wp2"] + p["bp2"]
    return x1 + m


if __name__ == "__main__":
    key = jax.random.PRNGKey(0)
    kx, kd, kp = jax.random.split(key, 3)
    x = jax.random.normal(kx, (B, N_CTX, WIDTH), jnp.float32)
    data = jax.random.normal(kd, (B, N_DATA, DATA_WIDTH), jnp.float32)
    params = init_params(kp)
    packed = pack_params(params)   # one-time packing, outside the per-call hot path

    out = jax.block_until_ready(residual_cross_attention_block(x, data, *packed))

    with jax.default_matmul_precision("float32"):
        ref = jax.block_until_ready(reference(x, data, params))

    assert out.shape == (B, N_CTX, WIDTH)
    max_err = float(jnp.max(jnp.abs(out - ref)))
    assert max_err < 2e-3, max_err
    print("KERNEL_OK")
</pallas_src>

<mosaic_0001>
module attributes {stable_mosaic.version = 11 : i64} {
  func.func @residual_cross_attn_kernel(%arg0: memref<16x32xf32, #tpu.memory_space<vmem>>, %arg1: memref<32x32xf32, #tpu.memory_space<vmem>>, %arg2: memref<32x256xf32, #tpu.memory_space<vmem>>, %arg3: memref<128x32xf32, #tpu.memory_space<vmem>>, %arg4: memref<32x128xf32, #tpu.memory_space<vmem>>, %arg5: memref<16x32xf32, #tpu.memory_space<vmem>>) attributes {dimension_semantics = [], scalar_prefetch = 0 : i64, scratch_operands = 0 : i64, tpu.core_type = #tpu.core_type<tc>} {
    %c0 = arith.constant 0 : index
    %c0_0 = arith.constant 0 : index
    %0 = vector.load %arg0[%c0, %c0_0] : memref<16x32xf32, #tpu.memory_space<vmem>>, vector<16x32xf32>
    %c0_1 = arith.constant 0 : index
    %c0_2 = arith.constant 0 : index
    %1 = vector.load %arg1[%c0_1, %c0_2] : memref<32x32xf32, #tpu.memory_space<vmem>>, vector<32x32xf32>
    %c0_3 = arith.constant 0 : index
    %c0_4 = arith.constant 0 : index
    %2 = vector.load %arg2[%c0_3, %c0_4] : memref<32x256xf32, #tpu.memory_space<vmem>>, vector<32x256xf32>
    %3 = vector.extract_strided_slice %2 {offsets = [0, 0], sizes = [32, 32], strides = [1, 1]} : vector<32x256xf32> to vector<32x32xf32>
    %4 = vector.extract_strided_slice %2 {offsets = [0, 32], sizes = [32, 64], strides = [1, 1]} : vector<32x256xf32> to vector<32x64xf32>
    %5 = vector.extract_strided_slice %2 {offsets = [0, 96], sizes = [32, 32], strides = [1, 1]} : vector<32x256xf32> to vector<32x32xf32>
    %6 = vector.extract_strided_slice %2 {offsets = [0, 128], sizes = [32, 128], strides = [1, 1]} : vector<32x256xf32> to vector<32x128xf32>
    %c0_5 = arith.constant 0 : index
    %c0_6 = arith.constant 0 : index
    %7 = vector.load %arg3[%c0_5, %c0_6] : memref<128x32xf32, #tpu.memory_space<vmem>>, vector<128x32xf32>
    %c0_7 = arith.constant 0 : index
    %c0_8 = arith.constant 0 : index
    %8 = vector.load %arg4[%c0_7, %c0_8] : memref<32x128xf32, #tpu.memory_space<vmem>>, vector<32x128xf32>
    %9 = vector.extract_strided_slice %8 {offsets = [0, 0], sizes = [1, 32], strides = [1, 1]} : vector<32x128xf32> to vector<1x32xf32>
    %10 = vector.extract_strided_slice %8 {offsets = [1, 0], sizes = [1, 32], strides = [1, 1]} : vector<32x128xf32> to vector<1x32xf32>
    %11 = vector.extract_strided_slice %8 {offsets = [2, 0], sizes = [1, 32], strides = [1, 1]} : vector<32x128xf32> to vector<1x32xf32>
    %12 = vector.extract_strided_slice %8 {offsets = [3, 0], sizes = [1, 32], strides = [1, 1]} : vector<32x128xf32> to vector<1x32xf32>
    %13 = vector.extract_strided_slice %8 {offsets = [4, 0], sizes = [1, 32], strides = [1, 1]} : vector<32x128xf32> to vector<1x32xf32>
    %14 = vector.extract_strided_slice %8 {offsets = [5, 0], sizes = [1, 32], strides = [1, 1]} : vector<32x128xf32> to vector<1x32xf32>
    %15 = vector.extract_strided_slice %8 {offsets = [6, 0], sizes = [1, 32], strides = [1, 1]} : vector<32x128xf32> to vector<1x32xf32>
    %16 = vector.extract_strided_slice %8 {offsets = [7, 0], sizes = [1, 64], strides = [1, 1]} : vector<32x128xf32> to vector<1x64xf32>
    %17 = vector.extract_strided_slice %8 {offsets = [8, 0], sizes = [1, 32], strides = [1, 1]} : vector<32x128xf32> to vector<1x32xf32>
    %18 = vector.extract_strided_slice %8 {offsets = [9, 0], sizes = [1, 128], strides = [1, 1]} : vector<32x128xf32> to vector<1x128xf32>
    %19 = vector.extract_strided_slice %8 {offsets = [10, 0], sizes = [1, 32], strides = [1, 1]} : vector<32x128xf32> to vector<1x32xf32>
    %20 = vector.extract_strided_slice %8 {offsets = [16, 0], sizes = [16, 32], strides = [1, 1]} : vector<32x128xf32> to vector<16x32xf32>
    %cst = arith.constant dense<0.000000e+00> : vector<16xf32>
    %21 = vector.multi_reduction <add>, %0, %cst [1] : vector<16x32xf32> to vector<16xf32>
    %22 = vector.shape_cast %21 : vector<16xf32> to vector<16x1xf32>
    %cst_9 = arith.constant 3.200000e+01 : f32
    %23 = vector.broadcast %cst_9 : f32 to vector<16x1xf32>
    %24 = arith.divf %22, %23 : vector<16x1xf32>
    %25 = vector.broadcast %24 : vector<16x1xf32> to vector<16x32xf32>
    %26 = arith.subf %0, %25 : vector<16x32xf32>
    %27 = arith.mulf %26, %26 : vector<16x32xf32>
    %cst_10 = arith.constant dense<0.000000e+00> : vector<16xf32>
    %28 = vector.multi_reduction <add>, %27, %cst_10 [1] : vector<16x32xf32> to vector<16xf32>
    %29 = vector.shape_cast %28 : vector<16xf32> to vector<16x1xf32>
    %cst_11 = arith.constant 3.200000e+01 : f32
    %30 = vector.broadcast %cst_11 : f32 to vector<16x1xf32>
    %31 = arith.divf %29, %30 : vector<16x1xf32>
    %cst_12 = arith.constant 9.99999974E-6 : f32
    %32 = vector.broadcast %cst_12 : f32 to vector<16x1xf32>
    %33 = arith.addf %31, %32 : vector<16x1xf32>
    %34 = math.rsqrt %33 : vector<16x1xf32>
    %35 = vector.broadcast %34 : vector<16x1xf32> to vector<16x32xf32>
    %36 = arith.mulf %26, %35 : vector<16x32xf32>
    %37 = vector.broadcast %9 : vector<1x32xf32> to vector<16x32xf32>
    %38 = arith.mulf %36, %37 : vector<16x32xf32>
    %39 = vector.broadcast %10 : vector<1x32xf32> to vector<16x32xf32>
    %40 = arith.addf %38, %39 : vector<16x32xf32>
    %cst_13 = arith.constant dense<0.000000e+00> : vector<32xf32>
    %41 = vector.multi_reduction <add>, %1, %cst_13 [1] : vector<32x32xf32> to vector<32xf32>
    %42 = vector.shape_cast %41 : vector<32xf32> to vector<32x1xf32>
    %cst_14 = arith.constant 3.200000e+01 : f32
    %43 = vector.broadcast %cst_14 : f32 to vector<32x1xf32>
    %44 = arith.divf %42, %43 : vector<32x1xf32>
    %45 = vector.broadcast %44 : vector<32x1xf32> to vector<32x32xf32>
    %46 = arith.subf %1, %45 : vector<32x32xf32>
    %47 = arith.mulf %46, %46 : vector<32x32xf32>
    %cst_15 = arith.constant dense<0.000000e+00> : vector<32xf32>
    %48 = vector.multi_reduction <add>, %47, %cst_15 [1] : vector<32x32xf32> to vector<32xf32>
    %49 = vector.shape_cast %48 : vector<32xf32> to vector<32x1xf32>
    %cst_16 = arith.constant 3.200000e+01 : f32
    %50 = vector.broadcast %cst_16 : f32 to vector<32x1xf32>
    %51 = arith.divf %49, %50 : vector<32x1xf32>
    %cst_17 = arith.constant 9.99999974E-6 : f32
    %52 = vector.broadcast %cst_17 : f32 to vector<32x1xf32>
    %53 = arith.addf %51, %52 : vector<32x1xf32>
    %54 = math.rsqrt %53 : vector<32x1xf32>
    %55 = vector.broadcast %54 : vector<32x1xf32> to vector<32x32xf32>
    %56 = arith.mulf %46, %55 : vector<32x32xf32>
    %57 = vector.broadcast %11 : vector<1x32xf32> to vector<32x32xf32>
    %58 = arith.mulf %56, %57 : vector<32x32xf32>
    %59 = vector.broadcast %12 : vector<1x32xf32> to vector<32x32xf32>
    %60 = arith.addf %58, %59 : vector<32x32xf32>
    %cst_18 = arith.constant dense<0.000000e+00> : vector<16x32xf32>
    %61 = tpu.matmul %40, %3, %cst_18 {dimension_numbers = #tpu.dot_dimension_numbers<[1], [0], [0], [1], [0, 0, 1, 1], [], []>, precision = #tpu.contract_precision<fp32>} : vector<16x32xf32>, vector<32x32xf32>, vector<16x32xf32> -> vector<16x32xf32>
    %62 = vector.broadcast %15 : vector<1x32xf32> to vector<16x32xf32>
    %63 = arith.addf %61, %62 : vector<16x32xf32>
    %cst_19 = arith.constant 0.594603539 : f32
    %64 = vector.broadcast %cst_19 : f32 to vector<16x32xf32>
    %65 = arith.mulf %63, %64 : vector<16x32xf32>
    %cst_20 = arith.constant dense<0.000000e+00> : vector<32x64xf32>
    %66 = tpu.matmul %60, %4, %cst_20 {dimension_numbers = #tpu.dot_dimension_numbers<[1], [0], [0], [1], [0, 0, 1, 1], [], []>, precision = #tpu.contract_precision<fp32>} : vector<32x32xf32>, vector<32x64xf32>, vector<32x64xf32> -> vector<32x64xf32>
    %67 = vector.broadcast %16 : vector<1x64xf32> to vector<32x64xf32>
    %68 = arith.addf %66, %67 : vector<32x64xf32>
    %69 = vector.extract_strided_slice %65 {offsets = [0, 0], sizes = [16, 8], strides = [1, 1]} : vector<16x32xf32> to vector<16x8xf32>
    %70 = vector.extract_strided_slice %68 {offsets = [0, 0], sizes = [32, 8], strides = [1, 1]} : vector<32x64xf32> to vector<32x8xf32>
    %cst_21 = arith.constant 0.594603539 : f32
    %71 = vector.broadcast %cst_21 : f32 to vector<32x8xf32>
    %72 = arith.mulf %70, %71 : vector<32x8xf32>
    %73 = vector.extract_strided_slice %68 {offsets = [0, 8], sizes = [32, 8], strides = [1, 1]} : vector<32x64xf32> to vector<32x8xf32>
    %cst_22 = arith.constant dense<0.000000e+00> : vector<16x32xf32>
    %74 = tpu.matmul %69, %72, %cst_22 {dimension_numbers = #tpu.dot_dimension_numbers<[1], [1], [0], [0], [0, 0, 1, 0], [], []>, precision = #tpu.contract_precision<fp32>} : vector<16x8xf32>, vector<32x8xf32>, vector<16x32xf32> -> vector<16x32xf32>
    %75 = arith.addf %74, %20 : vector<16x32xf32>
    %cst_23 = arith.constant dense<0xFF800000> : vector<16xf32>
    %76 = vector.multi_reduction <maximumf>, %75, %cst_23 [1] : vector<16x32xf32> to vector<16xf32>
    %77 = vector.shape_cast %76 : vector<16xf32> to vector<16x1xf32>
    %78 = vector.broadcast %77 : vector<16x1xf32> to vector<16x32xf32>
    %79 = arith.subf %75, %78 : vector<16x32xf32>
    %80 = math.exp %79 : vector<16x32xf32>
    %cst_24 = arith.constant dense<0.000000e+00> : vector<16xf32>
    %81 = vector.multi_reduction <add>, %80, %cst_24 [1] : vector<16x32xf32> to vector<16xf32>
    %82 = vector.shape_cast %81 : vector<16xf32> to vector<16x1xf32>
    %83 = vector.broadcast %82 : vector<16x1xf32> to vector<16x32xf32>
    %84 = arith.divf %80, %83 : vector<16x32xf32>
    %cst_25 = arith.constant dense<0.000000e+00> : vector<16x8xf32>
    %85 = tpu.matmul %84, %73, %cst_25 {dimension_numbers = #tpu.dot_dimension_numbers<[1], [0], [0], [1], [0, 0, 1, 1], [], []>, precision = #tpu.contract_precision<fp32>} : vector<16x32xf32>, vector<32x8xf32>, vector<16x8xf32> -> vector<16x8xf32>
    %86 = vector.extract_strided_slice %65 {offsets = [0, 8], sizes = [16, 8], strides = [1, 1]} : vector<16x32xf32> to vector<16x8xf32>
    %87 = vector.extract_strided_slice %68 {offsets = [0, 16], sizes = [32, 8], strides = [1, 1]} : vector<32x64xf32> to vector<32x8xf32>
    %cst_26 = arith.constant 0.594603539 : f32
    %88 = vector.broadcast %cst_26 : f32 to vector<32x8xf32>
    %89 = arith.mulf %87, %88 : vector<32x8xf32>
    %90 = vector.extract_strided_slice %68 {offsets = [0, 24], sizes = [32, 8], strides = [1, 1]} : vector<32x64xf32> to vector<32x8xf32>
    %cst_27 = arith.constant dense<0.000000e+00> : vector<16x32xf32>
    %91 = tpu.matmul %86, %89, %cst_27 {dimension_numbers = #tpu.dot_dimension_numbers<[1], [1], [0], [0], [0, 0, 1, 0], [], []>, precision = #tpu.contract_precision<fp32>} : vector<16x8xf32>, vector<32x8xf32>, vector<16x32xf32> -> vector<16x32xf32>
    %92 = arith.addf %91, %20 : vector<16x32xf32>
    %cst_28 = arith.constant dense<0xFF800000> : vector<16xf32>
    %93 = vector.multi_reduction <maximumf>, %92, %cst_28 [1] : vector<16x32xf32> to vector<16xf32>
    %94 = vector.shape_cast %93 : vector<16xf32> to vector<16x1xf32>
    %95 = vector.broadcast %94 : vector<16x1xf32> to vector<16x32xf32>
    %96 = arith.subf %92, %95 : vector<16x32xf32>
    %97 = math.exp %96 : vector<16x32xf32>
    %cst_29 = arith.constant dense<0.000000e+00> : vector<16xf32>
    %98 = vector.multi_reduction <add>, %97, %cst_29 [1] : vector<16x32xf32> to vector<16xf32>
    %99 = vector.shape_cast %98 : vector<16xf32> to vector<16x1xf32>
    %100 = vector.broadcast %99 : vector<16x1xf32> to vector<16x32xf32>
    %101 = arith.divf %97, %100 : vector<16x32xf32>
    %cst_30 = arith.constant dense<0.000000e+00> : vector<16x8xf32>
    %102 = tpu.matmul %101, %90, %cst_30 {dimension_numbers = #tpu.dot_dimension_numbers<[1], [0], [0], [1], [0, 0, 1, 1], [], []>, precision = #tpu.contract_precision<fp32>} : vector<16x32xf32>, vector<32x8xf32>, vector<16x8xf32> -> vector<16x8xf32>
    %103 = vector.extract_strided_slice %65 {offsets = [0, 16], sizes = [16, 8], strides = [1, 1]} : vector<16x32xf32> to vector<16x8xf32>
    %104 = vector.extract_strided_slice %68 {offsets = [0, 32], sizes = [32, 8], strides = [1, 1]} : vector<32x64xf32> to vector<32x8xf32>
    %cst_31 = arith.constant 0.594603539 : f32
    %105 = vector.broadcast %cst_31 : f32 to vector<32x8xf32>
    %106 = arith.mulf %104, %105 : vector<32x8xf32>
    %107 = vector.extract_strided_slice %68 {offsets = [0, 40], sizes = [32, 8], strides = [1, 1]} : vector<32x64xf32> to vector<32x8xf32>
    %cst_32 = arith.constant dense<0.000000e+00> : vector<16x32xf32>
    %108 = tpu.matmul %103, %106, %cst_32 {dimension_numbers = #tpu.dot_dimension_numbers<[1], [1], [0], [0], [0, 0, 1, 0], [], []>, precision = #tpu.contract_precision<fp32>} : vector<16x8xf32>, vector<32x8xf32>, vector<16x32xf32> -> vector<16x32xf32>
    %109 = arith.addf %108, %20 : vector<16x32xf32>
    %cst_33 = arith.constant dense<0xFF800000> : vector<16xf32>
    %110 = vector.multi_reduction <maximumf>, %109, %cst_33 [1] : vector<16x32xf32> to vector<16xf32>
    %111 = vector.shape_cast %110 : vector<16xf32> to vector<16x1xf32>
    %112 = vector.broadcast %111 : vector<16x1xf32> to vector<16x32xf32>
    %113 = arith.subf %109, %112 : vector<16x32xf32>
    %114 = math.exp %113 : vector<16x32xf32>
    %cst_34 = arith.constant dense<0.000000e+00> : vector<16xf32>
    %115 = vector.multi_reduction <add>, %114, %cst_34 [1] : vector<16x32xf32> to vector<16xf32>
    %116 = vector.shape_cast %115 : vector<16xf32> to vector<16x1xf32>
    %117 = vector.broadcast %116 : vector<16x1xf32> to vector<16x32xf32>
    %118 = arith.divf %114, %117 : vector<16x32xf32>
    %cst_35 = arith.constant dense<0.000000e+00> : vector<16x8xf32>
    %119 = tpu.matmul %118, %107, %cst_35 {dimension_numbers = #tpu.dot_dimension_numbers<[1], [0], [0], [1], [0, 0, 1, 1], [], []>, precision = #tpu.contract_precision<fp32>} : vector<16x32xf32>, vector<32x8xf32>, vector<16x8xf32> -> vector<16x8xf32>
    %120 = vector.extract_strided_slice %65 {offsets = [0, 24], sizes = [16, 8], strides = [1, 1]} : vector<16x32xf32> to vector<16x8xf32>
    %121 = vector.extract_strided_slice %68 {offsets = [0, 48], sizes = [32, 8], strides = [1, 1]} : vector<32x64xf32> to vector<32x8xf32>
    %cst_36 = arith.constant 0.594603539 : f32
    %122 = vector.broadcast %cst_36 : f32 to vector<32x8xf32>
    %123 = arith.mulf %121, %122 : vector<32x8xf32>
    %124 = vector.extract_strided_slice %68 {offsets = [0, 56], sizes = [32, 8], strides = [1, 1]} : vector<32x64xf32> to vector<32x8xf32>
    %cst_37 = arith.constant dense<0.000000e+00> : vector<16x32xf32>
    %125 = tpu.matmul %120, %123, %cst_37 {dimension_numbers = #tpu.dot_dimension_numbers<[1], [1], [0], [0], [0, 0, 1, 0], [], []>, precision = #tpu.contract_precision<fp32>} : vector<16x8xf32>, vector<32x8xf32>, vector<16x32xf32> -> vector<16x32xf32>
    %126 = arith.addf %125, %20 : vector<16x32xf32>
    %cst_38 = arith.constant dense<0xFF800000> : vector<16xf32>
    %127 = vector.multi_reduction <maximumf>, %126, %cst_38 [1] : vector<16x32xf32> to vector<16xf32>
    %128 = vector.shape_cast %127 : vector<16xf32> to vector<16x1xf32>
    %129 = vector.broadcast %128 : vector<16x1xf32> to vector<16x32xf32>
    %130 = arith.subf %126, %129 : vector<16x32xf32>
    %131 = math.exp %130 : vector<16x32xf32>
    %cst_39 = arith.constant dense<0.000000e+00> : vector<16xf32>
    %132 = vector.multi_reduction <add>, %131, %cst_39 [1] : vector<16x32xf32> to vector<16xf32>
    %133 = vector.shape_cast %132 : vector<16xf32> to vector<16x1xf32>
    %134 = vector.broadcast %133 : vector<16x1xf32> to vector<16x32xf32>
    %135 = arith.divf %131, %134 : vector<16x32xf32>
    %cst_40 = arith.constant dense<0.000000e+00> : vector<16x8xf32>
    %136 = tpu.matmul %135, %124, %cst_40 {dimension_numbers = #tpu.dot_dimension_numbers<[1], [0], [0], [1], [0, 0, 1, 1], [], []>, precision = #tpu.contract_precision<fp32>} : vector<16x32xf32>, vector<32x8xf32>, vector<16x8xf32> -> vector<16x8xf32>
    %137 = tpu.concatenate %85, %102, %119, %136 in 1 : vector<16x8xf32>, vector<16x8xf32>, vector<16x8xf32>, vector<16x8xf32> -> vector<16x32xf32>
    %cst_41 = arith.constant dense<0.000000e+00> : vector<16x32xf32>
    %138 = tpu.matmul %137, %5, %cst_41 {dimension_numbers = #tpu.dot_dimension_numbers<[1], [0], [0], [1], [0, 0, 1, 1], [], []>, precision = #tpu.contract_precision<fp32>} : vector<16x32xf32>, vector<32x32xf32>, vector<16x32xf32> -> vector<16x32xf32>
    %139 = vector.broadcast %17 : vector<1x32xf32> to vector<16x32xf32>
    %140 = arith.addf %138, %139 : vector<16x32xf32>
    %141 = arith.addf %0, %140 : vector<16x32xf32>
    %cst_42 = arith.constant dense<0.000000e+00> : vector<16xf32>
    %142 = vector.multi_reduction <add>, %141, %cst_42 [1] : vector<16x32xf32> to vector<16xf32>
    %143 = vector.shape_cast %142 : vector<16xf32> to vector<16x1xf32>
    %cst_43 = arith.constant 3.200000e+01 : f32
    %144 = vector.broadcast %cst_43 : f32 to vector<16x1xf32>
    %145 = arith.divf %143, %144 : vector<16x1xf32>
    %146 = vector.broadcast %145 : vector<16x1xf32> to vector<16x32xf32>
    %147 = arith.subf %141, %146 : vector<16x32xf32>
    %148 = arith.mulf %147, %147 : vector<16x32xf32>
    %cst_44 = arith.constant dense<0.000000e+00> : vector<16xf32>
    %149 = vector.multi_reduction <add>, %148, %cst_44 [1] : vector<16x32xf32> to vector<16xf32>
    %150 = vector.shape_cast %149 : vector<16xf32> to vector<16x1xf32>
    %cst_45 = arith.constant 3.200000e+01 : f32
    %151 = vector.broadcast %cst_45 : f32 to vector<16x1xf32>
    %152 = arith.divf %150, %151 : vector<16x1xf32>
    %cst_46 = arith.constant 9.99999974E-6 : f32
    %153 = vector.broadcast %cst_46 : f32 to vector<16x1xf32>
    %154 = arith.addf %152, %153 : vector<16x1xf32>
    %155 = math.rsqrt %154 : vector<16x1xf32>
    %156 = vector.broadcast %155 : vector<16x1xf32> to vector<16x32xf32>
    %157 = arith.mulf %147, %156 : vector<16x32xf32>
    %158 = vector.broadcast %13 : vector<1x32xf32> to vector<16x32xf32>
    %159 = arith.mulf %157, %158 : vector<16x32xf32>
    %160 = vector.broadcast %14 : vector<1x32xf32> to vector<16x32xf32>
    %161 = arith.addf %159, %160 : vector<16x32xf32>
    %cst_47 = arith.constant dense<0.000000e+00> : vector<16x128xf32>
    %162 = tpu.matmul %161, %6, %cst_47 {dimension_numbers = #tpu.dot_dimension_numbers<[1], [0], [0], [1], [0, 0, 1, 1], [], []>, precision = #tpu.contract_precision<fp32>} : vector<16x32xf32>, vector<32x128xf32>, vector<16x128xf32> -> vector<16x128xf32>
    %163 = vector.broadcast %18 : vector<1x128xf32> to vector<16x128xf32>
    %164 = arith.addf %162, %163 : vector<16x128xf32>
    %cst_48 = arith.constant 5.000000e-01 : f32
    %165 = vector.broadcast %cst_48 : f32 to vector<16x128xf32>
    %166 = arith.mulf %165, %164 : vector<16x128xf32>
    %cst_49 = arith.constant 0.707106769 : f32
    %167 = vector.broadcast %cst_49 : f32 to vector<16x128xf32>
    %168 = arith.mulf %164, %167 : vector<16x128xf32>
    %169 = math.absf %168 : vector<16x128xf32>
    %cst_50 = arith.constant 0.327591091 : f32
    %170 = vector.broadcast %cst_50 : f32 to vector<16x128xf32>
    %171 = arith.mulf %170, %169 : vector<16x128xf32>
    %cst_51 = arith.constant 1.000000e+00 : f32
    %172 = vector.broadcast %cst_51 : f32 to vector<16x128xf32>
    %173 = arith.addf %172, %171 : vector<16x128xf32>
    %cst_52 = arith.constant 1.000000e+00 : f32
    %174 = vector.broadcast %cst_52 : f32 to vector<16x128xf32>
    %175 = arith.divf %174, %173 : vector<16x128xf32>
    %cst_53 = arith.constant 1.06140542 : f32
    %176 = vector.broadcast %cst_53 : f32 to vector<16x128xf32>
    %177 = arith.mulf %176, %175 : vector<16x128xf32>
    %cst_54 = arith.constant -1.45315206 : f32
    %178 = vector.broadcast %cst_54 : f32 to vector<16x128xf32>
    %179 = arith.addf %177, %178 : vector<16x128xf32>
    %180 = arith.mulf %179, %175 : vector<16x128xf32>
    %cst_55 = arith.constant 1.42141378 : f32
    %181 = vector.broadcast %cst_55 : f32 to vector<16x128xf32>
    %182 = arith.addf %180, %181 : vector<16x128xf32>
    %183 = arith.mulf %182, %175 : vector<16x128xf32>
    %cst_56 = arith.constant -0.284496725 : f32
    %184 = vector.broadcast %cst_56 : f32 to vector<16x128xf32>
    %185 = arith.addf %183, %184 : vector<16x128xf32>
    %186 = arith.mulf %185, %175 : vector<16x128xf32>
    %cst_57 = arith.constant 0.254829586 : f32
    %187 = vector.broadcast %cst_57 : f32 to vector<16x128xf32>
    %188 = arith.addf %186, %187 : vector<16x128xf32>
    %189 = arith.mulf %188, %175 : vector<16x128xf32>
    %cst_58 = arith.constant 0.000000e+00 : f32
    %190 = vector.broadcast %cst_58 : f32 to vector<16x128xf32>
    %191 = arith.subf %190, %169 : vector<16x128xf32>
    %192 = arith.mulf %191, %169 : vector<16x128xf32>
    %193 = math.exp %192 : vector<16x128xf32>
    %194 = arith.mulf %189, %193 : vector<16x128xf32>
    %cst_59 = arith.constant 1.000000e+00 : f32
    %195 = vector.broadcast %cst_59 : f32 to vector<16x128xf32>
    %196 = arith.subf %195, %194 : vector<16x128xf32>
    %cst_60 = arith.constant 0.000000e+00 : f32
    %197 = vector.broadcast %cst_60 : f32 to vector<16x128xf32>
    %198 = arith.cmpf oge, %168, %197 : vector<16x128xf32>
    %cst_61 = arith.constant 0.000000e+00 : f32
    %199 = vector.broadcast %cst_61 : f32 to vector<16x128xf32>
    %200 = arith.subf %199, %196 : vector<16x128xf32>
    %201 = arith.select %198, %196, %200 : vector<16x128xi1>, vector<16x128xf32>
    %cst_62 = arith.constant 1.000000e+00 : f32
    %202 = vector.broadcast %cst_62 : f32 to vector<16x128xf32>
    %203 = arith.addf %202, %201 : vector<16x128xf32>
    %204 = arith.mulf %166, %203 : vector<16x128xf32>
    %cst_63 = arith.constant dense<0.000000e+00> : vector<16x32xf32>
    %205 = tpu.matmul %204, %7, %cst_63 {dimension_numbers = #tpu.dot_dimension_numbers<[1], [0], [0], [1], [0, 0, 1, 1], [], []>, precision = #tpu.contract_precision<fp32>} : vector<16x128xf32>, vector<128x32xf32>, vector<16x32xf32> -> vector<16x32xf32>
    %206 = vector.broadcast %19 : vector<1x32xf32> to vector<16x32xf32>
    %207 = arith.addf %205, %206 : vector<16x32xf32>
    %208 = arith.addf %141, %207 : vector<16x32xf32>
    %c0_64 = arith.constant 0 : index
    %c0_65 = arith.constant 0 : index
    %209 = vector.load %arg5[%c0_64, %c0_65] : memref<16x32xf32, #tpu.memory_space<vmem>>, vector<16x32xf32>
    tpu.vector_store %arg5[%c0_64, %c0_65], %208 {strides = array<i32>} : memref<16x32xf32, #tpu.memory_space<vmem>>, vector<16x32xf32>,
    return
  }
}

</mosaic_0001>

<bundles_post_ra>
// kernel: residual_cross_attention_block.1
= control target key start
LH: loop header
LB: loop body
LE: loop exit
PB: predicated region body
PF: predicated region fallthrough
CT: control target
= control target key end

     0   :  { %vm55_vm0 = vcmask 261120   ;;  %s11540_s0 = inlined_call_operand.vmem [shape: f32[16,32], index: 0, kind: input, shape index: {}]   ;;  %s11541_s1 = inlined_call_operand.vmem [shape: f32[32,32], index: 1, kind: input, shape index: {}]   ;;  %s11542_s2 = inlined_call_operand.vmem [shape: f32[32,256], index: 2, kind: input, shape index: {}]   ;;  %s11543_s3 = inlined_call_operand.vmem [shape: f32[128,32], index: 3, kind: input, shape index: {}]   ;;  %s11544_s4 = inlined_call_operand.vmem [shape: f32[32,128], index: 4, kind: input, shape index: {}]   ;;  %s11545_s5 = inlined_call_operand.hbm [shape: f32[16,32], index: 5, kind: output, shape index: {}]  }
   0x1   :  { %v23_v0 = vld [vmem:[%s11541_s1] sm:$0xff]  ;;  %v25_v1 = vld [vmem:[%s11541_s1 + $0x10] sm:$0xff]  ;;  %v24_v2 = vld [vmem:[%s11541_s1 + $0x8] sm:$0xff] }
   0x2   :  { %v95_v3 = vsel %vm55_vm0, %v23_v0, 0.0  ;;  %v101_v4 = vsel %vm55_vm0, %v25_v1, 0.0  ;;  %v26_v5 = vld [vmem:[%s11541_s1 + $0x18] sm:$0xff] }
   0x3   :  { %96 = vadd.xlane.f32.xlu0 %v95_v3  ;;  %102 = vadd.xlane.f32.xlu1 %v101_v4 }
   0x4   :  { %10 = vsyncpa [#allocation3], 0  ;;  %v98_v6 = vsel %vm55_vm0, %v24_v2, 0.0  ;;  %v104_v7 = vsel %vm55_vm0, %v26_v5, 0.0  ;;  %v21_v8 = vld [vmem:[%s11540_s0] sm:$0xff]  ;;  %v22_v9 = vld [vmem:[%s11540_s0 + $0x8] sm:$0xff] }
   0x5   :  { %v56_v10 = vsel %vm55_vm0, %v21_v8, 0.0  ;;  %v59_v11 = vsel %vm55_vm0, %v22_v9, 0.0  ;;  %v29_v12 = vld [vmem:[%s11542_s2 + $0x10] sm:$0xff]  ;;  %v27_v14 = vld [vmem:[%s11542_s2] sm:$0xff]  ;;  %s10356_s12 = smov 96   ;;  %vm1353_vm1 = vcmask 64512  }
   0x6   :  { %v177_v13 = vand.u32 4294901760, %v29_v12  ;;  %v174_v15 = vand.u32 4294901760, %v27_v14  ;;  %v31_v17 = vld [vmem:[%s11542_s2 + $0x20] sm:$0xff]  ;;  %v33_v19 = vld [vmem:[%s11542_s2 + $0x30] sm:$0xff]  ;;  %s10357_s19 = smov 120   ;;  %s10358_s20 = smov 112  }
   0x7   :  { %99 = vadd.xlane.f32.xlu0 %v98_v6  ;;  %105 = vadd.xlane.f32.xlu1 %v104_v7  ;;  %v180_v18 = vand.u32 4294901760, %v31_v17  ;;  %v183_v20 = vand.u32 4294901760, %v33_v19  ;;  %s10359_s21 = smov 104   ;;  %s10360_s22 = smov 88   ;;  %vm5858_vm2 = vcmask 130048   ;;  %vm5861_vm3 = vcmask 195584  }
   0x8   :  { %v10429_v16 = vpack.c.bf16 %v177_v13, %v174_v15  ;;  %v271_v52 = vsub.f32 %v29_v12, %v177_v13  ;;  %v264_v53 = vsub.f32 %v27_v14, %v174_v15  ;;  %s10361_s23 = smov 80   ;;  %s10362_s28 = smov 72  }
   0x9   :  { %v10439_v21 = vpack.c.bf16 %v183_v20, %v180_v18  ;;  %v278_v54 = vsub.f32 %v31_v17, %v180_v18  ;;  %v285_v55 = vsub.f32 %v33_v19, %v183_v20  ;;  %s10363_s29 = smov 8   ;;  %s10364_s1 = smov 16  }
   0xa   :  { %9327 = vmatprep.subr.bf16.mxu0 %v10429_v16  ;;  %v265_v56 = vand.u32 4294901760, %v264_v53  ;;  %v272_v57 = vand.u32 4294901760, %v271_v52  ;;  %v10482_v6 = vpack.c.bf16 %v271_v52, %v264_v53  ;;  %s10365_s30 = smov 24   ;;  %s10366_s8 = smov 32  }
   0xb   :  { %57 = vadd.xlane.f32.xlu0 %v56_v10  ;;  %60 = vadd.xlane.f32.xlu1 %v59_v11  ;;  %v279_v62 = vand.u32 4294901760, %v278_v54  ;;  %v286_v63 = vand.u32 4294901760, %v285_v55  ;;  %v10484_v7 = vpack.c.bf16 %v285_v55, %v278_v54 }
   0xc   :  { %9329 = vmatpush3.bf16.msra.mxu0 %v10429_v16  ;;  %v266_v58 = vsub.f32 %v264_v53, %v265_v56  ;;  %v273_v59 = vsub.f32 %v271_v52, %v272_v57 }
   0xd   :  { %9331 = vmatprep.subr.bf16.mxu0 %v10439_v21 }
   0xe   :  { %v267_v60 = vand.u32 4294901760, %v266_v58  ;;  %v274_v61 = vand.u32 4294901760, %v273_v59 }
  0x10   :  { %9333 = vmatpush3.bf16.msra.mxu0 %v10439_v21 }
  0x90   :  { %v97_v22 = vpop.xlane.xlu0 %96  ;;  %v103_v23 = vpop.xlane.xlu1 %102 }
  0x91   :  { %v107_v24 = vmul.f32 0.03125, %v97_v22  ;;  %v109_v25 = vmul.f32 0.03125, %v103_v23 }
  0x93   :  { %v10443_v26 = vsub.f32 %v23_v0, %v107_v24  ;;  %v10445_v27 = vsub.f32 %v25_v1, %v109_v25  ;;  %v10477_v0 = vpack.c.bf16 %v274_v61, %v267_v60  ;;  %v280_v1 = vsub.f32 %v278_v54, %v279_v62  ;;  %v10496_v24 = vld [vmem:[%s11544_s4] sm:$0xff] }
  0x94   :  { %v100_v28 = vpop.xlane.xlu0 %99  ;;  %v106_v29 = vpop.xlane.xlu1 %105 }
  0x95   :  { %v108_v30 = vmul.f32 0.03125, %v100_v28  ;;  %v110_v31 = vmul.f32 0.03125, %v106_v29  ;;  %v115_v32 = vmul.f32 %v10443_v26, %v10443_v26  ;;  %v117_v33 = vmul.f32 %v10445_v27, %v10445_v27  ;;  %9335 = vmatprep.subr.bf16.mxu0 %v10477_v0 }
  0x96   :  { %v281_v3 = vand.u32 4294901760, %v280_v1 }
  0x97   :  { %v10451_v34 = vsub.f32 %v24_v2, %v108_v30  ;;  %v10453_v35 = vsub.f32 %v26_v5, %v110_v31  ;;  %v119_v36 = vsel %vm55_vm0, %v115_v32, 0.0  ;;  %v125_v40 = vsel %vm55_vm0, %v117_v33, 0.0 }
  0x98   :  { %120 = vadd.xlane.f32.xlu0 %v119_v36  ;;  %v58_v37 = vpop.xlane.xlu0 %57  ;;  %v61_v47 = vpop.xlane.xlu1 %60  ;;  %v287_v2 = vsub.f32 %v285_v55, %v286_v63 }
  0x99   :  { %v63_v38 = vmul.f32 0.03125, %v58_v37  ;;  %v116_v39 = vmul.f32 %v10451_v34, %v10451_v34  ;;  %v118_v41 = vmul.f32 %v10453_v35, %v10453_v35  ;;  %v64_v48 = vmul.f32 0.03125, %v61_v47 }
  0x9a   :  { %v288_v4 = vand.u32 4294901760, %v287_v2 }
  0x9b   :  { %v10461_v42 = vsub.f32 %v21_v8, %v63_v38  ;;  %v122_v43 = vsel %vm55_vm0, %v116_v39, 0.0  ;;  %v128_v44 = vsel %vm55_vm0, %v118_v41, 0.0  ;;  %v10471_v49 = vsub.f32 %v22_v9, %v64_v48 }
  0x9c   :  { %123 = vadd.xlane.f32.xlu1 %v122_v43  ;;  %126 = vadd.xlane.f32.xlu0 %v125_v40  ;;  %v10480_v5 = vpack.c.bf16 %v288_v4, %v281_v3  ;;  %v10486_v8 = vpack.c.bf16 %v272_v57, %v265_v56  ;;  %v10488_v9 = vpack.c.bf16 %v286_v63, %v279_v62 }
  0x9d   :  { %v67_v45 = vmul.f32 %v10461_v42, %v10461_v42  ;;  %v68_v50 = vmul.f32 %v10471_v49, %v10471_v49 }
  0x9f   :  { %v69_v46 = vsel %vm55_vm0, %v67_v45, 0.0  ;;  %v72_v51 = vsel %vm55_vm0, %v68_v50, 0.0 }
  0xa0   :  { %129 = vadd.xlane.f32.xlu1 %v128_v44  ;;  %70 = vadd.xlane.f32.xlu0 %v69_v46 }
  0xb1   :  { %713 = vrot.lane.b32.xlu1 %v29_v12, %s10356_s12  ;;  %v83_v12 = vlaneseq }
  0xb5   :  { %715 = vrot.lane.b32.xlu1 %v31_v17, %s10356_s12  ;;  %v10490_v17 = vshrl.u32 %v83_v12, 7 }
  0xb6   :  { %711 = vrot.lane.b32.xlu0 %v27_v14, %s10356_s12 }
  0xb7   :  { %v11546_v22 = vsub.s32 2, %v10490_v17  ;;  %v157_v29 = vsub.s32 3, %v10490_v17  ;;  %v85_v40 = vsub.s32 0, %v10490_v17  ;;  %v91_v43 = vsub.s32 1, %v10490_v17 }
  0xb9   :  { %v150_v32 = vrot.slane %v10496_v24, %v11546_v22  ;;  %v158_v38 = vrot.slane %v10496_v24, %v157_v29  ;;  %v10525_v52 = vrot.slane %v10496_v24, %v91_v43 }
  0xd9   :  { %73 = vadd.xlane.f32.xlu1 %v72_v51 }
  0xea   :  { %717 = vrot.lane.b32.xlu1 %v33_v19, %s10356_s12 }
 0x125   :  { %v121_v10 = vpop.xlane.xlu0 %120 }
 0x126   :  { %v131_v11 = vmul.f32 0.03125, %v121_v10 }
 0x128   :  { %v135_v13 = vadd.f32 1e-05, %v131_v11 }
 0x129   :  { %v124_v14 = vpop.xlane.xlu1 %123  ;;  %v127_v15 = vpop.xlane.xlu0 %126 }
 0x12a   :  { %10267 = vrsqrt.f32 %v135_v13  ;;  %v132_v47 = vmul.f32 0.03125, %v124_v14  ;;  %v133_v48 = vmul.f32 0.03125, %v127_v15 }
 0x12c   :  { %v136_v55 = vadd.f32 1e-05, %v132_v47  ;;  %v137_v57 = vadd.f32 1e-05, %v133_v48 }
 0x12d   :  { %v130_v18 = vpop.xlane.xlu1 %129  ;;  %v71_v19 = vpop.xlane.xlu0 %70 }
 0x12e   :  { %v75_v20 = vmul.f32 0.03125, %v71_v19  ;;  %v134_v56 = vmul.f32 0.03125, %v130_v18 }
 0x130   :  { %v77_v23 = vadd.f32 1e-05, %v75_v20  ;;  %v138_v61 = vadd.f32 1e-05, %v134_v56 }
 0x131   :  { %v714_v25 = vpop.permute.xlu1 %713  ;;  %v712_v28 = vpop.permute.xlu0 %711 }
 0x132   :  { %v739_v30 = vand.u32 4294901760, %v714_v25  ;;  %v736_v31 = vand.u32 4294901760, %v712_v28  ;;  %10269 = vrsqrt.f32 %v77_v23 }
 0x133   :  { %10271 = vrsqrt.f32 %v136_v55 }
 0x134   :  { %v10268_v33 = vpop.eup %10267  ;;  %v10502_v36 = vpack.c.bf16 %v739_v30, %v736_v31  ;;  %10273 = vrsqrt.f32 %v137_v57 }
 0x135   :  { %v143_v37 = vmul.f32 %v10268_v33, %v10443_v26  ;;  %v10516_v26 = vrot.slane %v10496_v24, %v85_v40  ;;  %10275 = vrsqrt.f32 %v138_v61 }
 0x136   :  { %9375 = vmatprep.subr.bf16.mxu1 %v10502_v36 }
 0x137   :  { %9377 = vmatpush3.bf16.msra.mxu1 %v10502_v36  ;;  %v151_v39 = vmul.f32 %v150_v32, %v143_v37  ;;  %v10547_v37 = vsub.f32 %v714_v25, %v739_v30 }
 0x139   :  { %v159_v41 = vadd.f32 %v158_v38, %v151_v39  ;;  %v10549_v39 = vsub.f32 %v712_v28, %v736_v31 }
 0x13b   :  { %v724_v44 = vsel %vm55_vm0, %v159_v41, 0  ;;  %v716_v41 = vpop.permute.xlu1 %715  ;;  %v847_v47 = vand.u32 4294901760, %v10549_v39 }
 0x13c   :  { %v10511_v45 = vand.u32 4294901760, %v724_v44  ;;  %v10270_v46 = vpop.eup %10269 }
 0x13d   :  { %v81_v51 = vmul.f32 %v10270_v46, %v10461_v42  ;;  %v10272_v4 = vpop.eup %10271 }
 0x13e   :  { %v10519_v50 = vsub.f32 %v724_v44, %v10511_v45  ;;  %v10274_v10 = vpop.eup %10273  ;;  %v144_v11 = vmul.f32 %v10272_v4, %v10451_v34 }
 0x13f   :  { %v87_v54 = vmul.f32 %v10516_v26, %v81_v51  ;;  %v10276_v12 = vpop.eup %10275  ;;  %v145_v13 = vmul.f32 %v10274_v10, %v10445_v27  ;;  %v742_v27 = vand.u32 4294901760, %v716_v41  ;;  %v848_v51 = vsub.f32 %v10549_v39, %v847_v47 }
 0x140   :  { %v806_v53 = vand.u32 4294901760, %v10519_v50  ;;  %v146_v14 = vmul.f32 %v10276_v12, %v10453_v35  ;;  %v152_v15 = vmul.f32 %v150_v32, %v144_v11 }
 0x141   :  { %v93_v59 = vadd.f32 %v10525_v52, %v87_v54  ;;  %v153_v18 = vmul.f32 %v150_v32, %v145_v13  ;;  %v10564_v28 = vsub.f32 %v716_v41, %v742_v27  ;;  %v849_v61 = vand.u32 4294901760, %v848_v51 }
 0x142   :  { %v807_v58 = vsub.f32 %v10519_v50, %v806_v53  ;;  %v160_v19 = vadd.f32 %v158_v38, %v152_v15  ;;  %v154_v20 = vmul.f32 %v150_v32, %v146_v14  ;;  %v854_v32 = vand.u32 4294901760, %v10547_v37 }
 0x143   :  { %v168_v42 = vsel %vm55_vm0, %v93_v59, 0  ;;  %v161_v23 = vadd.f32 %v158_v38, %v153_v18 }
 0x144   :  { %v808_v60 = vand.u32 4294901760, %v807_v58  ;;  %v10534_v62 = vand.u32 4294901760, %v168_v42  ;;  %v727_v29 = vsel %vm55_vm0, %v160_v19, 0  ;;  %v162_v33 = vadd.f32 %v158_v38, %v154_v20 }
 0x145   :  { %v730_v34 = vsel %vm55_vm0, %v161_v23, 0  ;;  %v10552_v44 = vand.u32 4294901760, %v727_v29  ;;  %v855_v48 = vsub.f32 %v10547_v37, %v854_v32  ;;  %v861_v58 = vand.u32 4294901760, %v10564_v28 }
 0x146   :  { %8380 = vmatprep.mubr.f32.mxu1 %v808_v60  ;;  %v10537_v63 = vsub.f32 %v168_v42, %v10534_v62  ;;  %v10554_v46 = vand.u32 4294901760, %v730_v34  ;;  %v733_v35 = vsel %vm55_vm0, %v162_v33, 0 }
 0x147   :  { %v10560_v38 = vsub.f32 %v727_v29, %v10552_v44  ;;  %v10562_v25 = vand.u32 4294901760, %v733_v35  ;;  %v862_v13 = vsub.f32 %v10564_v28, %v861_v58 }
 0x148   :  { %v244_v1 = vand.u32 4294901760, %v10537_v63  ;;  %v10567_v31 = vsub.f32 %v730_v34, %v10554_v46 }
 0x149   :  { %v816_v56 = vand.u32 4294901760, %v10560_v38  ;;  %v10577_v57 = vsub.f32 %v733_v35, %v10562_v25  ;;  %v863_v29 = vand.u32 4294901760, %v862_v13 }
 0x14a   :  { %v245_v2 = vsub.f32 %v10537_v63, %v244_v1  ;;  %v826_v60 = vand.u32 4294901760, %v10567_v31 }
 0x14b   :  { %v817_v10 = vsub.f32 %v10560_v38, %v816_v56  ;;  %v836_v11 = vand.u32 4294901760, %v10577_v57 }
 0x14c   :  { %v246_v3 = vand.u32 4294901760, %v245_v2  ;;  %v856_v2 = vand.u32 4294901760, %v855_v48  ;;  %v827_v12 = vsub.f32 %v10567_v31, %v826_v60 }
 0x14d   :  { %v818_v19 = vand.u32 4294901760, %v817_v10  ;;  %v837_v20 = vsub.f32 %v10577_v57, %v836_v11 }
 0x14e   :  { %8314 = vmatprep.mubr.f32.mxu0 %v246_v3  ;;  %v9382_v15 = vpack.c.bf16 %v856_v2, %v849_v61  ;;  %v828_v23 = vand.u32 4294901760, %v827_v12  ;;  %v9406_v61 = vpack.c.bf16 %v854_v32, %v847_v47 }
 0x14f   :  { %v838_v34 = vand.u32 4294901760, %v837_v20 }
 0x166   :  { %v74_v30 = vpop.xlane.xlu1 %73 }
 0x167   :  { %v76_v54 = vmul.f32 0.03125, %v74_v30  ;;  %v9390_v30 = vpack.c.bf16 %v10547_v37, %v10549_v39 }
 0x169   :  { %v78_v55 = vadd.f32 1e-05, %v76_v54 }
 0x16a   :  { %v718_v59 = vpop.permute.xlu1 %717 }
 0x16b   :  { %10277 = vrsqrt.f32 %v78_v55  ;;  %v745_v42 = vand.u32 4294901760, %v718_v59 }
 0x16d   :  { %v10581_v3 = vpack.c.bf16 %v745_v42, %v742_v27  ;;  %v867_v4 = vsub.f32 %v718_v59, %v745_v42 }
 0x16f   :  { %v868_v14 = vand.u32 4294901760, %v867_v4  ;;  %9379 = vmatprep.subr.bf16.mxu1 %v10581_v3  ;;  %v9394_v54 = vpack.c.bf16 %v867_v4, %v10564_v28 }
 0x170   :  { %9381 = vmatpush3.bf16.msra.mxu1 %v10581_v3 }
 0x171   :  { %v869_v18 = vsub.f32 %v867_v4, %v868_v14  ;;  %9383 = vmatprep.subr.bf16.mxu1 %v9382_v15 }
 0x173   :  { %8381 = vmatmul.mubr.f32.vlgmr.msra.gmra.mrb[0].mxu1 %v818_v19  ;;  %v870_v33 = vand.u32 4294901760, %v869_v18 }
 0x174   :  { %8383 = vmatprep.mubr.f32.mxu1 %v828_v23  ;;  %9385 = vmatpush3.bf16.msra.mxu1 %v9382_v15 }
 0x175   :  { %v10278_v41 = vpop.eup %10277  ;;  %v9386_v27 = vpack.c.bf16 %v870_v33, %v863_v29 }
 0x176   :  { %v82_v35 = vmul.f32 %v10278_v41, %v10471_v49 }
 0x177   :  { %8384 = vmatmul.mubr.f32.gmra.mrb[2].mxu1 %v838_v34  ;;  %9387 = vmatprep.subr.bf16.mxu1 %v9386_v27 }
 0x178   :  { %9389 = vmatpush3.bf16.msra.mxu1 %v9386_v27  ;;  %8394 = vmatprep.mubr.f32.mxu1 %v10511_v45  ;;  %v88_v48 = vmul.f32 %v10516_v26, %v82_v35 }
 0x179   :  { %9391 = vmatprep.subr.bf16.mxu1 %v9390_v30 }
 0x17a   :  { %v94_v51 = vadd.f32 %v10525_v52, %v88_v48 }
 0x17b   :  { %8395 = vmatmul.mubr.f32.vlgmr.msra.gmra.mrb[0].mxu1 %v10552_v44 }
 0x17c   :  { %8397 = vmatprep.mubr.f32.mxu1 %v10554_v46  ;;  %9393 = vmatpush3.bf16.msra.mxu1 %v9390_v30  ;;  %v171_v49 = vsel %vm55_vm0, %v94_v51, 0 }
 0x17d   :  { %9395 = vmatprep.subr.bf16.mxu1 %v9394_v54  ;;  %v10608_v55 = vand.u32 4294901760, %v171_v49 }
 0x17f   :  { %8398 = vmatmul.mubr.f32.gmra.mrb[2].mxu1 %v10562_v25  ;;  %v253_v59 = vsub.f32 %v171_v49, %v10608_v55 }
 0x180   :  { %9397 = vmatpush3.bf16.msra.mxu1 %v9394_v54  ;;  %8408 = vmatprep.mubr.f32.mxu1 %v10519_v50 }
 0x181   :  { %9399 = vmatprep.subr.bf16.mxu1 %v10502_v36  ;;  %v254_v26 = vand.u32 4294901760, %v253_v59 }
 0x183   :  { %8409 = vmatmul.mubr.f32.vlgmr.msra.gmra.mrb[0].mxu1 %v10560_v38  ;;  %v255_v52 = vsub.f32 %v253_v59, %v254_v26 }
 0x184   :  { %8411 = vmatprep.mubr.f32.mxu1 %v10567_v31  ;;  %9401 = vmatpush3.bf16.msra.mxu1 %v10502_v36 }
 0x185   :  { %9403 = vmatprep.subr.bf16.mxu1 %v10581_v3  ;;  %v256_v42 = vand.u32 4294901760, %v255_v52 }
 0x187   :  { %8315 = vmatmul.mubr.f32.vlgmr.msra.gmra.mrb[0].mxu0 %v256_v42  ;;  %8412 = vmatmul.mubr.f32.gmra.mrb[2].mxu1 %v10577_v57 }
 0x188   :  { %9337 = vmatpush3.bf16.msra.mxu0 %v10477_v0  ;;  %8325 = vmatprep.mubr.f32.mxu0 %v10534_v62  ;;  %v9410_v0 = vpack.c.bf16 %v868_v14, %v861_v58 }
 0x189   :  { %9405 = vmatpush3.bf16.msra.mxu1 %v10581_v3  ;;  %8422 = vmatprep.mubr.f32.mxu1 %v806_v53 }
 0x18a   :  { %9407 = vmatprep.subr.bf16.mxu1 %v9406_v61  ;;  %9339 = vmatprep.subr.bf16.mxu0 %v10480_v5 }
 0x18c   :  { %8423 = vmatmul.mubr.f32.vlgmr.msra.gmra.mrb[0].mxu1 %v816_v56  ;;  %9341 = vmatpush3.bf16.msra.mxu0 %v10480_v5  ;;  %v705_v5 = vsub.s32 7, %v10490_v17 }
 0x18d   :  { %8425 = vmatprep.mubr.f32.mxu1 %v826_v60  ;;  %9409 = vmatpush3.bf16.msra.mxu1 %v9406_v61  ;;  %v165_v60 = vsub.s32 6, %v10490_v17 }
 0x18e   :  { %9411 = vmatprep.subr.bf16.mxu1 %v9410_v0  ;;  %9343 = vmatprep.subr.bf16.mxu0 %v10482_v6 }
 0x18f   :  { %8326 = vmatmul.mubr.f32.vlgmr.msra.gmra.mrb[0].mxu0 %v10608_v55  ;;  %v166_v12 = vrot.slane %v10496_v24, %v165_v60 }
 0x190   :  { %8426 = vmatmul.mubr.f32.gmra.mrb[2].mxu1 %v836_v11  ;;  %9345 = vmatpush3.bf16.msra.mxu0 %v10482_v6  ;;  %v706_v6 = vrot.slane %v10496_v24, %v705_v5 }
 0x191   :  { %8336 = vmatprep.mubr.f32.mxu0 %v10537_v63  ;;  %9413 = vmatpush3.bf16.msra.mxu1 %v9410_v0 }
 0x192   :  { %8436 = vmatprep.mubr.f32.mxu1 %v10511_v45  ;;  %9415 = vmatprep.subr.bf16.mxu1 %v10502_v36 }
 0x193   :  { %9347 = vmatprep.subr.bf16.mxu0 %v10484_v7 }
 0x194   :  { %8437 = vmatmul.mubr.f32.vlgmr.msra.gmra.mrb[0].mxu1 %v10552_v44  ;;  %9349 = vmatpush3.bf16.msra.mxu0 %v10484_v7 }
 0x195   :  { %8439 = vmatprep.mubr.f32.mxu1 %v10554_v46  ;;  %9417 = vmatpush3.bf16.msra.mxu1 %v10502_v36 }
 0x196   :  { %9419 = vmatprep.subr.bf16.mxu1 %v10581_v3  ;;  %9351 = vmatprep.subr.bf16.mxu0 %v10429_v16 }
 0x197   :  { %8337 = vmatmul.mubr.f32.vlgmr.msra.gmra.mrb[0].mxu0 %v253_v59 }
 0x198   :  { %8440 = vmatmul.mubr.f32.gmra.mrb[2].mxu1 %v10562_v25  ;;  %9353 = vmatpush3.bf16.msra.mxu0 %v10429_v16 }
 0x199   :  { %8347 = vmatprep.mubr.f32.mxu0 %v244_v1  ;;  %9421 = vmatpush3.bf16.msra.mxu1 %v10581_v3 }
 0x19a   :  { %8450 = vmatprep.mubr.f32.mxu1 %v10511_v45  ;;  %9355 = vmatprep.subr.bf16.mxu0 %v10439_v21 }
 0x19c   :  { %8451 = vmatmul.mubr.f32.vlgmr.msra.gmra.mrb[0].mxu1 %v10552_v44  ;;  %9357 = vmatpush3.bf16.msra.mxu0 %v10439_v21 }
 0x19d   :  { %8453 = vmatprep.mubr.f32.mxu1 %v10554_v46  ;;  %9359 = vmatprep.subr.bf16.mxu0 %v10486_v8 }
 0x19f   :  { %8348 = vmatmul.mubr.f32.vlgmr.msra.gmra.mrb[0].mxu0 %v254_v26 }
 0x1a0   :  { %8454 = vmatmul.mubr.f32.gmra.mrb[2].mxu1 %v10562_v25  ;;  %9361 = vmatpush3.bf16.msra.mxu0 %v10486_v8 }
 0x1a1   :  { %8358 = vmatprep.mubr.f32.mxu0 %v10534_v62  ;;  %9363 = vmatprep.subr.bf16.mxu0 %v10488_v9 }
 0x1a4   :  { %9365 = vmatpush3.bf16.msra.mxu0 %v10488_v9 }
 0x1a5   :  { %9367 = vmatprep.subr.bf16.mxu0 %v10429_v16 }
 0x1a7   :  { %8359 = vmatmul.mubr.f32.vlgmr.msra.gmra.mrb[0].mxu0 %v10608_v55 }
 0x1a8   :  { %9369 = vmatpush3.bf16.msra.mxu0 %v10429_v16  ;;  %8369 = vmatprep.mubr.f32.mxu0 %v10534_v62 }
 0x1a9   :  { %9371 = vmatprep.subr.bf16.mxu0 %v10439_v21 }
 0x1ac   :  { %9373 = vmatpush3.bf16.msra.mxu0 %v10439_v21 }
 0x1af   :  { %8370 = vmatmul.mubr.f32.vlgmr.msra.gmra.mrb[0].mxu0 %v10608_v55 }
 0x26f   :  { %v8452_v7 = vpop.f32.mrb[0].mxu1 }
 0x270   :  { %v10676_v8 = vadd.f32 %v8452_v7, %v706_v6  ;;  %v1327_v9 = vpop.f32.mrb[1].mxu1 }
 0x271   :  { %v10678_v36 = vadd.f32 %v1327_v9, %v706_v6 }
 0x272   :  { %v10681_v16 = vmul.f32 0.59460354, %v10676_v8 }
 0x273   :  { %v10684_v45 = vmul.f32 0.59460354, %v10678_v36  ;;  %v8455_v21 = vpop.f32.mrb[2].mxu1 }
 0x274   :  { %v10686_v50 = vadd.f32 %v8455_v21, %v706_v6  ;;  %v1339_v53 = vpop.f32.mrb[3].mxu1  ;;  %v1364_v62 = vsel %vm1353_vm1, %v10681_v16, 0 }
 0x275   :  { %v10690_v63 = vadd.f32 %v1339_v53, %v706_v6  ;;  %v1361_v1 = vsel %vm1353_vm1, %v10684_v45, 0  ;;  %v1376_v37 = vand.u32 4294901760, %v1364_v62 }
 0x276   :  { %v10695_v39 = vmul.f32 0.59460354, %v10686_v50  ;;  %v1373_v44 = vand.u32 4294901760, %v1361_v1 }
 0x277   :  { %v10698_v46 = vmul.f32 0.59460354, %v10690_v63  ;;  %v10700_v32 = vsub.f32 %v1364_v62, %v1376_v37  ;;  %v10743_v62 = vld [vmem:[%s11544_s4 + $0x18] sm:$0xff] }
 0x278   :  { %v10702_v47 = vpack.c.bf16 %v1376_v37, %v1373_v44  ;;  %v1370_v38 = vsel %vm1353_vm1, %v10695_v39, 0  ;;  %v10706_v25 = vsub.f32 %v1361_v1, %v1373_v44  ;;  %v10748_v1 = vld [vmem:[%s11544_s4 + $0x10] sm:$0xff] }
 0x279   :  { %v1367_v28 = vsel %vm1353_vm1, %v10698_v46, 0  ;;  %v1382_v31 = vand.u32 4294901760, %v1370_v38  ;;  %v1471_v56 = vand.u32 4294901760, %v10700_v32 }
 0x27a   :  { %9423 = vmatprep.subr.bf16.mxu0 %v10702_v47  ;;  %v1379_v57 = vand.u32 4294901760, %v1367_v28  ;;  %v1464_v58 = vand.u32 4294901760, %v10706_v25  ;;  %v9438_v7 = vpack.c.bf16 %v10700_v32, %v10706_v25 }
 0x27b   :  { %9425 = vmatpush3.bf16.xpose.msra.mxu0 %v10702_v47  ;;  %v1472_v2 = vsub.f32 %v10700_v32, %v1471_v56  ;;  %v1484_v23 = vsub.f32 %v1370_v38, %v1382_v31 }
 0x27c   :  { %v10716_v3 = vpack.c.bf16 %v1382_v31, %v1379_v57  ;;  %v1465_v4 = vsub.f32 %v10706_v25, %v1464_v58  ;;  %v1477_v20 = vsub.f32 %v1367_v28, %v1379_v57  ;;  %v9454_v21 = vpack.c.bf16 %v1471_v56, %v1464_v58 }
 0x27d   :  { %v1473_v11 = vand.u32 4294901760, %v1472_v2  ;;  %v1485_v35 = vand.u32 4294901760, %v1484_v23 }
 0x27e   :  { %9427 = vmatprep.subr.bf16.mxu0 %v10716_v3  ;;  %v1466_v10 = vand.u32 4294901760, %v1465_v4  ;;  %v1478_v27 = vand.u32 4294901760, %v1477_v20  ;;  %v9442_v9 = vpack.c.bf16 %v1484_v23, %v1477_v20 }
 0x27f   :  { %v1486_v55 = vsub.f32 %v1484_v23, %v1485_v35 }
 0x280   :  { %v9430_v14 = vpack.c.bf16 %v1473_v11, %v1466_v10  ;;  %v1479_v49 = vsub.f32 %v1477_v20, %v1478_v27  ;;  %v9458_v53 = vpack.c.bf16 %v1485_v35, %v1478_v27 }
 0x281   :  { %v1487_v61 = vand.u32 4294901760, %v1486_v55 }
 0x282   :  { %v8371_v13 = vpop.f32.mrb[0].mxu0  ;;  %v1480_v42 = vand.u32 4294901760, %v1479_v49 }
 0x283   :  { %v10094_v15 = vadd.f32 %v8371_v13, %v166_v12  ;;  %9429 = vmatpush3.bf16.xpose.msra.mxu0 %v10716_v3  ;;  %v691_v18 = vpop.f32.mrb[1].mxu0 }
 0x284   :  { %v10095_v19 = vadd.f32 %v691_v18, %v166_v12  ;;  %9431 = vmatprep.subr.bf16.mxu0 %v9430_v14  ;;  %v9434_v6 = vpack.c.bf16 %v1487_v61, %v1480_v42 }
 0x285   :  { %v10722_v29 = vmul.f32 0.59460354, %v10094_v15 }
 0x286   :  { %v10724_v33 = vmul.f32 0.59460354, %v10095_v19 }
 0x287   :  { %v1358_v41 = vsel %vm1353_vm1, %v10722_v29, 0 }
 0x288   :  { %v1451_v34 = vand.u32 4294901760, %v1358_v41  ;;  %v1355_v24 = vsel %vm1353_vm1, %v10724_v33, 0 }
 0x289   :  { %v1441_v30 = vand.u32 4294901760, %v1355_v24 }
 0x28a   :  { %v1452_v48 = vsub.f32 %v1358_v41, %v1451_v34 }
 0x28b   :  { %v1442_v51 = vsub.f32 %v1355_v24, %v1441_v30 }
 0x28c   :  { %v1453_v54 = vand.u32 4294901760, %v1452_v48 }
 0x28d   :  { %v1443_v59 = vand.u32 4294901760, %v1442_v51 }
 0x28e   :  { %v1454_v26 = vsub.f32 %v1452_v48, %v1453_v54 }
 0x28f   :  { %v1444_v52 = vsub.f32 %v1442_v51, %v1443_v59 }
 0x290   :  { %v1455_v5 = vand.u32 4294901760, %v1454_v26 }
 0x291   :  { %v1445_v0 = vand.u32 4294901760, %v1444_v52 }
 0x293   :  { %8464 = vmatprep.mubr.f32.mxu0 %v1445_v0 }
 0x294   :  { %8465 = vmatmul.mubr.f32.vlgmr.msra.gmra.mrb[2].mxu0 %v1455_v5 }
 0x295   :  { %9433 = vmatpush3.bf16.xpose.msra.mxu0 %v9430_v14  ;;  %8475 = vmatprep.mubr.f32.mxu0 %v1441_v30 }
 0x296   :  { %9435 = vmatprep.subr.bf16.mxu0 %v9434_v6 }
 0x29d   :  { %9437 = vmatpush3.bf16.xpose.msra.mxu0 %v9434_v6 }
 0x29e   :  { %9439 = vmatprep.subr.bf16.mxu0 %v9438_v7 }
 0x2a4   :  { %8476 = vmatmul.mubr.f32.vlgmr.msra.gmra.mrb[2].mxu0 %v1451_v34 }
 0x2a5   :  { %9441 = vmatpush3.bf16.xpose.msra.mxu0 %v9438_v7  ;;  %8486 = vmatprep.mubr.f32.mxu0 %v1442_v51 }
 0x2a6   :  { %9443 = vmatprep.subr.bf16.mxu0 %v9442_v9 }
 0x2ad   :  { %9445 = vmatpush3.bf16.xpose.msra.mxu0 %v9442_v9 }
 0x2ae   :  { %9447 = vmatprep.subr.bf16.mxu0 %v10702_v47 }
 0x2b4   :  { %8487 = vmatmul.mubr.f32.vlgmr.msra.gmra.mrb[2].mxu0 %v1452_v48 }
 0x2b5   :  { %9449 = vmatpush3.bf16.xpose.msra.mxu0 %v10702_v47  ;;  %8497 = vmatprep.mubr.f32.mxu0 %v1443_v59 }
 0x2b6   :  { %9451 = vmatprep.subr.bf16.mxu0 %v10716_v3 }
 0x2bd   :  { %9453 = vmatpush3.bf16.xpose.msra.mxu0 %v10716_v3 }
 0x2be   :  { %9455 = vmatprep.subr.bf16.mxu0 %v9454_v21 }
 0x2c4   :  { %8498 = vmatmul.mubr.f32.vlgmr.msra.gmra.mrb[2].mxu0 %v1453_v54 }
 0x2c5   :  { %9457 = vmatpush3.bf16.xpose.msra.mxu0 %v9454_v21  ;;  %8508 = vmatprep.mubr.f32.mxu0 %v1441_v30 }
 0x2c6   :  { %9459 = vmatprep.subr.bf16.mxu0 %v9458_v53 }
 0x2cd   :  { %9461 = vmatpush3.bf16.xpose.msra.mxu0 %v9458_v53 }
 0x2ce   :  { %9463 = vmatprep.subr.bf16.mxu0 %v10702_v47 }
 0x2d4   :  { %8509 = vmatmul.mubr.f32.vlgmr.msra.gmra.mrb[2].mxu0 %v1451_v34 }
 0x2d5   :  { %9465 = vmatpush3.bf16.xpose.msra.mxu0 %v10702_v47  ;;  %8519 = vmatprep.mubr.f32.mxu0 %v1441_v30 }
 0x2d6   :  { %9467 = vmatprep.subr.bf16.mxu0 %v10716_v3 }
 0x2dd   :  { %9469 = vmatpush3.bf16.xpose.msra.mxu0 %v10716_v3 }
 0x2e4   :  { %8520 = vmatmul.mubr.f32.vlgmr.msra.gmra.mrb[2].mxu0 %v1451_v34 }
 0x3b7   :  { %v8521_v37 = vpop.f32.mrb[2].mxu0 }
 0x3b8   :  { %v10100_v44 = vadd.f32 %v8521_v37, %v10743_v62  ;;  %v1890_v32 = vpop.f32.mrb[3].mxu0 }
 0x3b9   :  { %v10101_v47 = vadd.f32 %v1890_v32, %v10748_v1 }
 0x3ba   :  { %v1903_v38 = vsel %vm55_vm0, %v10100_v44, -inf }
 0x3bb   :  { %1904 = vmax.xlane.f32.xlu1 %v1903_v38  ;;  %v1900_v25 = vsel %vm55_vm0, %v10101_v47, -inf }
 0x3bc   :  { %1901 = vmax.xlane.f32.xlu0 %v1900_v25 }
 0x3cc   :  { %1928 = vrot.lane.b32.xlu1 %v10676_v8, %s10357_s19 }
 0x3d0   :  { %1930 = vrot.lane.b32.xlu1 %v10690_v63, %s10357_s19 }
 0x3d4   :  { %1932 = vrot.lane.b32.xlu1 %v10686_v50, %s10357_s19 }
 0x3d8   :  { %2478 = vrot.lane.b32.xlu1 %v10681_v16, %s10358_s20 }
 0x3dc   :  { %2482 = vrot.lane.b32.xlu1 %v10695_v39, %s10358_s20 }
 0x3e0   :  { %2474 = vrot.lane.b32.xlu1 %v10722_v29, %s10357_s19 }
 0x448   :  { %v1905_v28 = vpop.xlane.xlu1 %1904 }
 0x449   :  { %v1907_v31 = vsub.f32 %v10100_v44, %v1905_v28  ;;  %v1902_v56 = vpop.xlane.xlu0 %1901 }
 0x44a   :  { %v1906_v57 = vsub.f32 %v10101_v47, %v1902_v56 }
 0x44b   :  { %v1910_v58 = vmul.f32 1.442695, %v1907_v31 }
 0x44c   :  { %v1908_v60 = vmul.f32 1.442695, %v1906_v57  ;;  %v1929_v11 = vpop.permute.xlu1 %1928 }
 0x44d   :  { %10279 = vpow2.f32 %v1910_v58  ;;  %v1948_v14 = vand.u32 4294901760, %v1929_v11 }
 0x44e   :  { %10281 = vpow2.f32 %v1908_v60 }
 0x44f   :  { %v10770_v18 = vsub.f32 %v1929_v11, %v1948_v14 }
 0x450   :  { %v1931_v12 = vpop.permute.xlu1 %1930 }
 0x451   :  { %v2043_v23 = vand.u32 4294901760, %v10770_v18  ;;  %v1951_v27 = vand.u32 4294901760, %v1931_v12 }
 0x453   :  { %v2044_v51 = vsub.f32 %v10770_v18, %v2043_v23  ;;  %v2049_v61 = vsub.f32 %v1931_v12, %v1951_v27 }
 0x454   :  { %v1933_v19 = vpop.permute.xlu1 %1932 }
 0x455   :  { %v1954_v41 = vand.u32 4294901760, %v1933_v19  ;;  %v2045_v7 = vand.u32 4294901760, %v2044_v51  ;;  %v2050_v44 = vand.u32 4294901760, %v2049_v61 }
 0x457   :  { %v10280_v2 = vpop.eup %10279  ;;  %v10778_v54 = vpack.c.bf16 %v1954_v41, %v1951_v27  ;;  %v2056_v55 = vsub.f32 %v1933_v19, %v1954_v41  ;;  %v2051_v28 = vsub.f32 %v2049_v61, %v2050_v44 }
 0x458   :  { %v1915_v3 = vsel %vm55_vm0, %v10280_v2, 0.0  ;;  %v10282_v4 = vpop.eup %10281  ;;  %v2479_v41 = vpop.permute.xlu1 %2478 }
 0x459   :  { %1916 = vadd.xlane.f32.xlu0 %v1915_v3  ;;  %v1912_v10 = vsel %vm55_vm0, %v10282_v4, 0.0  ;;  %v2057_v9 = vand.u32 4294901760, %v2056_v55  ;;  %v9490_v11 = vpack.c.bf16 %v2056_v55, %v2049_v61 }
 0x45b   :  { %v2058_v38 = vsub.f32 %v2056_v55, %v2057_v9 }
 0x45d   :  { %1913 = vadd.xlane.f32.xlu0 %v1912_v10  ;;  %v2059_v57 = vand.u32 4294901760, %v2058_v38 }
 0x473   :  { %1926 = vrot.lane.b32.xlu0 %v10678_v36, %s10357_s19 }
 0x477   :  { %2476 = vrot.lane.b32.xlu0 %v10684_v45, %s10358_s20 }
 0x47b   :  { %2480 = vrot.lane.b32.xlu0 %v10698_v46, %s10358_s20 }
 0x47f   :  { %2472 = vrot.lane.b32.xlu0 %v10724_v33, %s10357_s19 }
 0x4e6   :  { %v1917_v13 = vpop.xlane.xlu0 %1916 }
 0x4e7   :  { %10283 = vrcp.f32 %v1917_v13 }
 0x4ea   :  { %v1914_v15 = vpop.xlane.xlu0 %1913 }
 0x4eb   :  { %10285 = vrcp.f32 %v1914_v15 }
 0x4ee   :  { %v1927_v20 = vpop.permute.xlu0 %1926 }
 0x4ef   :  { %v1945_v34 = vand.u32 4294901760, %v1927_v20 }
 0x4f1   :  { %v10284_v24 = vpop.eup %10283  ;;  %v10773_v35 = vpack.c.bf16 %v1948_v14, %v1945_v34  ;;  %v2035_v30 = vsub.f32 %v1927_v20, %v1945_v34  ;;  %v9506_v20 = vpack.c.bf16 %v2057_v9, %v2050_v44 }
 0x4f2   :  { %v1921_v48 = vmul.f32 %v10284_v24, %v10280_v2  ;;  %v2052_v2 = vand.u32 4294901760, %v2051_v28  ;;  %v2477_v10 = vpop.permute.xlu0 %2476 }
 0x4f3   :  { %v2036_v49 = vand.u32 4294901760, %v2035_v30  ;;  %9471 = vmatprep.subr.bf16.mxu1 %v10773_v35  ;;  %v2488_v24 = vsel %vm1353_vm1, %v2477_v10, 0 }
 0x4f4   :  { %v1942_v59 = vsel %vm55_vm0, %v1921_v48, 0  ;;  %9473 = vmatpush3.bf16.msra.mxu1 %v10773_v35  ;;  %v9482_v3 = vpack.c.bf16 %v2059_v57, %v2052_v2 }
 0x4f5   :  { %v10286_v26 = vpop.eup %10285  ;;  %v10783_v52 = vand.u32 4294901760, %v1942_v59  ;;  %v2037_v42 = vsub.f32 %v2035_v30, %v2036_v49  ;;  %9475 = vmatprep.subr.bf16.mxu1 %v10778_v54  ;;  %v9502_v15 = vpack.c.bf16 %v2043_v23, %v2036_v49  ;;  %v2483_v23 = vpop.permute.xlu1 %2482 }
 0x4f6   :  { %v1919_v0 = vmul.f32 %v10286_v26, %v10282_v4  ;;  %v9486_v4 = vpack.c.bf16 %v10770_v18, %v2035_v30  ;;  %v2481_v12 = vpop.permute.xlu0 %2480  ;;  %v2490_v18 = vsel %vm1353_vm1, %v2479_v41, 0  ;;  %v2497_v30 = vand.u32 4294901760, %v2488_v24 }
 0x4f7   :  { %v2024_v5 = vsub.f32 %v1942_v59, %v10783_v52  ;;  %v2038_v6 = vand.u32 4294901760, %v2037_v42  ;;  %v2500_v48 = vand.u32 4294901760, %v2490_v18  ;;  %v2492_v26 = vsel %vm1353_vm1, %v2481_v12, 0 }
 0x4f8   :  { %9477 = vmatpush3.bf16.msra.mxu1 %v10778_v54  ;;  %v1939_v21 = vsel %vm55_vm0, %v1919_v0, 0  ;;  %v2587_v59 = vsub.f32 %v2488_v24, %v2497_v30  ;;  %v2494_v61 = vsel %vm1353_vm1, %v2483_v23, 0 }
 0x4f9   :  { %v9478_v53 = vpack.c.bf16 %v2045_v7, %v2038_v6  ;;  %v2013_v37 = vand.u32 4294901760, %v1939_v21  ;;  %v2025_v32 = vand.u32 4294901760, %v2024_v5  ;;  %v10813_v49 = vpack.c.bf16 %v2500_v48, %v2497_v30  ;;  %v2475_v55 = vpop.permute.xlu1 %2474 }
 0x4fa   :  { %v2473_v13 = vpop.permute.xlu0 %2472  ;;  %v2594_v42 = vsub.f32 %v2490_v18, %v2500_v48  ;;  %v2486_v0 = vsel %vm1353_vm1, %v2475_v55, 0  ;;  %v2503_v6 = vand.u32 4294901760, %v2492_v26  ;;  %v2506_v9 = vand.u32 4294901760, %v2494_v61 }
 0x4fb   :  { %9479 = vmatprep.subr.bf16.mxu1 %v9478_v53  ;;  %v2014_v47 = vsub.f32 %v1939_v21, %v2013_v37  ;;  %v2026_v31 = vsub.f32 %v2024_v5, %v2025_v32  ;;  %v2484_v14 = vsel %vm1353_vm1, %v2473_v13, 0  ;;  %v2575_v21 = vand.u32 4294901760, %v2486_v0 }
 0x4fc   :  { %v10798_v19 = vand.u32 4294901760, %v2484_v14  ;;  %v2595_v7 = vand.u32 4294901760, %v2594_v42 }
 0x4fd   :  { %v2015_v25 = vand.u32 4294901760, %v2014_v47  ;;  %v2027_v60 = vand.u32 4294901760, %v2026_v31 }
 0x4fe   :  { %v10801_v34 = vsub.f32 %v2484_v14, %v10798_v19  ;;  %v2596_v44 = vsub.f32 %v2594_v42, %v2595_v7 }
 0x4ff   :  { %v2016_v56 = vsub.f32 %v2014_v47, %v2015_v25 }
 0x500   :  { %v2567_v27 = vand.u32 4294901760, %v10801_v34 }
 0x501   :  { %v2017_v58 = vand.u32 4294901760, %v2016_v56 }
 0x502   :  { %v2568_v51 = vsub.f32 %v10801_v34, %v2567_v27 }
 0x503   :  { %8530 = vmatprep.mubr.f32.mxu1 %v2017_v58 }
 0x504   :  { %8531 = vmatmul.mubr.f32.vlgmr.msra.gmra.mrb[4].mxu1 %v2027_v60 }
 0x505   :  { %9481 = vmatpush3.bf16.msra.mxu1 %v9478_v53  ;;  %8541 = vmatprep.mubr.f32.mxu1 %v2013_v37 }
 0x506   :  { %9483 = vmatprep.subr.bf16.mxu1 %v9482_v3 }
 0x509   :  { %9485 = vmatpush3.bf16.msra.mxu1 %v9482_v3 }
 0x50a   :  { %9487 = vmatprep.subr.bf16.mxu1 %v9486_v4 }
 0x50c   :  { %8542 = vmatmul.mubr.f32.vlgmr.msra.gmra.mrb[4].mxu1 %v10783_v52 }
 0x50d   :  { %9489 = vmatpush3.bf16.msra.mxu1 %v9486_v4  ;;  %8552 = vmatprep.mubr.f32.mxu1 %v2014_v47  ;;  %v2576_v47 = vsub.f32 %v2486_v0, %v2575_v21 }
 0x50e   :  { %9491 = vmatprep.subr.bf16.mxu1 %v9490_v11 }
 0x50f   :  { %v2577_v31 = vand.u32 4294901760, %v2576_v47 }
 0x511   :  { %9493 = vmatpush3.bf16.msra.mxu1 %v9490_v11  ;;  %v2578_v60 = vsub.f32 %v2576_v47, %v2577_v31  ;;  %v9534_v11 = vpack.c.bf16 %v2594_v42, %v2587_v59 }
 0x512   :  { %9495 = vmatprep.subr.bf16.mxu1 %v10773_v35 }
 0x513   :  { %v2579_v3 = vand.u32 4294901760, %v2578_v60 }
 0x514   :  { %8553 = vmatmul.mubr.f32.vlgmr.msra.gmra.mrb[4].mxu1 %v2024_v5  ;;  %v2588_v5 = vand.u32 4294901760, %v2587_v59 }
 0x515   :  { %9497 = vmatpush3.bf16.msra.mxu1 %v10773_v35  ;;  %8563 = vmatprep.mubr.f32.mxu1 %v2015_v25 }
 0x516   :  { %9499 = vmatprep.subr.bf16.mxu1 %v10778_v54  ;;  %v2589_v53 = vsub.f32 %v2587_v59, %v2588_v5  ;;  %v9550_v13 = vpack.c.bf16 %v2595_v7, %v2588_v5 }
 0x518   :  { %v2590_v25 = vand.u32 4294901760, %v2589_v53 }
 0x519   :  { %9501 = vmatpush3.bf16.msra.mxu1 %v10778_v54 }
 0x51a   :  { %9503 = vmatprep.subr.bf16.mxu1 %v9502_v15 }
 0x51c   :  { %8564 = vmatmul.mubr.f32.vlgmr.msra.gmra.mrb[4].mxu1 %v2025_v32  ;;  %v2608_v32 = vsub.f32 %v2494_v61, %v2506_v9 }
 0x51d   :  { %9505 = vmatpush3.bf16.msra.mxu1 %v9502_v15  ;;  %8574 = vmatprep.mubr.f32.mxu1 %v2013_v37 }
 0x51e   :  { %9507 = vmatprep.subr.bf16.mxu1 %v9506_v20  ;;  %v2609_v28 = vand.u32 4294901760, %v2608_v32 }
 0x520   :  { %v2610_v58 = vsub.f32 %v2608_v32, %v2609_v28 }
 0x521   :  { %9509 = vmatpush3.bf16.msra.mxu1 %v9506_v20 }
 0x522   :  { %9511 = vmatprep.subr.bf16.mxu1 %v10773_v35  ;;  %v2611_v4 = vand.u32 4294901760, %v2610_v58 }
 0x524   :  { %8575 = vmatmul.mubr.f32.vlgmr.msra.gmra.mrb[4].mxu1 %v10783_v52 }
 0x525   :  { %9513 = vmatpush3.bf16.msra.mxu1 %v10773_v35  ;;  %8585 = vmatprep.mubr.f32.mxu1 %v2013_v37  ;;  %v2569_v35 = vand.u32 4294901760, %v2568_v51  ;;  %v2601_v37 = vsub.f32 %v2492_v26, %v2503_v6 }
 0x526   :  { %9515 = vmatprep.subr.bf16.mxu1 %v10778_v54 }
 0x527   :  { %v2602_v38 = vand.u32 4294901760, %v2601_v37  ;;  %v9538_v12 = vpack.c.bf16 %v2608_v32, %v2601_v37 }
 0x529   :  { %9517 = vmatpush3.bf16.msra.mxu1 %v10778_v54  ;;  %v9522_v54 = vpack.c.bf16 %v2506_v9, %v2503_v6  ;;  %v2603_v56 = vsub.f32 %v2601_v37, %v2602_v38  ;;  %v9554_v14 = vpack.c.bf16 %v2609_v28, %v2602_v38 }
 0x52a   :  { %9519 = vmatprep.subr.bf16.mxu1 %v10813_v49 }
 0x52b   :  { %v2604_v2 = vand.u32 4294901760, %v2603_v56 }
 0x52c   :  { %8586 = vmatmul.mubr.f32.vlgmr.msra.gmra.mrb[4].mxu1 %v10783_v52  ;;  %v2597_v52 = vand.u32 4294901760, %v2596_v44 }
 0x52d   :  { %8596 = vmatprep.mubr.f32.mxu1 %v2569_v35  ;;  %v9530_v10 = vpack.c.bf16 %v2611_v4, %v2604_v2 }
 0x52e   :  { %v9526_v57 = vpack.c.bf16 %v2597_v52, %v2590_v25 }
 0x532   :  { %9521 = vmatpush3.bf16.xpose.msra.mxu1 %v10813_v49 }
 0x533   :  { %9523 = vmatprep.subr.bf16.mxu1 %v9522_v54 }
 0x53a   :  { %9525 = vmatpush3.bf16.xpose.msra.mxu1 %v9522_v54 }
 0x53b   :  { %9527 = vmatprep.subr.bf16.mxu1 %v9526_v57 }
 0x541   :  { %8597 = vmatmul.mubr.f32.vlgmr.msra.gmra.mrb[6].mxu1 %v2579_v3 }
 0x542   :  { %9529 = vmatpush3.bf16.xpose.msra.mxu1 %v9526_v57  ;;  %8607 = vmatprep.mubr.f32.mxu1 %v10798_v19 }
 0x543   :  { %9531 = vmatprep.subr.bf16.mxu1 %v9530_v10 }
 0x54a   :  { %9533 = vmatpush3.bf16.xpose.msra.mxu1 %v9530_v10 }
 0x54b   :  { %9535 = vmatprep.subr.bf16.mxu1 %v9534_v11 }
 0x551   :  { %8608 = vmatmul.mubr.f32.vlgmr.msra.gmra.mrb[6].mxu1 %v2575_v21 }
 0x552   :  { %9537 = vmatpush3.bf16.xpose.msra.mxu1 %v9534_v11  ;;  %8618 = vmatprep.mubr.f32.mxu1 %v10801_v34 }
 0x553   :  { %9539 = vmatprep.subr.bf16.mxu1 %v9538_v12 }
 0x55a   :  { %9541 = vmatpush3.bf16.xpose.msra.mxu1 %v9538_v12 }
 0x55b   :  { %9543 = vmatprep.subr.bf16.mxu1 %v10813_v49 }
 0x561   :  { %8619 = vmatmul.mubr.f32.vlgmr.msra.gmra.mrb[6].mxu1 %v2576_v47 }
 0x562   :  { %9545 = vmatpush3.bf16.xpose.msra.mxu1 %v10813_v49  ;;  %8629 = vmatprep.mubr.f32.mxu1 %v2567_v27 }
 0x563   :  { %9547 = vmatprep.subr.bf16.mxu1 %v9522_v54 }
 0x56a   :  { %9549 = vmatpush3.bf16.xpose.msra.mxu1 %v9522_v54 }
 0x56b   :  { %9551 = vmatprep.subr.bf16.mxu1 %v9550_v13 }
 0x571   :  { %8630 = vmatmul.mubr.f32.vlgmr.msra.gmra.mrb[6].mxu1 %v2577_v31 }
 0x572   :  { %9553 = vmatpush3.bf16.xpose.msra.mxu1 %v9550_v13  ;;  %8640 = vmatprep.mubr.f32.mxu1 %v10798_v19 }
 0x573   :  { %9555 = vmatprep.subr.bf16.mxu1 %v9554_v14 }
 0x57a   :  { %9557 = vmatpush3.bf16.xpose.msra.mxu1 %v9554_v14 }
 0x57b   :  { %9559 = vmatprep.subr.bf16.mxu1 %v10813_v49 }
 0x581   :  { %8641 = vmatmul.mubr.f32.vlgmr.msra.gmra.mrb[6].mxu1 %v2575_v21 }
 0x582   :  { %9561 = vmatpush3.bf16.xpose.msra.mxu1 %v10813_v49  ;;  %8651 = vmatprep.mubr.f32.mxu1 %v10798_v19 }
 0x583   :  { %9563 = vmatprep.subr.bf16.mxu1 %v9522_v54 }
 0x58a   :  { %9565 = vmatpush3.bf16.xpose.msra.mxu1 %v9522_v54 }
 0x591   :  { %8652 = vmatmul.mubr.f32.vlgmr.msra.gmra.mrb[6].mxu1 %v2575_v21 }
 0x5ff   :  { %v10832_v15 = vpop.f32.mrb[4].mxu1 }
 0x600   :  { %v10834_v20 = vpop.f32.mrb[5].mxu1 }
 0x664   :  { %v8653_v41 = vpop.f32.mrb[6].mxu1 }
 0x665   :  { %v10102_v34 = vadd.f32 %v8653_v41, %v10743_v62  ;;  %v3014_v24 = vpop.f32.mrb[7].mxu1 }
 0x666   :  { %v10103_v18 = vadd.f32 %v3014_v24, %v10748_v1 }
 0x667   :  { %v3027_v23 = vsel %vm55_vm0, %v10102_v34, -inf }
 0x668   :  { %3028 = vmax.xlane.f32.xlu1 %v3027_v23  ;;  %v3024_v27 = vsel %vm55_vm0, %v10103_v18, -inf }
 0x669   :  { %3025 = vmax.xlane.f32.xlu0 %v3024_v27 }
 0x679   :  { %3048 = vrot.lane.b32.xlu1 %v10676_v8, %s10359_s21 }
 0x67d   :  { %3050 = vrot.lane.b32.xlu1 %v10690_v63, %s10359_s21 }
 0x681   :  { %3052 = vrot.lane.b32.xlu1 %v10686_v50, %s10359_s21 }
 0x685   :  { %3598 = vrot.lane.b32.xlu1 %v10681_v16, %s10356_s12 }
 0x689   :  { %3602 = vrot.lane.b32.xlu1 %v10695_v39, %s10356_s12 }
 0x68d   :  { %3594 = vrot.lane.b32.xlu1 %v10722_v29, %s10358_s20 }
 0x6f5   :  { %v3029_v19 = vpop.xlane.xlu1 %3028 }
 0x6f6   :  { %v3031_v30 = vsub.f32 %v10102_v34, %v3029_v19  ;;  %v3026_v48 = vpop.xlane.xlu0 %3025 }
 0x6f7   :  { %v3030_v51 = vsub.f32 %v10103_v18, %v3026_v48 }
 0x6f8   :  { %v3034_v49 = vmul.f32 1.442695, %v3031_v30 }
 0x6f9   :  { %v3032_v55 = vmul.f32 1.442695, %v3030_v51  ;;  %v3049_v61 = vpop.permute.xlu1 %3048 }
 0x6fa   :  { %10287 = vpow2.f32 %v3034_v49  ;;  %v3068_v6 = vand.u32 4294901760, %v3049_v61 }
 0x6fb   :  { %10289 = vpow2.f32 %v3032_v55 }
 0x6fc   :  { %v10862_v9 = vsub.f32 %v3049_v61, %v3068_v6 }
 0x6fd   :  { %v3051_v0 = vpop.permute.xlu1 %3050 }
 0x6fe   :  { %v3163_v54 = vand.u32 4294901760, %v10862_v9  ;;  %v3071_v47 = vand.u32 4294901760, %v3051_v0 }
 0x700   :  { %v3164_v31 = vsub.f32 %v10862_v9, %v3163_v54  ;;  %v3169_v4 = vsub.f32 %v3051_v0, %v3071_v47 }
 0x701   :  { %v3053_v21 = vpop.permute.xlu1 %3052 }
 0x702   :  { %v3074_v37 = vand.u32 4294901760, %v3053_v21  ;;  %v3165_v12 = vand.u32 4294901760, %v3164_v31  ;;  %v3170_v18 = vand.u32 4294901760, %v3169_v4 }
 0x704   :  { %v10288_v59 = vpop.eup %10287  ;;  %v10870_v52 = vpack.c.bf16 %v3074_v37, %v3071_v47  ;;  %v3176_v57 = vsub.f32 %v3053_v21, %v3074_v37  ;;  %v3171_v48 = vsub.f32 %v3169_v4, %v3170_v18 }
 0x705   :  { %v3039_v26 = vsel %vm55_vm0, %v10288_v59, 0.0  ;;  %v10290_v42 = vpop.eup %10289 }
 0x706   :  { %3040 = vadd.xlane.f32.xlu0 %v3039_v26  ;;  %v3036_v35 = vsel %vm55_vm0, %v10290_v42, 0.0  ;;  %v3177_v14 = vand.u32 4294901760, %v3176_v57 }
 0x708   :  { %v3178_v19 = vsub.f32 %v3176_v57, %v3177_v14 }
 0x70a   :  { %3037 = vadd.xlane.f32.xlu0 %v3036_v35  ;;  %v3179_v55 = vand.u32 4294901760, %v3178_v19 }
 0x720   :  { %3046 = vrot.lane.b32.xlu0 %v10678_v36, %s10359_s21 }
 0x724   :  { %3596 = vrot.lane.b32.xlu0 %v10684_v45, %s10356_s12 }
 0x728   :  { %3600 = vrot.lane.b32.xlu0 %v10698_v46, %s10356_s12 }
 0x72c   :  { %3592 = vrot.lane.b32.xlu0 %v10724_v33, %s10358_s20 }
 0x793   :  { %v3041_v5 = vpop.xlane.xlu0 %3040 }
 0x794   :  { %10291 = vrcp.f32 %v3041_v5  ;;  %v9586_v5 = vpack.c.bf16 %v3176_v57, %v3169_v4 }
 0x797   :  { %v3038_v7 = vpop.xlane.xlu0 %3037 }
 0x798   :  { %10293 = vrcp.f32 %v3038_v7 }
 0x79b   :  { %v3047_v53 = vpop.permute.xlu0 %3046 }
 0x79c   :  { %v3065_v44 = vand.u32 4294901760, %v3047_v53 }
 0x79e   :  { %v10292_v32 = vpop.eup %10291  ;;  %v10865_v38 = vpack.c.bf16 %v3068_v6, %v3065_v44  ;;  %v3155_v25 = vsub.f32 %v3047_v53, %v3065_v44  ;;  %v9602_v44 = vpack.c.bf16 %v3177_v14, %v3170_v18 }
 0x79f   :  { %v3045_v28 = vmul.f32 %v10292_v32, %v10288_v59  ;;  %v3597_v0 = vpop.permute.xlu0 %3596  ;;  %v3599_v32 = vpop.permute.xlu1 %3598 }
 0x7a0   :  { %v3156_v56 = vand.u32 4294901760, %v3155_v25  ;;  %9567 = vmatprep.subr.bf16.mxu0 %v10865_v38  ;;  %v9582_v61 = vpack.c.bf16 %v10862_v9, %v3155_v25  ;;  %v3610_v9 = vsel %vm1353_vm1, %v3599_v32, 0 }
 0x7a1   :  { %9569 = vmatpush3.bf16.msra.mxu0 %v10865_v38  ;;  %v3062_v58 = vsel %vm55_vm0, %v3045_v28, 0 }
 0x7a2   :  { %v10294_v60 = vpop.eup %10293  ;;  %v3157_v2 = vsub.f32 %v3155_v25, %v3156_v56  ;;  %9571 = vmatprep.subr.bf16.mxu0 %v10870_v52  ;;  %v10876_v3 = vand.u32 4294901760, %v3062_v58  ;;  %v9598_v53 = vpack.c.bf16 %v3163_v54, %v3156_v56  ;;  %v3608_v25 = vsel %vm1353_vm1, %v3597_v0, 0 }
 0x7a3   :  { %v3043_v10 = vmul.f32 %v10294_v60, %v10290_v42  ;;  %v3172_v42 = vand.u32 4294901760, %v3171_v48  ;;  %v3601_v6 = vpop.permute.xlu0 %3600  ;;  %v3603_v54 = vpop.permute.xlu1 %3602  ;;  %v3617_v31 = vand.u32 4294901760, %v3608_v25  ;;  %v3620_v56 = vand.u32 4294901760, %v3610_v9 }
 0x7a4   :  { %v3158_v11 = vand.u32 4294901760, %v3157_v2  ;;  %v3144_v13 = vsub.f32 %v3062_v58, %v10876_v3  ;;  %v3612_v4 = vsel %vm1353_vm1, %v3601_v6, 0 }
 0x7a5   :  { %9573 = vmatpush3.bf16.msra.mxu0 %v10870_v52  ;;  %v3059_v41 = vsel %vm55_vm0, %v3043_v10, 0  ;;  %v9578_v35 = vpack.c.bf16 %v3179_v55, %v3172_v42  ;;  %v10905_v58 = vpack.c.bf16 %v3620_v56, %v3617_v31  ;;  %v3707_v2 = vsub.f32 %v3608_v25, %v3617_v31 }
 0x7a6   :  { %v9574_v34 = vpack.c.bf16 %v3165_v12, %v3158_v11  ;;  %v3133_v24 = vand.u32 4294901760, %v3059_v41  ;;  %v3145_v23 = vand.u32 4294901760, %v3144_v13  ;;  %v3714_v10 = vsub.f32 %v3610_v9, %v3620_v56 }
 0x7a7   :  { %v3593_v7 = vpop.permute.xlu0 %3592  ;;  %v3595_v60 = vpop.permute.xlu1 %3594  ;;  %v3614_v11 = vsel %vm1353_vm1, %v3603_v54, 0  ;;  %v3623_v14 = vand.u32 4294901760, %v3612_v4 }
 0x7a8   :  { %9575 = vmatprep.subr.bf16.mxu0 %v9574_v34  ;;  %v3134_v27 = vsub.f32 %v3059_v41, %v3133_v24  ;;  %v3146_v51 = vsub.f32 %v3144_v13, %v3145_v23  ;;  %v3604_v21 = vsel %vm1353_vm1, %v3593_v7, 0  ;;  %v3606_v12 = vsel %vm1353_vm1, %v3595_v60, 0 }
 0x7a9   :  { %v10890_v37 = vand.u32 4294901760, %v3604_v21  ;;  %v3715_v41 = vand.u32 4294901760, %v3714_v10  ;;  %v9630_v7 = vpack.c.bf16 %v3714_v10, %v3707_v2 }
 0x7aa   :  { %v3135_v30 = vand.u32 4294901760, %v3134_v27  ;;  %v3147_v26 = vand.u32 4294901760, %v3146_v51 }
 0x7ab   :  { %v10893_v47 = vsub.f32 %v3604_v21, %v10890_v37 }
 0x7ac   :  { %v3136_v49 = vsub.f32 %v3134_v27, %v3135_v30 }
 0x7ad   :  { %v3687_v28 = vand.u32 4294901760, %v10893_v47 }
 0x7ae   :  { %v3137_v59 = vand.u32 4294901760, %v3136_v49 }
 0x7af   :  { %v3688_v57 = vsub.f32 %v10893_v47, %v3687_v28 }
 0x7b0   :  { %8662 = vmatprep.mubr.f32.mxu0 %v3137_v59 }
 0x7b1   :  { %8663 = vmatmul.mubr.f32.vlgmr.msra.gmra.mrb[4].mxu0 %v3147_v26 }
 0x7b2   :  { %9577 = vmatpush3.bf16.msra.mxu0 %v9574_v34  ;;  %8673 = vmatprep.mubr.f32.mxu0 %v3133_v24  ;;  %v3626_v34 = vand.u32 4294901760, %v3614_v11 }
 0x7b3   :  { %9579 = vmatprep.subr.bf16.mxu0 %v9578_v35 }
 0x7b4   :  { %v3728_v19 = vsub.f32 %v3614_v11, %v3626_v34 }
 0x7b6   :  { %9581 = vmatpush3.bf16.msra.mxu0 %v9578_v35  ;;  %v3729_v49 = vand.u32 4294901760, %v3728_v19 }
 0x7b7   :  { %9583 = vmatprep.subr.bf16.mxu0 %v9582_v61 }
 0x7b8   :  { %v3730_v42 = vsub.f32 %v3728_v19, %v3729_v49 }
 0x7b9   :  { %8674 = vmatmul.mubr.f32.vlgmr.msra.gmra.mrb[4].mxu0 %v10876_v3 }
 0x7ba   :  { %9585 = vmatpush3.bf16.msra.mxu0 %v9582_v61  ;;  %8684 = vmatprep.mubr.f32.mxu0 %v3134_v27  ;;  %v3716_v27 = vsub.f32 %v3714_v10, %v3715_v41 }
 0x7bb   :  { %9587 = vmatprep.subr.bf16.mxu0 %v9586_v5 }
 0x7be   :  { %9589 = vmatpush3.bf16.msra.mxu0 %v9586_v5  ;;  %v3731_v5 = vand.u32 4294901760, %v3730_v42 }
 0x7bf   :  { %9591 = vmatprep.subr.bf16.mxu0 %v10865_v38 }
 0x7c1   :  { %8685 = vmatmul.mubr.f32.vlgmr.msra.gmra.mrb[4].mxu0 %v3144_v13  ;;  %v3708_v13 = vand.u32 4294901760, %v3707_v2 }
 0x7c2   :  { %9593 = vmatpush3.bf16.msra.mxu0 %v10865_v38  ;;  %8695 = vmatprep.mubr.f32.mxu0 %v3135_v30 }
 0x7c3   :  { %9595 = vmatprep.subr.bf16.mxu0 %v10870_v52  ;;  %v3709_v18 = vsub.f32 %v3707_v2, %v3708_v13 }
 0x7c5   :  { %v3710_v51 = vand.u32 4294901760, %v3709_v18 }
 0x7c6   :  { %9597 = vmatpush3.bf16.msra.mxu0 %v10870_v52 }
 0x7c7   :  { %9599 = vmatprep.subr.bf16.mxu0 %v9598_v53 }
 0x7c9   :  { %8696 = vmatmul.mubr.f32.vlgmr.msra.gmra.mrb[4].mxu0 %v3145_v23  ;;  %v3721_v23 = vsub.f32 %v3612_v4, %v3623_v14 }
 0x7ca   :  { %9601 = vmatpush3.bf16.msra.mxu0 %v9598_v53  ;;  %8706 = vmatprep.mubr.f32.mxu0 %v3133_v24  ;;  %v9646_v53 = vpack.c.bf16 %v3715_v41, %v3708_v13 }
 0x7cb   :  { %9603 = vmatprep.subr.bf16.mxu0 %v9602_v44  ;;  %v3722_v48 = vand.u32 4294901760, %v3721_v23  ;;  %v9634_v21 = vpack.c.bf16 %v3728_v19, %v3721_v23 }
 0x7cd   :  { %v3723_v59 = vsub.f32 %v3721_v23, %v3722_v48 }
 0x7ce   :  { %9605 = vmatpush3.bf16.msra.mxu0 %v9602_v44  ;;  %v9650_v44 = vpack.c.bf16 %v3729_v49, %v3722_v48 }
 0x7cf   :  { %9607 = vmatprep.subr.bf16.mxu0 %v10865_v38  ;;  %v3724_v61 = vand.u32 4294901760, %v3723_v59 }
 0x7d1   :  { %8707 = vmatmul.mubr.f32.vlgmr.msra.gmra.mrb[4].mxu0 %v10876_v3  ;;  %v9626_v6 = vpack.c.bf16 %v3731_v5, %v3724_v61 }
 0x7d2   :  { %9609 = vmatpush3.bf16.msra.mxu0 %v10865_v38  ;;  %8717 = vmatprep.mubr.f32.mxu0 %v3133_v24  ;;  %v3689_v38 = vand.u32 4294901760, %v3688_v57  ;;  %v3695_v24 = vand.u32 4294901760, %v3606_v12 }
 0x7d3   :  { %9611 = vmatprep.subr.bf16.mxu0 %v10870_v52 }
 0x7d4   :  { %v3696_v30 = vsub.f32 %v3606_v12, %v3695_v24 }
 0x7d6   :  { %9613 = vmatpush3.bf16.msra.mxu0 %v10870_v52  ;;  %v9618_v52 = vpack.c.bf16 %v3626_v34, %v3623_v14  ;;  %v3697_v55 = vand.u32 4294901760, %v3696_v30 }
 0x7d7   :  { %9615 = vmatprep.subr.bf16.mxu0 %v10905_v58 }
 0x7d8   :  { %v3698_v35 = vsub.f32 %v3696_v30, %v3697_v55 }
 0x7d9   :  { %8718 = vmatmul.mubr.f32.vlgmr.msra.gmra.mrb[4].mxu0 %v10876_v3  ;;  %v3717_v3 = vand.u32 4294901760, %v3716_v27 }
 0x7da   :  { %8728 = vmatprep.mubr.f32.mxu0 %v3689_v38  ;;  %v3699_v0 = vand.u32 4294901760, %v3698_v35 }
 0x7db   :  { %v9622_v26 = vpack.c.bf16 %v3717_v3, %v3710_v51 }
 0x7df   :  { %9617 = vmatpush3.bf16.xpose.msra.mxu0 %v10905_v58 }
 0x7e0   :  { %9619 = vmatprep.subr.bf16.mxu0 %v9618_v52 }
 0x7e7   :  { %9621 = vmatpush3.bf16.xpose.msra.mxu0 %v9618_v52 }
 0x7e8   :  { %9623 = vmatprep.subr.bf16.mxu0 %v9622_v26 }
 0x7ee   :  { %8729 = vmatmul.mubr.f32.vlgmr.msra.gmra.mrb[6].mxu0 %v3699_v0 }
 0x7ef   :  { %9625 = vmatpush3.bf16.xpose.msra.mxu0 %v9622_v26  ;;  %8739 = vmatprep.mubr.f32.mxu0 %v10890_v37 }
 0x7f0   :  { %9627 = vmatprep.subr.bf16.mxu0 %v9626_v6 }
 0x7f7   :  { %9629 = vmatpush3.bf16.xpose.msra.mxu0 %v9626_v6 }
 0x7f8   :  { %9631 = vmatprep.subr.bf16.mxu0 %v9630_v7 }
 0x7fe   :  { %8740 = vmatmul.mubr.f32.vlgmr.msra.gmra.mrb[6].mxu0 %v3695_v24 }
 0x7ff   :  { %9633 = vmatpush3.bf16.xpose.msra.mxu0 %v9630_v7  ;;  %8750 = vmatprep.mubr.f32.mxu0 %v10893_v47 }
 0x800   :  { %9635 = vmatprep.subr.bf16.mxu0 %v9634_v21 }
 0x807   :  { %9637 = vmatpush3.bf16.xpose.msra.mxu0 %v9634_v21 }
 0x808   :  { %9639 = vmatprep.subr.bf16.mxu0 %v10905_v58 }
 0x80e   :  { %8751 = vmatmul.mubr.f32.vlgmr.msra.gmra.mrb[6].mxu0 %v3696_v30 }
 0x80f   :  { %9641 = vmatpush3.bf16.xpose.msra.mxu0 %v10905_v58  ;;  %8761 = vmatprep.mubr.f32.mxu0 %v3687_v28 }
 0x810   :  { %9643 = vmatprep.subr.bf16.mxu0 %v9618_v52 }
 0x817   :  { %9645 = vmatpush3.bf16.xpose.msra.mxu0 %v9618_v52 }
 0x818   :  { %9647 = vmatprep.subr.bf16.mxu0 %v9646_v53 }
 0x81e   :  { %8762 = vmatmul.mubr.f32.vlgmr.msra.gmra.mrb[6].mxu0 %v3697_v55 }
 0x81f   :  { %9649 = vmatpush3.bf16.xpose.msra.mxu0 %v9646_v53  ;;  %8772 = vmatprep.mubr.f32.mxu0 %v10890_v37 }
 0x820   :  { %9651 = vmatprep.subr.bf16.mxu0 %v9650_v44 }
 0x827   :  { %9653 = vmatpush3.bf16.xpose.msra.mxu0 %v9650_v44 }
 0x828   :  { %9655 = vmatprep.subr.bf16.mxu0 %v10905_v58 }
 0x82e   :  { %8773 = vmatmul.mubr.f32.vlgmr.msra.gmra.mrb[6].mxu0 %v3695_v24 }
 0x82f   :  { %9657 = vmatpush3.bf16.xpose.msra.mxu0 %v10905_v58  ;;  %8783 = vmatprep.mubr.f32.mxu0 %v10890_v37 }
 0x830   :  { %9659 = vmatprep.subr.bf16.mxu0 %v9618_v52 }
 0x837   :  { %9661 = vmatpush3.bf16.xpose.msra.mxu0 %v9618_v52 }
 0x83e   :  { %8784 = vmatmul.mubr.f32.vlgmr.msra.gmra.mrb[6].mxu0 %v3695_v24 }
 0x8ac   :  { %v10924_v32 = vpop.f32.mrb[4].mxu0 }
 0x8ad   :  { %v10926_v47 = vpop.f32.mrb[5].mxu0 }
 0x911   :  { %v8785_v25 = vpop.f32.mrb[6].mxu0 }
 0x912   :  { %v10104_v9 = vadd.f32 %v8785_v25, %v10743_v62  ;;  %v4134_v54 = vpop.f32.mrb[7].mxu0 }
 0x913   :  { %v10105_v28 = vadd.f32 %v4134_v54, %v10748_v1 }
 0x914   :  { %v4147_v31 = vsel %vm55_vm0, %v10104_v9, -inf }
 0x915   :  { %4148 = vmax.xlane.f32.xlu1 %v4147_v31  ;;  %v4144_v56 = vsel %vm55_vm0, %v10105_v28, -inf }
 0x916   :  { %4145 = vmax.xlane.f32.xlu0 %v4144_v56 }
 0x926   :  { %4168 = vrot.lane.b32.xlu1 %v10676_v8, %s10360_s22 }
 0x92a   :  { %4170 = vrot.lane.b32.xlu1 %v10690_v63, %s10360_s22 }
 0x92e   :  { %4172 = vrot.lane.b32.xlu1 %v10686_v50, %s10360_s22 }
 0x932   :  { %4718 = vrot.lane.b32.xlu1 %v10681_v16, %s10361_s23 }
 0x936   :  { %4722 = vrot.lane.b32.xlu1 %v10695_v39, %s10361_s23 }
 0x93a   :  { %4714 = vrot.lane.b32.xlu1 %v10722_v29, %s10359_s21 }
 0x9a2   :  { %v4149_v62 = vpop.xlane.xlu1 %4148 }
 0x9a3   :  { %v4151_v1 = vsub.f32 %v10104_v9, %v4149_v62  ;;  %v4146_v37 = vpop.xlane.xlu0 %4145 }
 0x9a4   :  { %v4150_v57 = vsub.f32 %v10105_v28, %v4146_v37 }
 0x9a5   :  { %v4154_v58 = vmul.f32 1.442695, %v4151_v1 }
 0x9a6   :  { %v4152_v60 = vmul.f32 1.442695, %v4150_v57  ;;  %v4169_v39 = vpop.permute.xlu1 %4168 }
 0x9a7   :  { %10295 = vpow2.f32 %v4154_v58  ;;  %v4188_v11 = vand.u32 4294901760, %v4169_v39 }
 0x9a8   :  { %10297 = vpow2.f32 %v4152_v60 }
 0x9a9   :  { %v10946_v13 = vsub.f32 %v4169_v39, %v4188_v11 }
 0x9aa   :  { %v4171_v29 = vpop.permute.xlu1 %4170 }
 0x9ab   :  { %v4283_v34 = vand.u32 4294901760, %v10946_v13 }
 0x9ad   :  { %v4284_v27 = vsub.f32 %v10946_v13, %v4283_v34 }
 0x9ae   :  { %v4173_v14 = vpop.permute.xlu1 %4172 }
 0x9af   :  { %v4194_v24 = vand.u32 4294901760, %v4173_v14  ;;  %v4285_v35 = vand.u32 4294901760, %v4284_v27 }
 0x9b1   :  { %v10296_v2 = vpop.eup %10295  ;;  %v4296_v48 = vsub.f32 %v4173_v14, %v4194_v24 }
 0x9b2   :  { %v4159_v4 = vsel %vm55_vm0, %v10296_v2, 0.0  ;;  %v10298_v10 = vpop.eup %10297 }
 0x9b3   :  { %4160 = vadd.xlane.f32.xlu0 %v4159_v4  ;;  %v4156_v16 = vsel %vm55_vm0, %v10298_v10, 0.0  ;;  %v4297_v0 = vand.u32 4294901760, %v4296_v48 }
 0x9b5   :  { %v4298_v25 = vsub.f32 %v4296_v48, %v4297_v0 }
 0x9b7   :  { %4157 = vadd.xlane.f32.xlu0 %v4156_v16  ;;  %v4299_v56 = vand.u32 4294901760, %v4298_v25 }
 0x9cd   :  { %4166 = vrot.lane.b32.xlu0 %v10678_v36, %s10360_s22 }
 0x9d1   :  { %4716 = vrot.lane.b32.xlu0 %v10684_v45, %s10361_s23 }
 0x9d5   :  { %4720 = vrot.lane.b32.xlu0 %v10698_v46, %s10361_s23  ;;  %v4191_v46 = vand.u32 4294901760, %v4171_v29 }
 0x9d7   :  { %v10954_v19 = vpack.c.bf16 %v4194_v24, %v4191_v46  ;;  %v4289_v59 = vsub.f32 %v4171_v29, %v4191_v46 }
 0x9d9   :  { %4712 = vrot.lane.b32.xlu0 %v10724_v33, %s10359_s21  ;;  %v4290_v21 = vand.u32 4294901760, %v4289_v59 }
 0x9db   :  { %v4291_v54 = vsub.f32 %v4289_v59, %v4290_v21 }
 0x9dd   :  { %v4292_v37 = vand.u32 4294901760, %v4291_v54 }
 0x9df   :  { %v9674_v57 = vpack.c.bf16 %v4299_v56, %v4292_v37 }
 0xa40   :  { %v4161_v38 = vpop.xlane.xlu0 %4160 }
 0xa41   :  { %10299 = vrcp.f32 %v4161_v38  ;;  %v9698_v38 = vpack.c.bf16 %v4297_v0, %v4290_v21 }
 0xa44   :  { %v4158_v12 = vpop.xlane.xlu0 %4157 }
 0xa45   :  { %10301 = vrcp.f32 %v4158_v12 }
 0xa48   :  { %v4167_v41 = vpop.permute.xlu0 %4166 }
 0xa49   :  { %v4185_v45 = vand.u32 4294901760, %v4167_v41 }
 0xa4b   :  { %v10300_v18 = vpop.eup %10299  ;;  %v10949_v52 = vpack.c.bf16 %v4188_v11, %v4185_v45  ;;  %v4275_v33 = vsub.f32 %v4167_v41, %v4185_v45  ;;  %v4719_v11 = vpop.permute.xlu1 %4718 }
 0xa4c   :  { %v4165_v23 = vmul.f32 %v10300_v18, %v10296_v2  ;;  %v4717_v60 = vpop.permute.xlu0 %4716  ;;  %v9682_v2 = vpack.c.bf16 %v4296_v48, %v4289_v59 }
 0xa4d   :  { %v4276_v30 = vand.u32 4294901760, %v4275_v33  ;;  %9663 = vmatprep.subr.bf16.mxu1 %v10949_v52  ;;  %v9678_v58 = vpack.c.bf16 %v10946_v13, %v4275_v33  ;;  %v4728_v14 = vsel %vm1353_vm1, %v4717_v60, 0  ;;  %v4730_v13 = vsel %vm1353_vm1, %v4719_v11, 0  ;;  %v10324_v11 = vld [vmem:[%s11544_s4 + $0x10] sm:$0xff] }
 0xa4e   :  { %9665 = vmatpush3.bf16.msra.mxu1 %v10949_v52  ;;  %v4182_v51 = vsel %vm55_vm0, %v4165_v23, 0  ;;  %v4737_v24 = vand.u32 4294901760, %v4728_v14  ;;  %v4740_v45 = vand.u32 4294901760, %v4730_v13 }
 0xa4f   :  { %v10302_v49 = vpop.eup %10301  ;;  %v4277_v55 = vsub.f32 %v4275_v33, %v4276_v30  ;;  %9667 = vmatprep.subr.bf16.mxu1 %v10954_v19  ;;  %v10960_v3 = vand.u32 4294901760, %v4182_v51  ;;  %v9694_v39 = vpack.c.bf16 %v4283_v34, %v4276_v30  ;;  %v4723_v41 = vpop.permute.xlu1 %4722 }
 0xa50   :  { %v4163_v26 = vmul.f32 %v10302_v49, %v10298_v10  ;;  %v4721_v4 = vpop.permute.xlu0 %4720  ;;  %v10989_v46 = vpack.c.bf16 %v4740_v45, %v4737_v24  ;;  %v4827_v23 = vsub.f32 %v4728_v14, %v4737_v24  ;;  %v4834_v30 = vsub.f32 %v4730_v13, %v4740_v45 }
 0xa51   :  { %v4278_v42 = vand.u32 4294901760, %v4277_v55  ;;  %v4264_v61 = vsub.f32 %v4182_v51, %v10960_v3  ;;  %v4732_v27 = vsel %vm1353_vm1, %v4721_v4, 0  ;;  %v4734_v48 = vsel %vm1353_vm1, %v4723_v41, 0 }
 0xa52   :  { %9669 = vmatpush3.bf16.msra.mxu1 %v10954_v19  ;;  %v4179_v5 = vsel %vm55_vm0, %v4163_v26, 0  ;;  %v4828_v49 = vand.u32 4294901760, %v4827_v23  ;;  %v4743_v55 = vand.u32 4294901760, %v4732_v27  ;;  %v4835_v59 = vand.u32 4294901760, %v4834_v30 }
 0xa53   :  { %v9670_v6 = vpack.c.bf16 %v4285_v35, %v4278_v42  ;;  %v4253_v7 = vand.u32 4294901760, %v4179_v5  ;;  %v4265_v53 = vand.u32 4294901760, %v4264_v61  ;;  %v4715_v33 = vpop.permute.xlu1 %4714  ;;  %v4746_v26 = vand.u32 4294901760, %v4734_v48 }
 0xa54   :  { %v4713_v10 = vpop.permute.xlu0 %4712  ;;  %v4726_v51 = vsel %vm1353_vm1, %v4715_v33, 0  ;;  %v4829_v35 = vsub.f32 %v4827_v23, %v4828_v49  ;;  %v4836_v0 = vsub.f32 %v4834_v30, %v4835_v59  ;;  %v9726_v37 = vpack.c.bf16 %v4834_v30, %v4827_v23 }
 0xa55   :  { %9671 = vmatprep.subr.bf16.mxu1 %v9670_v6  ;;  %v4254_v44 = vsub.f32 %v4179_v5, %v4253_v7  ;;  %v4266_v28 = vsub.f32 %v4264_v61, %v4265_v53  ;;  %v4724_v16 = vsel %vm1353_vm1, %v4713_v10, 0  ;;  %v4815_v42 = vand.u32 4294901760, %v4726_v51 }
 0xa56   :  { %v10974_v29 = vand.u32 4294901760, %v4724_v16  ;;  %v4848_v5 = vsub.f32 %v4734_v48, %v4746_v26  ;;  %v4830_v21 = vand.u32 4294901760, %v4829_v35 }
 0xa57   :  { %v4255_v9 = vand.u32 4294901760, %v4254_v44  ;;  %v4267_v1 = vand.u32 4294901760, %v4266_v28 }
 0xa58   :  { %v10977_v12 = vsub.f32 %v4724_v16, %v10974_v29  ;;  %v10323_v16 = vld [vmem:[%s11544_s4 + $0x18] sm:$0xff] }
 0xa59   :  { %v4256_v31 = vsub.f32 %v4254_v44, %v4255_v9 }
 0xa5a   :  { %v4807_v34 = vand.u32 4294901760, %v10977_v12 }
 0xa5b   :  { %v4257_v62 = vand.u32 4294901760, %v4256_v31 }
 0xa5c   :  { %v4808_v18 = vsub.f32 %v10977_v12, %v4807_v34 }
 0xa5d   :  { %8794 = vmatprep.mubr.f32.mxu1 %v4257_v62 }
 0xa5e   :  { %8795 = vmatmul.mubr.f32.vlgmr.msra.gmra.mrb[8].mxu1 %v4267_v1 }
 0xa5f   :  { %9673 = vmatpush3.bf16.msra.mxu1 %v9670_v6  ;;  %8805 = vmatprep.mubr.f32.mxu1 %v4253_v7  ;;  %v4816_v6 = vsub.f32 %v4726_v51, %v4815_v42 }
 0xa60   :  { %9675 = vmatprep.subr.bf16.mxu1 %v9674_v57 }
 0xa63   :  { %9677 = vmatpush3.bf16.msra.mxu1 %v9674_v57 }
 0xa64   :  { %9679 = vmatprep.subr.bf16.mxu1 %v9678_v58 }
 0xa66   :  { %8806 = vmatmul.mubr.f32.vlgmr.msra.gmra.mrb[8].mxu1 %v10960_v3 }
 0xa67   :  { %9681 = vmatpush3.bf16.msra.mxu1 %v9678_v58  ;;  %8816 = vmatprep.mubr.f32.mxu1 %v4254_v44  ;;  %v4817_v44 = vand.u32 4294901760, %v4816_v6  ;;  %v9742_v58 = vpack.c.bf16 %v4835_v59, %v4828_v49 }
 0xa68   :  { %9683 = vmatprep.subr.bf16.mxu1 %v9682_v2 }
 0xa69   :  { %v4818_v28 = vsub.f32 %v4816_v6, %v4817_v44 }
 0xa6b   :  { %9685 = vmatpush3.bf16.msra.mxu1 %v9682_v2  ;;  %v4819_v56 = vand.u32 4294901760, %v4818_v28 }
 0xa6c   :  { %9687 = vmatprep.subr.bf16.mxu1 %v10949_v52 }
 0xa6e   :  { %8817 = vmatmul.mubr.f32.vlgmr.msra.gmra.mrb[8].mxu1 %v4264_v61  ;;  %v4841_v61 = vsub.f32 %v4732_v27, %v4743_v55 }
 0xa6f   :  { %9689 = vmatpush3.bf16.msra.mxu1 %v10949_v52  ;;  %8827 = vmatprep.mubr.f32.mxu1 %v4255_v9 }
 0xa70   :  { %9691 = vmatprep.subr.bf16.mxu1 %v10954_v19  ;;  %v9730_v57 = vpack.c.bf16 %v4848_v5, %v4841_v61 }
 0xa73   :  { %9693 = vmatpush3.bf16.msra.mxu1 %v10954_v19 }
 0xa74   :  { %9695 = vmatprep.subr.bf16.mxu1 %v9694_v39 }
 0xa76   :  { %8828 = vmatmul.mubr.f32.vlgmr.msra.gmra.mrb[8].mxu1 %v4265_v53  ;;  %v4849_v53 = vand.u32 4294901760, %v4848_v5 }
 0xa77   :  { %9697 = vmatpush3.bf16.msra.mxu1 %v9694_v39  ;;  %8838 = vmatprep.mubr.f32.mxu1 %v4253_v7 }
 0xa78   :  { %9699 = vmatprep.subr.bf16.mxu1 %v9698_v38  ;;  %v4850_v54 = vsub.f32 %v4848_v5, %v4849_v53 }
 0xa7a   :  { %v4851_v62 = vand.u32 4294901760, %v4850_v54 }
 0xa7b   :  { %9701 = vmatpush3.bf16.msra.mxu1 %v9698_v38 }
 0xa7c   :  { %9703 = vmatprep.subr.bf16.mxu1 %v10949_v52 }
 0xa7e   :  { %8839 = vmatmul.mubr.f32.vlgmr.msra.gmra.mrb[8].mxu1 %v10960_v3 }
 0xa7f   :  { %9705 = vmatpush3.bf16.msra.mxu1 %v10949_v52  ;;  %8849 = vmatprep.mubr.f32.mxu1 %v4253_v7  ;;  %v4809_v52 = vand.u32 4294901760, %v4808_v18  ;;  %v4842_v7 = vand.u32 4294901760, %v4841_v61 }
 0xa80   :  { %9707 = vmatprep.subr.bf16.mxu1 %v10954_v19 }
 0xa81   :  { %v4843_v25 = vsub.f32 %v4841_v61, %v4842_v7  ;;  %v9746_v60 = vpack.c.bf16 %v4849_v53, %v4842_v7 }
 0xa83   :  { %9709 = vmatpush3.bf16.msra.mxu1 %v10954_v19  ;;  %v9714_v19 = vpack.c.bf16 %v4746_v26, %v4743_v55  ;;  %v4844_v31 = vand.u32 4294901760, %v4843_v25 }
 0xa84   :  { %9711 = vmatprep.subr.bf16.mxu1 %v10989_v46 }
 0xa85   :  { %v9722_v1 = vpack.c.bf16 %v4851_v62, %v4844_v31 }
 0xa86   :  { %8850 = vmatmul.mubr.f32.vlgmr.msra.gmra.mrb[8].mxu1 %v10960_v3  ;;  %v4837_v3 = vand.u32 4294901760, %v4836_v0 }
 0xa87   :  { %8860 = vmatprep.mubr.f32.mxu1 %v4809_v52 }
 0xa88   :  { %v9718_v9 = vpack.c.bf16 %v4837_v3, %v4830_v21 }
 0xa8c   :  { %9713 = vmatpush3.bf16.xpose.msra.mxu1 %v10989_v46 }
 0xa8d   :  { %9715 = vmatprep.subr.bf16.mxu1 %v9714_v19 }
 0xa94   :  { %9717 = vmatpush3.bf16.xpose.msra.mxu1 %v9714_v19 }
 0xa95   :  { %9719 = vmatprep.subr.bf16.mxu1 %v9718_v9 }
 0xa9b   :  { %8861 = vmatmul.mubr.f32.vlgmr.msra.gmra.mrb[10].mxu1 %v4819_v56 }
 0xa9c   :  { %9721 = vmatpush3.bf16.xpose.msra.mxu1 %v9718_v9  ;;  %8871 = vmatprep.mubr.f32.mxu1 %v10974_v29 }
 0xa9d   :  { %9723 = vmatprep.subr.bf16.mxu1 %v9722_v1 }
 0xaa4   :  { %9725 = vmatpush3.bf16.xpose.msra.mxu1 %v9722_v1 }
 0xaa5   :  { %9727 = vmatprep.subr.bf16.mxu1 %v9726_v37 }
 0xaab   :  { %8872 = vmatmul.mubr.f32.vlgmr.msra.gmra.mrb[10].mxu1 %v4815_v42 }
 0xaac   :  { %9729 = vmatpush3.bf16.xpose.msra.mxu1 %v9726_v37  ;;  %8882 = vmatprep.mubr.f32.mxu1 %v10977_v12 }
 0xaad   :  { %9731 = vmatprep.subr.bf16.mxu1 %v9730_v57 }
 0xab4   :  { %9733 = vmatpush3.bf16.xpose.msra.mxu1 %v9730_v57 }
 0xab5   :  { %9735 = vmatprep.subr.bf16.mxu1 %v10989_v46 }
 0xabb   :  { %8883 = vmatmul.mubr.f32.vlgmr.msra.gmra.mrb[10].mxu1 %v4816_v6 }
 0xabc   :  { %9737 = vmatpush3.bf16.xpose.msra.mxu1 %v10989_v46  ;;  %8893 = vmatprep.mubr.f32.mxu1 %v4807_v34 }
 0xabd   :  { %9739 = vmatprep.subr.bf16.mxu1 %v9714_v19 }
 0xac4   :  { %9741 = vmatpush3.bf16.xpose.msra.mxu1 %v9714_v19 }
 0xac5   :  { %9743 = vmatprep.subr.bf16.mxu1 %v9742_v58 }
 0xacb   :  { %8894 = vmatmul.mubr.f32.vlgmr.msra.gmra.mrb[10].mxu1 %v4817_v44 }
 0xacc   :  { %9745 = vmatpush3.bf16.xpose.msra.mxu1 %v9742_v58  ;;  %8904 = vmatprep.mubr.f32.mxu1 %v10974_v29 }
 0xacd   :  { %9747 = vmatprep.subr.bf16.mxu1 %v9746_v60 }
 0xad4   :  { %9749 = vmatpush3.bf16.xpose.msra.mxu1 %v9746_v60 }
 0xad5   :  { %9751 = vmatprep.subr.bf16.mxu1 %v10989_v46 }
 0xadb   :  { %8905 = vmatmul.mubr.f32.vlgmr.msra.gmra.mrb[10].mxu1 %v4815_v42 }
 0xadc   :  { %9753 = vmatpush3.bf16.xpose.msra.mxu1 %v10989_v46  ;;  %8915 = vmatprep.mubr.f32.mxu1 %v10974_v29 }
 0xadd   :  { %9755 = vmatprep.subr.bf16.mxu1 %v9714_v19 }
 0xae4   :  { %9757 = vmatpush3.bf16.xpose.msra.mxu1 %v9714_v19 }
 0xaeb   :  { %8916 = vmatmul.mubr.f32.vlgmr.msra.gmra.mrb[10].mxu1 %v4815_v42 }
 0xb59   :  { %v8851_v2 = vpop.f32.mrb[8].mxu1 }
 0xb5a   :  { %v4702_v4 = vpop.f32.mrb[9].mxu1 }
 0xbbe   :  { %v8917_v10 = vpop.f32.mrb[10].mxu1 }
 0xbbf   :  { %v10106_v39 = vadd.f32 %v10323_v16, %v8917_v10  ;;  %v5254_v38 = vpop.f32.mrb[11].mxu1 }
 0xbc0   :  { %v10107_v12 = vadd.f32 %v10324_v11, %v5254_v38 }
 0xbc1   :  { %v5267_v14 = vsel %vm55_vm0, %v10106_v39, -inf }
 0xbc2   :  { %5268 = vmax.xlane.f32.xlu1 %v5267_v14  ;;  %v5264_v29 = vsel %vm55_vm0, %v10107_v12, -inf }
 0xbc3   :  { %5265 = vmax.xlane.f32.xlu0 %v5264_v29 }
 0xbd3   :  { %5288 = vrot.lane.b32.xlu1 %v10676_v8, %s10362_s28 }
 0xbd7   :  { %5290 = vrot.lane.b32.xlu1 %v10690_v63, %s10362_s28 }
 0xbdb   :  { %5292 = vrot.lane.b32.xlu1 %v10686_v50, %s10362_s28 }
 0xbdf   :  { %5836 = vrot.lane.b32.xlu1 %v10924_v32, %s10363_s29 }
 0xbe3   :  { %5844 = vrot.lane.b32.xlu1 %v8851_v2, %s10364_s1 }
 0xc4f   :  { %v5269_v13 = vpop.xlane.xlu1 %5268 }
 0xc50   :  { %v5271_v41 = vsub.f32 %v10106_v39, %v5269_v13  ;;  %v5266_v34 = vpop.xlane.xlu0 %5265 }
 0xc51   :  { %v5270_v24 = vsub.f32 %v10107_v12, %v5266_v34 }
 0xc52   :  { %v5274_v45 = vmul.f32 1.442695, %v5271_v41 }
 0xc53   :  { %v5272_v18 = vmul.f32 1.442695, %v5270_v24  ;;  %v5289_v32 = vpop.permute.xlu1 %5288 }
 0xc54   :  { %10303 = vpow2.f32 %v5274_v45  ;;  %v5308_v27 = vand.u32 4294901760, %v5289_v32  ;;  %v10325_v45 = vld [vmem:[%s11542_s2 + $0x10] sm:$0xff] }
 0xc55   :  { %10305 = vpow2.f32 %v5272_v18  ;;  %v10326_v18 = vld [vmem:[%s11542_s2] sm:$0xff] }
 0xc56   :  { %v11026_v52 = vsub.f32 %v5289_v32, %v5308_v27 }
 0xc57   :  { %v5291_v33 = vpop.permute.xlu1 %5290 }
 0xc58   :  { %v5403_v49 = vand.u32 4294901760, %v11026_v52  ;;  %v5311_v26 = vand.u32 4294901760, %v5291_v33 }
 0xc5a   :  { %v5404_v19 = vsub.f32 %v11026_v52, %v5403_v49  ;;  %v5409_v44 = vsub.f32 %v5291_v33, %v5311_v26 }
 0xc5b   :  { %v5293_v48 = vpop.permute.xlu1 %5292 }
 0xc5c   :  { %v5314_v55 = vand.u32 4294901760, %v5293_v48  ;;  %v5405_v9 = vand.u32 4294901760, %v5404_v19  ;;  %v5410_v1 = vand.u32 4294901760, %v5409_v44 }
 0xc5e   :  { %v10304_v46 = vpop.eup %10303  ;;  %v11032_v61 = vpack.c.bf16 %v5314_v55, %v5311_v26  ;;  %v5416_v5 = vsub.f32 %v5293_v48, %v5314_v55  ;;  %v5411_v2 = vsub.f32 %v5409_v44, %v5410_v1 }
 0xc5f   :  { %v5279_v8 = vsel %vm55_vm0, %v10304_v46, 0.0  ;;  %v10306_v63 = vpop.eup %10305 }
 0xc60   :  { %5280 = vadd.xlane.f32.xlu0 %v5279_v8  ;;  %v5276_v50 = vsel %vm55_vm0, %v10306_v63, 0.0  ;;  %v5417_v28 = vand.u32 4294901760, %v5416_v5  ;;  %v5412_v11 = vand.u32 4294901760, %v5411_v2  ;;  %v9778_v29 = vpack.c.bf16 %v5416_v5, %v5409_v44  ;;  %v10328_v8 = vld [vmem:[%s11542_s2 + $0x20] sm:$0xff] }
 0xc62   :  { %v5418_v58 = vsub.f32 %v5416_v5, %v5417_v28  ;;  %v9794_v41 = vpack.c.bf16 %v5417_v28, %v5410_v1 }
 0xc64   :  { %5277 = vadd.xlane.f32.xlu0 %v5276_v50  ;;  %v5419_v16 = vand.u32 4294901760, %v5418_v58 }
 0xc66   :  { %v9770_v12 = vpack.c.bf16 %v5419_v16, %v5412_v11 }
 0xc7a   :  { %5286 = vrot.lane.b32.xlu0 %v10678_v36, %s10362_s28 }
 0xc7e   :  { %5834 = vrot.lane.b32.xlu0 %v10926_v47, %s10363_s29 }
 0xc82   :  { %5842 = vrot.lane.b32.xlu0 %v4702_v4, %s10364_s1 }
 0xced   :  { %v5281_v23 = vpop.xlane.xlu0 %5280 }
 0xcee   :  { %10307 = vrcp.f32 %v5281_v23 }
 0xcf1   :  { %v5278_v30 = vpop.xlane.xlu0 %5277 }
 0xcf2   :  { %10309 = vrcp.f32 %v5278_v30 }
 0xcf5   :  { %v5287_v51 = vpop.permute.xlu0 %5286 }
 0xcf6   :  { %v5305_v59 = vand.u32 4294901760, %v5287_v51 }
 0xcf8   :  { %v10308_v36 = vpop.eup %10307  ;;  %v11029_v42 = vpack.c.bf16 %v5308_v27, %v5305_v59  ;;  %v5395_v47 = vsub.f32 %v5287_v51, %v5305_v59 }
 0xcf9   :  { %v5285_v35 = vmul.f32 %v10308_v36, %v10304_v46  ;;  %v10327_v46 = vld [vmem:[%s11542_s2 + $0x30] sm:$0xff]  ;;  %v5835_v50 = vpop.permute.xlu0 %5834 }
 0xcfa   :  { %v5396_v0 = vand.u32 4294901760, %v5395_v47  ;;  %9759 = vmatprep.subr.bf16.mxu0 %v11029_v42  ;;  %v9774_v14 = vpack.c.bf16 %v11026_v52, %v5395_v47  ;;  %v5856_v30 = vsel %vm1353_vm1, %v10834_v20, %v5835_v50 }
 0xcfb   :  { %9761 = vmatpush3.bf16.msra.mxu0 %v11029_v42  ;;  %v5302_v6 = vsel %vm55_vm0, %v5285_v35, 0 }
 0xcfc   :  { %v10310_v7 = vpop.eup %10309  ;;  %v5397_v21 = vsub.f32 %v5395_v47, %v5396_v0  ;;  %9763 = vmatprep.subr.bf16.mxu0 %v11032_v61  ;;  %v5383_v53 = vand.u32 4294901760, %v5302_v6  ;;  %v9790_v13 = vpack.c.bf16 %v5403_v49, %v5396_v0 }
 0xcfd   :  { %v5283_v3 = vmul.f32 %v10310_v7, %v10306_v63  ;;  %v5837_v63 = vpop.permute.xlu1 %5836  ;;  %v5843_v33 = vpop.permute.xlu0 %5842 }
 0xcfe   :  { %v5398_v25 = vand.u32 4294901760, %v5397_v21  ;;  %v5384_v54 = vsub.f32 %v5302_v6, %v5383_v53  ;;  %v5857_v23 = vsel %vm1353_vm1, %v10832_v15, %v5837_v63  ;;  %v5859_v48 = vsel %vm5858_vm2, %v5856_v30, %v5843_v33 }
 0xcff   :  { %9765 = vmatpush3.bf16.msra.mxu0 %v11032_v61  ;;  %v5299_v31 = vsel %vm55_vm0, %v5283_v3, 0 }
 0xd00   :  { %v9766_v56 = vpack.c.bf16 %v5405_v9, %v5398_v25  ;;  %v5373_v62 = vand.u32 4294901760, %v5299_v31  ;;  %v5385_v37 = vand.u32 4294901760, %v5384_v54 }
 0xd01   :  { %v5845_v32 = vpop.permute.xlu1 %5844 }
 0xd02   :  { %9767 = vmatprep.subr.bf16.mxu0 %v9766_v56  ;;  %v5374_v57 = vsub.f32 %v5299_v31, %v5373_v62  ;;  %v5386_v4 = vsub.f32 %v5384_v54, %v5385_v37  ;;  %v5860_v27 = vsel %vm5858_vm2, %v5857_v23, %v5845_v32  ;;  %v10329_v32 = vld [vmem:[%s11540_s0 + $0x8] sm:$0xff]  ;;  %v10330_v23 = vld [vmem:[%s11540_s0] sm:$0xff] }
 0xd04   :  { %v5375_v60 = vand.u32 4294901760, %v5374_v57  ;;  %v5387_v38 = vand.u32 4294901760, %v5386_v4 }
 0xd06   :  { %v5376_v10 = vsub.f32 %v5374_v57, %v5375_v60 }
 0xd08   :  { %v5377_v39 = vand.u32 4294901760, %v5376_v10 }
 0xd0a   :  { %8926 = vmatprep.mubr.f32.mxu0 %v5377_v39 }
 0xd0b   :  { %8927 = vmatmul.mubr.f32.vlgmr.msra.gmra.mrb[8].mxu0 %v5387_v38 }
 0xd0c   :  { %9769 = vmatpush3.bf16.msra.mxu0 %v9766_v56  ;;  %8937 = vmatprep.mubr.f32.mxu0 %v5373_v62 }
 0xd0d   :  { %9771 = vmatprep.subr.bf16.mxu0 %v9770_v12 }
 0xd10   :  { %9773 = vmatpush3.bf16.msra.mxu0 %v9770_v12 }
 0xd11   :  { %9775 = vmatprep.subr.bf16.mxu0 %v9774_v14 }
 0xd13   :  { %8938 = vmatmul.mubr.f32.vlgmr.msra.gmra.mrb[8].mxu0 %v5383_v53 }
 0xd14   :  { %9777 = vmatpush3.bf16.msra.mxu0 %v9774_v14  ;;  %8948 = vmatprep.mubr.f32.mxu0 %v5374_v57 }
 0xd15   :  { %9779 = vmatprep.subr.bf16.mxu0 %v9778_v29 }
 0xd18   :  { %9781 = vmatpush3.bf16.msra.mxu0 %v9778_v29 }
 0xd19   :  { %9783 = vmatprep.subr.bf16.mxu0 %v11029_v42 }
 0xd1b   :  { %8949 = vmatmul.mubr.f32.vlgmr.msra.gmra.mrb[8].mxu0 %v5384_v54 }
 0xd1c   :  { %9785 = vmatpush3.bf16.msra.mxu0 %v11029_v42  ;;  %8959 = vmatprep.mubr.f32.mxu0 %v5375_v60 }
 0xd1d   :  { %9787 = vmatprep.subr.bf16.mxu0 %v11032_v61 }
 0xd20   :  { %9789 = vmatpush3.bf16.msra.mxu0 %v11032_v61 }
 0xd21   :  { %9791 = vmatprep.subr.bf16.mxu0 %v9790_v13 }
 0xd23   :  { %8960 = vmatmul.mubr.f32.vlgmr.msra.gmra.mrb[8].mxu0 %v5385_v37 }
 0xd24   :  { %9793 = vmatpush3.bf16.msra.mxu0 %v9790_v13  ;;  %8970 = vmatprep.mubr.f32.mxu0 %v5373_v62 }
 0xd25   :  { %9795 = vmatprep.subr.bf16.mxu0 %v9794_v41 }
 0xd28   :  { %9797 = vmatpush3.bf16.msra.mxu0 %v9794_v41 }
 0xd29   :  { %9799 = vmatprep.subr.bf16.mxu0 %v11029_v42 }
 0xd2b   :  { %8971 = vmatmul.mubr.f32.vlgmr.msra.gmra.mrb[8].mxu0 %v5383_v53 }
 0xd2c   :  { %9801 = vmatpush3.bf16.msra.mxu0 %v11029_v42  ;;  %8981 = vmatprep.mubr.f32.mxu0 %v5373_v62 }
 0xd2d   :  { %9803 = vmatprep.subr.bf16.mxu0 %v11032_v61 }
 0xd30   :  { %9805 = vmatpush3.bf16.msra.mxu0 %v11032_v61 }
 0xd33   :  { %8982 = vmatmul.mubr.f32.vlgmr.msra.gmra.mrb[8].mxu0 %v5383_v53 }
 0xe06   :  { %v8983_v34 = vpop.f32.mrb[8].mxu0 }
 0xe07   :  { %5852 = vrot.lane.b32.xlu1 %v8983_v34, %s10365_s30  ;;  %v5822_v24 = vpop.f32.mrb[9].mxu0 }
 0xe08   :  { %5850 = vrot.lane.b32.xlu0 %v5822_v24, %s10365_s30 }
 0xe0b   :  { %5870 = vrot.lane.b32.xlu1 %v10325_v45, %s10366_s8  ;;  %v11082_v45 = vld [vmem:[%s11544_s4 + $0x8] sm:$0xff] }
 0xe0c   :  { %5868 = vrot.lane.b32.xlu0 %v10326_v18, %s10366_s8  ;;  %v5867_v18 = vrot.slane %v11082_v45, %v85_v40 }
 0xe0f   :  { %5874 = vrot.lane.b32.xlu1 %v10327_v46, %s10366_s8 }
 0xe10   :  { %5872 = vrot.lane.b32.xlu0 %v10328_v8, %s10366_s8 }
 0xe79   :  { %v5853_v52 = vpop.permute.xlu1 %5852 }
 0xe7a   :  { %v5863_v51 = vsel %vm5861_vm3, %v5860_v27, %v5853_v52  ;;  %v5851_v49 = vpop.permute.xlu0 %5850 }
 0xe7b   :  { %v5884_v55 = vsel %vm55_vm0, %v5863_v51, 0  ;;  %v5862_v59 = vsel %vm5861_vm3, %v5859_v48, %v5851_v49 }
 0xe7c   :  { %v11066_v36 = vand.u32 4294901760, %v5884_v55  ;;  %v5881_v26 = vsel %vm55_vm0, %v5862_v59, 0 }
 0xe7d   :  { %v11069_v42 = vand.u32 4294901760, %v5881_v26  ;;  %v5871_v47 = vpop.permute.xlu1 %5870 }
 0xe7e   :  { %v5966_v15 = vsub.f32 %v5884_v55, %v11066_v36  ;;  %v5890_v35 = vand.u32 4294901760, %v5871_v47  ;;  %v5869_v19 = vpop.permute.xlu0 %5868 }
 0xe7f   :  { %v5956_v20 = vsub.f32 %v5881_v26, %v11069_v42  ;;  %v5887_v61 = vand.u32 4294901760, %v5869_v19 }
 0xe80   :  { %v5967_v0 = vand.u32 4294901760, %v5966_v15  ;;  %v5984_v5 = vsub.f32 %v5871_v47, %v5890_v35 }
 0xe81   :  { %v9806_v6 = vpack.c.bf16 %v5890_v35, %v5887_v61  ;;  %v5977_v7 = vsub.f32 %v5869_v19, %v5887_v61  ;;  %v5875_v21 = vpop.permute.xlu1 %5874  ;;  %v5957_v53 = vand.u32 4294901760, %v5956_v20  ;;  %v30_v35 = vld [vmem:[%s11542_s2 + $0x18] sm:$0xff]  ;;  %v32_v19 = vld [vmem:[%s11542_s2 + $0x28] sm:$0xff] }
 0xe82   :  { %v5985_v44 = vand.u32 4294901760, %v5984_v5  ;;  %v5896_v3 = vand.u32 4294901760, %v5875_v21  ;;  %v5873_v25 = vpop.permute.xlu0 %5872  ;;  %v5968_v62 = vsub.f32 %v5966_v15, %v5967_v0  ;;  %v6468_v61 = vand.u32 4294901760, %v30_v35 }
 0xe83   :  { %v5978_v9 = vand.u32 4294901760, %v5977_v7  ;;  %v5893_v54 = vand.u32 4294901760, %v5873_v25  ;;  %9807 = vmatprep.subr.bf16.mxu0 %v9806_v6  ;;  %v5958_v28 = vsub.f32 %v5956_v20, %v5957_v53  ;;  %v9822_v13 = vpack.c.bf16 %v5984_v5, %v5977_v7 }
 0xe84   :  { %v5986_v31 = vsub.f32 %v5984_v5, %v5985_v44  ;;  %v5998_v56 = vsub.f32 %v5875_v21, %v5896_v3  ;;  %9809 = vmatpush3.bf16.msra.mxu0 %v9806_v6  ;;  %v5969_v38 = vand.u32 4294901760, %v5968_v62  ;;  %v6471_v5 = vand.u32 4294901760, %v32_v19 }
 0xe85   :  { %v5979_v1 = vsub.f32 %v5977_v7, %v5978_v9  ;;  %v9810_v37 = vpack.c.bf16 %v5896_v3, %v5893_v54  ;;  %v5991_v57 = vsub.f32 %v5873_v25, %v5893_v54  ;;  %v5959_v58 = vand.u32 4294901760, %v5958_v28 }
 0xe86   :  { %v5999_v60 = vand.u32 4294901760, %v5998_v56  ;;  %v5987_v2 = vand.u32 4294901760, %v5986_v31  ;;  %v9838_v34 = vpack.c.bf16 %v5985_v44, %v5978_v9  ;;  %v6562_v44 = vsub.f32 %v30_v35, %v6468_v61 }
 0xe87   :  { %v5992_v4 = vand.u32 4294901760, %v5991_v57  ;;  %9811 = vmatprep.subr.bf16.mxu0 %v9810_v37  ;;  %8992 = vmatprep.mubr.f32.mxu0 %v5959_v58  ;;  %v5980_v10 = vand.u32 4294901760, %v5979_v1  ;;  %v9826_v41 = vpack.c.bf16 %v5998_v56, %v5991_v57  ;;  %v6569_v28 = vsub.f32 %v32_v19, %v6471_v5 }
 0xe88   :  { %v6000_v16 = vsub.f32 %v5998_v56, %v5999_v60  ;;  %9813 = vmatpush3.bf16.msra.mxu0 %v9810_v37  ;;  %v6563_v25 = vand.u32 4294901760, %v6562_v44 }
 0xe89   :  { %v5993_v39 = vsub.f32 %v5991_v57, %v5992_v4  ;;  %v9814_v11 = vpack.c.bf16 %v5987_v2, %v5980_v10  ;;  %v9842_v24 = vpack.c.bf16 %v5999_v60, %v5992_v4  ;;  %v6570_v1 = vand.u32 4294901760, %v6569_v28 }
 0xe8a   :  { %v6001_v12 = vand.u32 4294901760, %v6000_v16  ;;  %v6564_v54 = vsub.f32 %v6562_v44, %v6563_v25 }
 0xe8b   :  { %8993 = vmatmul.mubr.f32.vlgmr.msra.gmra.mrb[10].mxu0 %v5969_v38  ;;  %9815 = vmatprep.subr.bf16.mxu0 %v9814_v11  ;;  %v5994_v14 = vand.u32 4294901760, %v5993_v39  ;;  %v6571_v58 = vsub.f32 %v6569_v28, %v6570_v1 }
 0xe8c   :  { %9817 = vmatpush3.bf16.msra.mxu0 %v9814_v11  ;;  %9003 = vmatprep.mubr.f32.mxu0 %v11069_v42  ;;  %v6565_v62 = vand.u32 4294901760, %v6564_v54  ;;  %v11183_v54 = vld [vmem:[%s11543_s3 + $0x20] sm:$0xff] }
 0xe8d   :  { %v9818_v29 = vpack.c.bf16 %v6001_v12, %v5994_v14  ;;  %v6572_v2 = vand.u32 4294901760, %v6571_v58 }
 0xe8f   :  { %9819 = vmatprep.subr.bf16.mxu0 %v9818_v29 }
 0xe90   :  { %9821 = vmatpush3.bf16.msra.mxu0 %v9818_v29 }
 0xe91   :  { %9823 = vmatprep.subr.bf16.mxu0 %v9822_v13 }
 0xe93   :  { %9004 = vmatmul.mubr.f32.vlgmr.msra.gmra.mrb[10].mxu0 %v11066_v36 }
 0xe94   :  { %9825 = vmatpush3.bf16.msra.mxu0 %v9822_v13  ;;  %9014 = vmatprep.mubr.f32.mxu0 %v5956_v20 }
 0xe95   :  { %9827 = vmatprep.subr.bf16.mxu0 %v9826_v41 }
 0xe98   :  { %9829 = vmatpush3.bf16.msra.mxu0 %v9826_v41 }
 0xe99   :  { %9831 = vmatprep.subr.bf16.mxu0 %v9806_v6 }
 0xe9b   :  { %9015 = vmatmul.mubr.f32.vlgmr.msra.gmra.mrb[10].mxu0 %v5966_v15  ;;  %v28_v15 = vld [vmem:[%s11542_s2 + $0x8] sm:$0xff] }
 0xe9c   :  { %9833 = vmatpush3.bf16.msra.mxu0 %v9806_v6  ;;  %9025 = vmatprep.mubr.f32.mxu0 %v5957_v53  ;;  %v6465_v20 = vand.u32 4294901760, %v28_v15 }
 0xe9d   :  { %9835 = vmatprep.subr.bf16.mxu0 %v9810_v37 }
 0xe9e   :  { %v11117_v7 = vpack.c.bf16 %v6468_v61, %v6465_v20  ;;  %v6555_v53 = vsub.f32 %v28_v15, %v6465_v20 }
 0xea0   :  { %9837 = vmatpush3.bf16.msra.mxu0 %v9810_v37  ;;  %9855 = vmatprep.subr.bf16.mxu1 %v11117_v7  ;;  %v6556_v3 = vand.u32 4294901760, %v6555_v53  ;;  %v9870_v16 = vpack.c.bf16 %v6562_v44, %v6555_v53  ;;  %v11166_v44 = vld [vmem:[%s11543_s3 + $0x18] sm:$0xff] }
 0xea1   :  { %9839 = vmatprep.subr.bf16.mxu0 %v9838_v34  ;;  %9857 = vmatpush3.bf16.msra.mxu1 %v11117_v7 }
 0xea2   :  { %v6557_v9 = vsub.f32 %v6555_v53, %v6556_v3  ;;  %v9886_v38 = vpack.c.bf16 %v6563_v25, %v6556_v3  ;;  %v11161_v53 = vld [vmem:[%s11543_s3 + $0x10] sm:$0xff]  ;;  %v7060_v25 = vand.u32 4294901760, %v11166_v44 }
 0xea3   :  { %9026 = vmatmul.mubr.f32.vlgmr.msra.gmra.mrb[10].mxu0 %v5967_v0  ;;  %v34_v0 = vld [vmem:[%s11542_s2 + $0x38] sm:$0xff]  ;;  %v7057_v3 = vand.u32 4294901760, %v11161_v53 }
 0xea4   :  { %9841 = vmatpush3.bf16.msra.mxu0 %v9838_v34  ;;  %9036 = vmatprep.mubr.f32.mxu0 %v11069_v42  ;;  %v6558_v56 = vand.u32 4294901760, %v6557_v9 }
 0xea5   :  { %9843 = vmatprep.subr.bf16.mxu0 %v9842_v24  ;;  %v11178_v9 = vpack.c.bf16 %v7060_v25, %v7057_v3 }
 0xea6   :  { %v9862_v57 = vpack.c.bf16 %v6565_v62, %v6558_v56 }
 0xea8   :  { %9845 = vmatpush3.bf16.msra.mxu0 %v9842_v24  ;;  %v6444_v24 = vsub.s32 4, %v10490_v17 }
 0xea9   :  { %9847 = vmatprep.subr.bf16.mxu0 %v9806_v6 }
 0xeab   :  { %9037 = vmatmul.mubr.f32.vlgmr.msra.gmra.mrb[10].mxu0 %v11066_v36 }
 0xeac   :  { %9849 = vmatpush3.bf16.msra.mxu0 %v9806_v6  ;;  %9047 = vmatprep.mubr.f32.mxu0 %v11069_v42  ;;  %v6474_v6 = vand.u32 4294901760, %v34_v0 }
 0xead   :  { %9851 = vmatprep.subr.bf16.mxu0 %v9810_v37 }
 0xeae   :  { %v11119_v21 = vpack.c.bf16 %v6474_v6, %v6471_v5  ;;  %v6576_v31 = vsub.f32 %v34_v0, %v6474_v6  ;;  %v11148_v5 = vld [vmem:[%s11543_s3 + $0x8] sm:$0xff] }
 0xeb0   :  { %9853 = vmatpush3.bf16.msra.mxu0 %v9810_v37  ;;  %9859 = vmatprep.subr.bf16.mxu1 %v11119_v21  ;;  %v6577_v37 = vand.u32 4294901760, %v6576_v31  ;;  %v9874_v39 = vpack.c.bf16 %v6576_v31, %v6569_v28  ;;  %v11188_v28 = vld [vmem:[%s11543_s3 + $0x28] sm:$0xff] }
 0xeb1   :  { %9861 = vmatpush3.bf16.msra.mxu1 %v11119_v21  ;;  %v7066_v56 = vand.u32 4294901760, %v11188_v28 }
 0xeb2   :  { %v6578_v60 = vsub.f32 %v6576_v31, %v6577_v37  ;;  %9863 = vmatprep.subr.bf16.mxu1 %v9862_v57  ;;  %v9890_v11 = vpack.c.bf16 %v6577_v37, %v6570_v1  ;;  %v7063_v31 = vand.u32 4294901760, %v11183_v54  ;;  %v11205_v1 = vld [vmem:[%s11543_s3 + $0x30] sm:$0xff]  ;;  %v11210_v37 = vld [vmem:[%s11543_s3 + $0x38] sm:$0xff] }
 0xeb3   :  { %9048 = vmatmul.mubr.f32.vlgmr.msra.gmra.mrb[10].mxu0 %v11066_v36  ;;  %v7072_v58 = vand.u32 4294901760, %v11210_v37 }
 0xeb4   :  { %v6579_v4 = vand.u32 4294901760, %v6578_v60  ;;  %v11200_v62 = vpack.c.bf16 %v7066_v56, %v7063_v31 }
 0xeb6   :  { %v9866_v10 = vpack.c.bf16 %v6579_v4, %v6572_v2  ;;  %v11227_v2 = vld [vmem:[%s11543_s3 + $0x40] sm:$0xff]  ;;  %v11232_v4 = vld [vmem:[%s11543_s3 + $0x48] sm:$0xff] }
 0xf86   :  { %v9049_v46 = vpop.f32.mrb[10].mxu0 }
 0xf87   :  { %v10108_v8 = vadd.f32 %v9049_v46, %v5867_v18  ;;  %v6404_v63 = vpop.f32.mrb[11].mxu0  ;;  %v10331_v46 = vld [vmem:[%s11544_s4] sm:$0xff] }
 0xf88   :  { %v10109_v50 = vadd.f32 %v6404_v63, %v5867_v18  ;;  %v6450_v18 = vsub.s32 5, %v10490_v17 }
 0xf89   :  { %v11090_v33 = vadd.f32 %v10329_v32, %v10108_v8  ;;  %v6445_v8 = vrot.slane %v10331_v46, %v6444_v24 }
 0xf8a   :  { %v11095_v27 = vadd.f32 %v10330_v23, %v10109_v50  ;;  %v6451_v32 = vrot.slane %v10331_v46, %v6450_v18  ;;  %v11293_v46 = vld [vmem:[%s11543_s3 + $0x70] sm:$0xff] }
 0xf8b   :  { %v6419_v30 = vsel %vm55_vm0, %v11090_v33, 0.0 }
 0xf8c   :  { %6420 = vadd.xlane.f32.xlu1 %v6419_v30  ;;  %v6416_v40 = vsel %vm55_vm0, %v11095_v27, 0.0 }
 0xf8d   :  { %6417 = vadd.xlane.f32.xlu0 %v6416_v40 }
0x1019   :  { %v6421_v52 = vpop.xlane.xlu1 %6420 }
0x101a   :  { %v6423_v48 = vmul.f32 0.03125, %v6421_v52  ;;  %v6418_v51 = vpop.xlane.xlu0 %6417 }
0x101b   :  { %v6422_v49 = vmul.f32 0.03125, %v6418_v51 }
0x101c   :  { %v6425_v55 = vsub.f32 %v11090_v33, %v6423_v48 }
0x101d   :  { %v6424_v59 = vsub.f32 %v11095_v27, %v6422_v49 }
0x101e   :  { %v6427_v42 = vmul.f32 %v6425_v55, %v6425_v55 }
0x101f   :  { %v6426_v36 = vmul.f32 %v6424_v59, %v6424_v59 }
0x1020   :  { %v6431_v47 = vsel %vm55_vm0, %v6427_v42, 0.0 }
0x1021   :  { %v6428_v26 = vsel %vm55_vm0, %v6426_v36, 0.0 }
0x1022   :  { %6429 = vadd.xlane.f32.xlu0 %v6428_v26 }
0x1026   :  { %6432 = vadd.xlane.f32.xlu0 %v6431_v47 }
0x10af   :  { %v6430_v12 = vpop.xlane.xlu0 %6429 }
0x10b0   :  { %v6434_v14 = vmul.f32 0.03125, %v6430_v12 }
0x10b2   :  { %v6436_v29 = vadd.f32 1e-05, %v6434_v14 }
0x10b3   :  { %v6433_v13 = vpop.xlane.xlu0 %6432 }
0x10b4   :  { %10311 = vrsqrt.f32 %v6436_v29  ;;  %v6435_v41 = vmul.f32 0.03125, %v6433_v13  ;;  %v11271_v13 = vld [vmem:[%s11543_s3 + $0x60] sm:$0xff] }
0x10b6   :  { %v6437_v34 = vadd.f32 1e-05, %v6435_v41  ;;  %v11276_v41 = vld [vmem:[%s11543_s3 + $0x68] sm:$0xff] }
0x10b7   :  { %v7090_v24 = vand.u32 4294901760, %v11276_v41 }
0x10b8   :  { %10313 = vrsqrt.f32 %v6437_v34  ;;  %v7087_v34 = vand.u32 4294901760, %v11271_v13 }
0x10ba   :  { %v11288_v18 = vpack.c.bf16 %v7090_v24, %v7087_v34 }
0x10be   :  { %v10312_v63 = vpop.eup %10311 }
0x10bf   :  { %v6440_v50 = vmul.f32 %v10312_v63, %v6424_v59  ;;  %v7093_v63 = vand.u32 4294901760, %v11293_v46 }
0x10c1   :  { %v6446_v23 = vmul.f32 %v6445_v8, %v6440_v50 }
0x10c2   :  { %v10314_v30 = vpop.eup %10313 }
0x10c3   :  { %v6441_v40 = vmul.f32 %v10314_v30, %v6425_v55  ;;  %v6452_v52 = vadd.f32 %v6451_v32, %v6446_v23  ;;  %v11143_v55 = vld [vmem:[%s11543_s3] sm:$0xff] }
0x10c4   :  { %v7051_v6 = vand.u32 4294901760, %v11143_v55 }
0x10c5   :  { %v6447_v48 = vmul.f32 %v6445_v8, %v6441_v40  ;;  %v6459_v51 = vsel %vm55_vm0, %v6452_v52, 0  ;;  %v11298_v8 = vld [vmem:[%s11543_s3 + $0x78] sm:$0xff] }
0x10c6   :  { %v6533_v49 = vand.u32 4294901760, %v6459_v51  ;;  %v7096_v50 = vand.u32 4294901760, %v11298_v8  ;;  %v11315_v23 = vsub.f32 %v11143_v55, %v7051_v6 }
0x10c7   :  { %v6453_v36 = vadd.f32 %v6451_v32, %v6447_v48 }
0x10c8   :  { %v6534_v26 = vsub.f32 %v6459_v51, %v6533_v49  ;;  %v11310_v32 = vpack.c.bf16 %v7096_v50, %v7093_v63  ;;  %v7154_v40 = vand.u32 4294901760, %v11315_v23 }
0x10c9   :  { %v6462_v42 = vsel %vm55_vm0, %v6453_v36, 0  ;;  %v11335_v36 = vsub.f32 %v11161_v53, %v7057_v3 }
0x10ca   :  { %v6535_v47 = vand.u32 4294901760, %v6534_v26  ;;  %v6543_v15 = vand.u32 4294901760, %v6462_v42  ;;  %v7155_v51 = vsub.f32 %v11315_v23, %v7154_v40 }
0x10cc   :  { %v6536_v35 = vsub.f32 %v6534_v26, %v6535_v47  ;;  %v6544_v19 = vsub.f32 %v6462_v42, %v6543_v15  ;;  %v7156_v42 = vand.u32 4294901760, %v7155_v51 }
0x10ce   :  { %v6537_v20 = vand.u32 4294901760, %v6536_v35  ;;  %v6545_v61 = vand.u32 4294901760, %v6544_v19 }
0x10d0   :  { %9058 = vmatprep.mubr.f32.mxu1 %v6537_v20  ;;  %v6546_v59 = vsub.f32 %v6544_v19, %v6545_v61 }
0x10d2   :  { %v6547_v0 = vand.u32 4294901760, %v6546_v59  ;;  %v11356_v59 = vsub.f32 %v11188_v28, %v7066_v56 }
0x10d4   :  { %9059 = vmatmul.mubr.f32.vlgmr.msra.gmra.mrb[12].mxu1 %v6547_v0 }
0x10d5   :  { %9865 = vmatpush3.bf16.msra.mxu1 %v9862_v57  ;;  %9069 = vmatprep.mubr.f32.mxu1 %v6533_v49  ;;  %v7069_v57 = vand.u32 4294901760, %v11205_v1 }
0x10d6   :  { %9867 = vmatprep.subr.bf16.mxu1 %v9866_v10 }
0x10d7   :  { %v11222_v60 = vpack.c.bf16 %v7072_v58, %v7069_v57 }
0x10d9   :  { %9869 = vmatpush3.bf16.msra.mxu1 %v9866_v10  ;;  %v7075_v10 = vand.u32 4294901760, %v11227_v2 }
0x10da   :  { %9871 = vmatprep.subr.bf16.mxu1 %v9870_v16 }
0x10dc   :  { %9070 = vmatmul.mubr.f32.vlgmr.msra.gmra.mrb[12].mxu1 %v6543_v15 }
0x10dd   :  { %9873 = vmatpush3.bf16.msra.mxu1 %v9870_v16  ;;  %9080 = vmatprep.mubr.f32.mxu1 %v6534_v26  ;;  %v7078_v16 = vand.u32 4294901760, %v11232_v4  ;;  %v11340_v26 = vsub.f32 %v11166_v44, %v7060_v25 }
0x10de   :  { %9875 = vmatprep.subr.bf16.mxu1 %v9874_v39 }
0x10df   :  { %v7175_v35 = vand.u32 4294901760, %v11340_v26 }
0x10e1   :  { %9877 = vmatpush3.bf16.msra.mxu1 %v9874_v39  ;;  %v11244_v39 = vpack.c.bf16 %v7078_v16, %v7075_v10  ;;  %v7176_v55 = vsub.f32 %v11340_v26, %v7175_v35 }
0x10e2   :  { %9879 = vmatprep.subr.bf16.mxu1 %v11117_v7 }
0x10e3   :  { %v7177_v53 = vand.u32 4294901760, %v7176_v55 }
0x10e4   :  { %9081 = vmatmul.mubr.f32.vlgmr.msra.gmra.mrb[12].mxu1 %v6544_v19 }
0x10e5   :  { %9881 = vmatpush3.bf16.msra.mxu1 %v11117_v7  ;;  %9091 = vmatprep.mubr.f32.mxu1 %v6535_v47 }
0x10e6   :  { %9883 = vmatprep.subr.bf16.mxu1 %v11119_v21 }
0x10e9   :  { %9885 = vmatpush3.bf16.msra.mxu1 %v11119_v21 }
0x10ea   :  { %9887 = vmatprep.subr.bf16.mxu1 %v9886_v38 }
0x10ec   :  { %9092 = vmatmul.mubr.f32.vlgmr.msra.gmra.mrb[12].mxu1 %v6545_v61  ;;  %v11351_v61 = vsub.f32 %v11183_v54, %v7063_v31  ;;  %v7195_v54 = vsub.f32 %v11205_v1, %v7069_v57  ;;  %v7202_v31 = vsub.f32 %v11210_v37, %v7072_v58  ;;  %v7216_v1 = vsub.f32 %v11232_v4, %v7078_v16 }
0x10ed   :  { %9889 = vmatpush3.bf16.msra.mxu1 %v9886_v38  ;;  %9102 = vmatprep.mubr.f32.mxu1 %v6533_v49  ;;  %v11249_v38 = vld [vmem:[%s11543_s3 + $0x50] sm:$0xff] }
0x10ee   :  { %9891 = vmatprep.subr.bf16.mxu1 %v9890_v11  ;;  %v7081_v12 = vand.u32 4294901760, %v11249_v38  ;;  %v7203_v51 = vand.u32 4294901760, %v7202_v31  ;;  %v7217_v58 = vand.u32 4294901760, %v7216_v1 }
0x10f1   :  { %9893 = vmatpush3.bf16.msra.mxu1 %v9890_v11  ;;  %v11254_v11 = vld [vmem:[%s11543_s3 + $0x58] sm:$0xff]  ;;  %s10367_s3 = smov [#allocation2]  }
0x10f2   :  { %9895 = vmatprep.subr.bf16.mxu1 %v11117_v7  ;;  %v7084_v14 = vand.u32 4294901760, %v11254_v11  ;;  %s7743_s7 = sshll.u32 %s10367_s3, 4  ;;  %s7744_s7 = int_to_ptr.vmem [resolvable:$true] %s7743_s7 }
0x10f3   :  { %s10332_s8 = scalar_lea.vmem %s7744_s7, 256  ;;  %p10337_p1 = scmp.lt.s32.totalorder %s7744_s7, %s7744_s7 }
0x10f4   :  { %9103 = vmatmul.mubr.f32.vlgmr.msra.gmra.mrb[12].mxu1 %v6543_v15  ;;  %v11266_v29 = vpack.c.bf16 %v7084_v14, %v7081_v12  ;;  %v7230_v4 = vsub.f32 %v11254_v11, %v7084_v14  ;;  %p10333_p0 = scmp.ne.s32.totalorder %s7744_s7, %s10332_s8  ;;  %p10338_p2 = scmp.lt.s32.totalorder %s10332_s8, %s10332_s8 }
0x10f5   :  { %9897 = vmatpush3.bf16.msra.mxu1 %v11117_v7  ;;  %9113 = vmatprep.mubr.f32.mxu1 %v6533_v49  ;;  %v7054_v7 = vand.u32 4294901760, %v11148_v5 }
0x10f6   :  { %9899 = vmatprep.subr.bf16.mxu1 %v11119_v21  ;;  %p10339_p3 = por %p10338_p2, %p10337_p1 }
0x10f7   :  { %v11320_v30 = vsub.f32 %v11148_v5, %v7054_v7 }
0x10f8   :  { %p10340_p4 = pnand %p10339_p3, %p10333_p0 }
0x10f9   :  { %9901 = vmatpush3.bf16.msra.mxu1 %v11119_v21  ;;  %v11156_v21 = vpack.c.bf16 %v7054_v7, %v7051_v6  ;;  %v7161_v52 = vand.u32 4294901760, %v11320_v30  ;;  %v7182_v6 = vand.u32 4294901760, %v11351_v61  ;;  %v7189_v7 = vand.u32 4294901760, %v11356_v59 }
0x10fb   :  { %9999 = vmatprep.subr.bf16.mxu0 %v11156_v21  ;;  %9903 = vmatprep.subr.bf16.mxu1 %v11156_v21  ;;  %v11328_v48 = vpack.c.bf16 %v7161_v52, %v7154_v40  ;;  %v7162_v49 = vsub.f32 %v11320_v30, %v7161_v52  ;;  %v11364_v44 = vpack.c.bf16 %v7189_v7, %v7182_v6  ;;  %v7196_v52 = vand.u32 4294901760, %v7195_v54 }
0x10fc   :  { %9114 = vmatmul.mubr.f32.vlgmr.msra.gmra.mrb[12].mxu1 %v6543_v15  ;;  %10001 = vmatpush3.bf16.msra.mxu0 %v11156_v21  ;;  %v7168_v15 = vand.u32 4294901760, %v11335_v36  ;;  %v7183_v3 = vsub.f32 %v11351_v61, %v7182_v6  ;;  %v7190_v25 = vsub.f32 %v11356_v59, %v7189_v7  ;;  %v7218_v6 = vsub.f32 %v7216_v1, %v7217_v58 }
0x10fd   :  { %9905 = vmatpush3.bf16.msra.mxu1 %v11156_v21  ;;  %10003 = vmatprep.subr.bf16.mxu0 %v11178_v9  ;;  %v7163_v47 = vand.u32 4294901760, %v7162_v49  ;;  %v11384_v57 = vpack.c.bf16 %v7203_v51, %v7196_v52  ;;  %v7223_v7 = vsub.f32 %v11249_v38, %v7081_v12  ;;  %v7244_v38 = vsub.f32 %v11276_v41, %v7090_v24 }
0x10fe   :  { %9907 = vmatprep.subr.bf16.mxu1 %v11178_v9  ;;  %v7169_v20 = vsub.f32 %v11335_v36, %v7168_v15  ;;  %v11358_v0 = vpack.c.bf16 %v7175_v35, %v7168_v15  ;;  %v7184_v56 = vand.u32 4294901760, %v7183_v3  ;;  %v7191_v40 = vand.u32 4294901760, %v7190_v25 }
0x10ff   :  { %v11345_v19 = vpack.c.bf16 %v7163_v47, %v7156_v42  ;;  %v7197_v42 = vsub.f32 %v7195_v54, %v7196_v52  ;;  %v7209_v47 = vsub.f32 %v11227_v2, %v7075_v10  ;;  %v7204_v15 = vsub.f32 %v7202_v31, %v7203_v51 }
0x1100   :  { %10005 = vmatpush3.bf16.msra.mxu0 %v11178_v9  ;;  %v7170_v5 = vand.u32 4294901760, %v7169_v20  ;;  %v11376_v49 = vpack.c.bf16 %v7191_v40, %v7184_v56  ;;  %v7219_v16 = vand.u32 4294901760, %v7218_v6  ;;  %v7231_v3 = vand.u32 4294901760, %v7230_v4 }
0x1101   :  { %9909 = vmatpush3.bf16.msra.mxu1 %v11178_v9  ;;  %10007 = vmatprep.subr.bf16.mxu0 %v11200_v62  ;;  %v7198_v35 = vand.u32 4294901760, %v7197_v42  ;;  %v7210_v37 = vand.u32 4294901760, %v7209_v47  ;;  %v7205_v20 = vand.u32 4294901760, %v7204_v15  ;;  %v7237_v40 = vsub.f32 %v11271_v13, %v7087_v34 }
0x1102   :  { %9911 = vmatprep.subr.bf16.mxu1 %v11200_v62  ;;  %v11371_v28 = vpack.c.bf16 %v7177_v53, %v7170_v5  ;;  %v7224_v53 = vand.u32 4294901760, %v7223_v7  ;;  %v7232_v52 = vsub.f32 %v7230_v4, %v7231_v3  ;;  %v7245_v14 = vand.u32 4294901760, %v7244_v38 }
0x1103   :  { %v11386_v55 = vpack.c.bf16 %v7217_v58, %v7210_v37  ;;  %v7211_v5 = vsub.f32 %v7209_v47, %v7210_v37  ;;  %v11391_v2 = vpack.c.bf16 %v7205_v20, %v7198_v35  ;;  %v7238_v11 = vand.u32 4294901760, %v7237_v40 }
0x1104   :  { %10009 = vmatpush3.bf16.msra.mxu0 %v11200_v62  ;;  %v7225_v56 = vsub.f32 %v7223_v7, %v7224_v53  ;;  %v11404_v12 = vpack.c.bf16 %v7231_v3, %v7224_v53  ;;  %v7233_v42 = vand.u32 4294901760, %v7232_v52  ;;  %v7246_v37 = vsub.f32 %v7244_v38, %v7245_v14 }
0x1105   :  { %9913 = vmatpush3.bf16.msra.mxu1 %v11200_v62  ;;  %10011 = vmatprep.subr.bf16.mxu0 %v11222_v60  ;;  %v7212_v10 = vand.u32 4294901760, %v7211_v5  ;;  %v11406_v15 = vpack.c.bf16 %v7245_v14, %v7238_v11  ;;  %v7239_v35 = vsub.f32 %v7237_v40, %v7238_v11  ;;  %v7251_v58 = vsub.f32 %v11293_v46, %v7093_v63 }
0x1106   :  { %9915 = vmatprep.subr.bf16.mxu1 %v11222_v60  ;;  %v7226_v51 = vand.u32 4294901760, %v7225_v56  ;;  %v7258_v41 = vsub.f32 %v11298_v8, %v7096_v50  ;;  %v7247_v24 = vand.u32 4294901760, %v7246_v37  ;;  %v11424_v46 = vpack.c.bf16 %v11320_v30, %v11315_v23 }
0x1107   :  { %v11396_v25 = vpack.c.bf16 %v7219_v16, %v7212_v10  ;;  %v7240_v34 = vand.u32 4294901760, %v7239_v35  ;;  %v7252_v20 = vand.u32 4294901760, %v7251_v58  ;;  %v11428_v8 = vpack.c.bf16 %v11340_v26, %v11335_v36 }
0x1108   :  { %10013 = vmatpush3.bf16.msra.mxu0 %v11222_v60  ;;  %v11411_v13 = vpack.c.bf16 %v7233_v42, %v7226_v51  ;;  %v7259_v5 = vand.u32 4294901760, %v7258_v41  ;;  %v11432_v63 = vpack.c.bf16 %v11356_v59, %v11351_v61  ;;  %v11434_v50 = vpack.c.bf16 %v7202_v31, %v7195_v54 }
0x1109   :  { %9917 = vmatpush3.bf16.msra.mxu1 %v11222_v60  ;;  %10015 = vmatprep.subr.bf16.mxu0 %v11244_v39  ;;  %v11416_v6 = vpack.c.bf16 %v7247_v24, %v7240_v34  ;;  %v7253_v10 = vsub.f32 %v7251_v58, %v7252_v20  ;;  %v11436_v51 = vpack.c.bf16 %v7216_v1, %v7209_v47 }
0x110a   :  { %9919 = vmatprep.subr.bf16.mxu1 %v11244_v39  ;;  %v11418_v16 = vpack.c.bf16 %v7259_v5, %v7252_v20  ;;  %v7260_v53 = vsub.f32 %v7258_v41, %v7259_v5  ;;  %v11438_v11 = vpack.c.bf16 %v7230_v4, %v7223_v7  ;;  %v11440_v14 = vpack.c.bf16 %v7244_v38, %v7237_v40 }
0x110b   :  { %v7254_v3 = vand.u32 4294901760, %v7253_v10  ;;  %v11442_v42 = vpack.c.bf16 %v7258_v41, %v7251_v58  ;;  %v6457_v23 = vrot.slane %v11082_v45, %v91_v43 }
0x110c   :  { %10017 = vmatpush3.bf16.msra.mxu0 %v11244_v39  ;;  %v7261_v56 = vand.u32 4294901760, %v7260_v53 }
0x110d   :  { %9921 = vmatpush3.bf16.msra.mxu1 %v11244_v39  ;;  %10019 = vmatprep.subr.bf16.mxu0 %v11266_v29 }
0x110e   :  { %9923 = vmatprep.subr.bf16.mxu1 %v11266_v29  ;;  %v11420_v52 = vpack.c.bf16 %v7261_v56, %v7254_v3 }
0x1110   :  { %10021 = vmatpush3.bf16.msra.mxu0 %v11266_v29 }
0x1111   :  { %9925 = vmatpush3.bf16.msra.mxu1 %v11266_v29  ;;  %10023 = vmatprep.subr.bf16.mxu0 %v11288_v18 }
0x1112   :  { %9927 = vmatprep.subr.bf16.mxu1 %v11288_v18 }
0x1114   :  { %10025 = vmatpush3.bf16.msra.mxu0 %v11288_v18 }
0x1115   :  { %9929 = vmatpush3.bf16.msra.mxu1 %v11288_v18  ;;  %10027 = vmatprep.subr.bf16.mxu0 %v11310_v32 }
0x1116   :  { %9931 = vmatprep.subr.bf16.mxu1 %v11310_v32 }
0x1118   :  { %10029 = vmatpush3.bf16.msra.mxu0 %v11310_v32 }
0x1119   :  { %9933 = vmatpush3.bf16.msra.mxu1 %v11310_v32  ;;  %10031 = vmatprep.subr.bf16.mxu0 %v11328_v48 }
0x111a   :  { %9935 = vmatprep.subr.bf16.mxu1 %v11345_v19 }
0x11cf   :  { %v9115_v30 = vpop.f32.mrb[12].mxu1 }
0x11d0   :  { %v10110_v36 = vadd.f32 %v9115_v30, %v6457_v23  ;;  %v6982_v26 = vpop.f32.mrb[13].mxu1 }
0x11d1   :  { %v10111_v35 = vadd.f32 %v6982_v26, %v6457_v23 }
0x11d2   :  { %v6995_v61 = vmul.f32 0.70710677, %v10110_v36 }
0x11d3   :  { %v6994_v59 = vmul.f32 0.70710677, %v10111_v35 }
0x11d4   :  { %v6997_v54 = vand.u32 2147483647, %v6995_v61  ;;  %vm7037_vm4 = vcmp.ge.f32.partialorder %v6995_v61, 0.0 }
0x11d5   :  { %v6996_v31 = vand.u32 2147483647, %v6994_v59  ;;  %vm7036_vm5 = vcmp.ge.f32.partialorder %v6994_v59, 0.0 }
0x11d6   :  { %v6999_v47 = vmul.f32 0.3275911, %v6997_v54  ;;  %v7025_v40 = vsub.f32 0.0, %v6997_v54 }
0x11d7   :  { %v6998_v1 = vmul.f32 0.3275911, %v6996_v31  ;;  %v7024_v38 = vsub.f32 0.0, %v6996_v31 }
0x11d8   :  { %v7001_v7 = vadd.f32 1.0, %v6999_v47  ;;  %v7027_v58 = vmul.f32 %v7025_v40, %v6997_v54 }
0x11d9   :  { %v7000_v4 = vadd.f32 1.0, %v6998_v1  ;;  %v7026_v34 = vmul.f32 %v7024_v38, %v6996_v31 }
0x11da   :  { %10315 = vrcp.f32 %v7001_v7  ;;  %v7030_v5 = vmul.f32 1.442695, %v7027_v58 }
0x11db   :  { %10317 = vrcp.f32 %v7000_v4  ;;  %v7028_v3 = vmul.f32 1.442695, %v7026_v34 }
0x11dc   :  { %10319 = vpow2.f32 %v7030_v5 }
0x11dd   :  { %10321 = vpow2.f32 %v7028_v3  ;;  %v6993_v3 = vmul.f32 0.5, %v10110_v36 }
0x11e4   :  { %v10316_v37 = vpop.eup %10315 }
0x11e5   :  { %v10318_v41 = vpop.eup %10317  ;;  %v7007_v43 = vmul.f32 1.0614054, %v10316_v37 }
0x11e6   :  { %v7006_v24 = vmul.f32 1.0614054, %v10318_v41  ;;  %v10320_v38 = vpop.eup %10319 }
0x11e7   :  { %v7009_v20 = vadd.f32 -1.4531521, %v7007_v43  ;;  %v10322_v58 = vpop.eup %10321 }
0x11e8   :  { %v7008_v10 = vadd.f32 -1.4531521, %v7006_v24 }
0x11e9   :  { %v7011_v53 = vmul.f32 %v10316_v37, %v7009_v20 }
0x11ea   :  { %v7010_v56 = vmul.f32 %v10318_v41, %v7008_v10 }
0x11eb   :  { %v7013_v23 = vadd.f32 1.4214138, %v7011_v53 }
0x11ec   :  { %v7012_v30 = vadd.f32 1.4214138, %v7010_v56 }
0x11ed   :  { %v7015_v26 = vmul.f32 %v10316_v37, %v7013_v23 }
0x11ee   :  { %v7014_v47 = vmul.f32 %v10318_v41, %v7012_v30 }
0x11ef   :  { %v7017_v1 = vadd.f32 -0.28449672, %v7015_v26  ;;  %v6992_v26 = vmul.f32 0.5, %v10111_v35 }
0x11f0   :  { %v7016_v7 = vadd.f32 -0.28449672, %v7014_v47 }
0x11f1   :  { %v7019_v4 = vmul.f32 %v10316_v37, %v7017_v1 }
0x11f2   :  { %v7018_v54 = vmul.f32 %v10318_v41, %v7016_v7 }
0x11f3   :  { %v7021_v40 = vadd.f32 0.2548296, %v7019_v4 }
0x11f4   :  { %v7020_v22 = vadd.f32 0.2548296, %v7018_v54 }
0x11f5   :  { %v7023_v31 = vmul.f32 %v10316_v37, %v7021_v40 }
0x11f6   :  { %v7022_v43 = vmul.f32 %v10318_v41, %v7020_v22 }
0x11f7   :  { %v7033_v24 = vmul.f32 %v10320_v38, %v7023_v31 }
0x11f8   :  { %v7032_v20 = vmul.f32 %v10322_v58, %v7022_v43 }
0x11f9   :  { %v7035_v34 = vsub.f32 1.0, %v7033_v24 }
0x11fa   :  { %v7034_v10 = vsub.f32 1.0, %v7032_v20 }
0x11fb   :  { %v7039_v53 = vsub.f32 0.0, %v7035_v34 }
0x11fc   :  { %v7038_v5 = vsub.f32 0.0, %v7034_v10 }
0x11fd   :  { %v7041_v56 = vsel %vm7037_vm4, %v7035_v34, %v7039_v53 }
0x11fe   :  { %v7043_v23 = vadd.f32 1.0, %v7041_v56  ;;  %v7040_v30 = vsel %vm7036_vm5, %v7034_v10, %v7038_v5 }
0x11ff   :  { %v7042_v47 = vadd.f32 1.0, %v7040_v30 }
0x1200   :  { %v7045_v1 = vmul.f32 %v7043_v23, %v6993_v3 }
0x1201   :  { %v7044_v7 = vmul.f32 %v7042_v47, %v6992_v26 }
0x1202   :  { %v11447_v37 = vand.u32 4294901760, %v7045_v1 }
0x1203   :  { %v7131_v22 = vand.u32 4294901760, %v7044_v7 }
0x1204   :  { %v11450_v41 = vsub.f32 %v7045_v1, %v11447_v37 }
0x1205   :  { %v7132_v4 = vsub.f32 %v7044_v7, %v7131_v22 }
0x1206   :  { %v7143_v54 = vand.u32 4294901760, %v11450_v41 }
0x1207   :  { %v7133_v61 = vand.u32 4294901760, %v7132_v4 }
0x1208   :  { %v7144_v40 = vsub.f32 %v11450_v41, %v7143_v54 }
0x1209   :  { %9253 = vmatprep.mubr.f32.mxu0 %v7133_v61  ;;  %v7134_v36 = vsub.f32 %v7132_v4, %v7133_v61 }
0x120a   :  { %9254 = vmatmul.mubr.f32.vlgmr.msra.gmra.mrb[12].mxu0 %v7143_v54  ;;  %v7145_v59 = vand.u32 4294901760, %v7144_v40 }
0x120b   :  { %10033 = vmatpush3.bf16.msra.mxu0 %v11328_v48  ;;  %9288 = vmatprep.mubr.f32.mxu0 %v7131_v22  ;;  %v7135_v35 = vand.u32 4294901760, %v7134_v36 }
0x120c   :  { %10035 = vmatprep.subr.bf16.mxu0 %v11358_v0 }
0x120d   :  { %9148 = vmatprep.mubr.f32.mxu1 %v7135_v35 }
0x120e   :  { %9149 = vmatmul.mubr.f32.vlgmr.msra.gmra.mrb[14].mxu1 %v7145_v59 }
0x120f   :  { %9937 = vmatpush3.bf16.msra.mxu1 %v11345_v19  ;;  %10037 = vmatpush3.bf16.msra.mxu0 %v11358_v0 }
0x1210   :  { %9183 = vmatprep.mubr.f32.mxu1 %v7131_v22  ;;  %9939 = vmatprep.subr.bf16.mxu1 %v11371_v28 }
0x1211   :  { %10039 = vmatprep.subr.bf16.mxu0 %v11364_v44 }
0x1213   :  { %9941 = vmatpush3.bf16.msra.mxu1 %v11371_v28  ;;  %10041 = vmatpush3.bf16.msra.mxu0 %v11364_v44 }
0x1214   :  { %9943 = vmatprep.subr.bf16.mxu1 %v11376_v49  ;;  %10043 = vmatprep.subr.bf16.mxu0 %v11384_v57 }
0x1217   :  { %9945 = vmatpush3.bf16.msra.mxu1 %v11376_v49  ;;  %10045 = vmatpush3.bf16.msra.mxu0 %v11384_v57 }
0x1218   :  { %9947 = vmatprep.subr.bf16.mxu1 %v11391_v2  ;;  %10047 = vmatprep.subr.bf16.mxu0 %v11386_v55 }
0x121b   :  { %9949 = vmatpush3.bf16.msra.mxu1 %v11391_v2  ;;  %10049 = vmatpush3.bf16.msra.mxu0 %v11386_v55 }
0x121c   :  { %9951 = vmatprep.subr.bf16.mxu1 %v11396_v25  ;;  %10051 = vmatprep.subr.bf16.mxu0 %v11404_v12 }
0x121f   :  { %9953 = vmatpush3.bf16.msra.mxu1 %v11396_v25  ;;  %10053 = vmatpush3.bf16.msra.mxu0 %v11404_v12 }
0x1220   :  { %9955 = vmatprep.subr.bf16.mxu1 %v11411_v13  ;;  %10055 = vmatprep.subr.bf16.mxu0 %v11406_v15 }
0x1223   :  { %9957 = vmatpush3.bf16.msra.mxu1 %v11411_v13  ;;  %10057 = vmatpush3.bf16.msra.mxu0 %v11406_v15 }
0x1224   :  { %9959 = vmatprep.subr.bf16.mxu1 %v11416_v6  ;;  %10059 = vmatprep.subr.bf16.mxu0 %v11418_v16 }
0x1227   :  { %9961 = vmatpush3.bf16.msra.mxu1 %v11416_v6  ;;  %10061 = vmatpush3.bf16.msra.mxu0 %v11418_v16 }
0x1228   :  { %9963 = vmatprep.subr.bf16.mxu1 %v11420_v52  ;;  %10063 = vmatprep.subr.bf16.mxu0 %v11156_v21 }
0x122a   :  { %9289 = vmatmul.mubr.f32.vlgmr.msra.gmra.mrb[12].mxu0 %v11447_v37 }
0x122b   :  { %9965 = vmatpush3.bf16.msra.mxu1 %v11420_v52  ;;  %10065 = vmatpush3.bf16.msra.mxu0 %v11156_v21 }
0x122c   :  { %9323 = vmatprep.mubr.f32.mxu0 %v7131_v22  ;;  %9967 = vmatprep.subr.bf16.mxu1 %v11424_v46 }
0x122d   :  { %10067 = vmatprep.subr.bf16.mxu0 %v11178_v9 }
0x122e   :  { %9184 = vmatmul.mubr.f32.vlgmr.msra.gmra.mrb[14].mxu1 %v11447_v37 }
0x122f   :  { %9969 = vmatpush3.bf16.msra.mxu1 %v11424_v46  ;;  %9218 = vmatprep.mubr.f32.mxu1 %v7132_v4 }
0x1230   :  { %10069 = vmatpush3.bf16.msra.mxu0 %v11178_v9  ;;  %9971 = vmatprep.subr.bf16.mxu1 %v11428_v8  ;;  %v11547_v9 = vsub.s32 2, %v10490_v17 }
0x1231   :  { %10071 = vmatprep.subr.bf16.mxu0 %v11200_v62 }
0x1233   :  { %9973 = vmatpush3.bf16.msra.mxu1 %v11428_v8 }
0x1234   :  { %10073 = vmatpush3.bf16.msra.mxu0 %v11200_v62  ;;  %9975 = vmatprep.subr.bf16.mxu1 %v11432_v63  ;;  %v7049_v62 = vrot.slane %v11082_v45, %v11547_v9 }
0x1235   :  { %10075 = vmatprep.subr.bf16.mxu0 %v11222_v60 }
0x1237   :  { %9977 = vmatpush3.bf16.msra.mxu1 %v11432_v63 }
0x1238   :  { %10077 = vmatpush3.bf16.msra.mxu0 %v11222_v60  ;;  %9979 = vmatprep.subr.bf16.mxu1 %v11434_v50 }
0x1239   :  { %10079 = vmatprep.subr.bf16.mxu0 %v11244_v39 }
0x123b   :  { %9981 = vmatpush3.bf16.msra.mxu1 %v11434_v50 }
0x123c   :  { %10081 = vmatpush3.bf16.msra.mxu0 %v11244_v39  ;;  %9983 = vmatprep.subr.bf16.mxu1 %v11436_v51 }
0x123d   :  { %10083 = vmatprep.subr.bf16.mxu0 %v11266_v29 }
0x123f   :  { %9985 = vmatpush3.bf16.msra.mxu1 %v11436_v51 }
0x1240   :  { %10085 = vmatpush3.bf16.msra.mxu0 %v11266_v29  ;;  %9987 = vmatprep.subr.bf16.mxu1 %v11438_v11 }
0x1241   :  { %10087 = vmatprep.subr.bf16.mxu0 %v11288_v18 }
0x1243   :  { %9989 = vmatpush3.bf16.msra.mxu1 %v11438_v11 }
0x1244   :  { %10089 = vmatpush3.bf16.msra.mxu0 %v11288_v18  ;;  %9991 = vmatprep.subr.bf16.mxu1 %v11440_v14 }
0x1245   :  { %10091 = vmatprep.subr.bf16.mxu0 %v11310_v32 }
0x1247   :  { %9993 = vmatpush3.bf16.msra.mxu1 %v11440_v14 }
0x1248   :  { %10093 = vmatpush3.bf16.msra.mxu0 %v11310_v32  ;;  %9995 = vmatprep.subr.bf16.mxu1 %v11442_v42 }
0x124b   :  { %9324 = vmatmul.mubr.f32.vlgmr.msra.gmra.mrb[12].mxu0 %v11447_v37  ;;  %9997 = vmatpush3.bf16.msra.mxu1 %v11442_v42 }
0x124e   :  { %9219 = vmatmul.mubr.f32.vlgmr.msra.gmra.mrb[14].mxu1 %v11450_v41 }
0x131e   :  { %v9325_v21 = vpop.f32.mrb[12].mxu0 }
0x131f   :  { %v7724_v60 = vpop.f32.mrb[13].mxu0 }
0x1321   :  { %v9220_v39 = vpop.f32.mrb[14].mxu1 }
0x1322   :  { %v10112_v29 = vadd.f32 %v9220_v39, %v7049_v62  ;;  %v7408_v18 = vpop.f32.mrb[15].mxu1 }
0x1323   :  { %v10114_v48 = vadd.f32 %v7408_v18, %v7049_v62 }
0x1324   :  { %v10113_v19 = vadd.f32 %v10112_v29, %v9325_v21 }
0x1325   :  { %v10115_v32 = vadd.f32 %v10114_v48, %v7724_v60 }
0x1326   :  { %v7735_v0 = vadd.f32 %v10113_v19, %v11090_v33 }
0x1327   :  { %v7734_v44 = vadd.f32 %v10115_v32, %v11095_v27 }
0x1328   :  { %7737 = vst.msk [vmem:[#allocation2 + $0x8] sm:$0xff] %vm55_vm0, %v7735_v0 }
0x1329   :  { %7736 = vst.msk [vmem:[#allocation2] sm:$0xff] %vm55_vm0, %v7734_v44 }
0x132a   :  { %10343 = shalt.err (!%p10340_p4)
}
0x132b   :  { %s10344_s11 = scalar_lea.hbm %s11545_s5, 256 }
0x132c   :  { %p10345_p5 = scmp.ne.s32.totalorder %s11545_s5, %s10344_s11  ;;  %p10348_p6 = scmp.lt.u32.totalorder %s10344_s11, %s11545_s5 }
0x132e   :  { %p10350_p7 = pnand %p10348_p6, %p10345_p5 }
0x1330   :  { %10353 = shalt.err (!%p10350_p7)
}
0x1331   :  { %s10368_s16 = smov 128  }
0x1332   :  { %7749 = dma.vmem_to_hbm [thread:$0]  %s7744_s7, 256, %s11545_s5, [#allocation3], %s10368_s16, %s10368_s16, %s10363_s29  }
0x1333   :  { %10354 = dma.done.wait [#allocation3], 256  }
0x1334   :  { %10355 = vsyncadd [#allocation3], 4294967040 }
0x1335   :  { %7753 = vsyncpa [#allocation3], 1 }

</bundles_post_ra>
